<compile_context>
chip_gen: v5e
topology: v5e:2x2
jax: 0.10.0
libtpu: 0.0.40
codegen_flags: <defaults>
</compile_context>

<pallas_src>
import jax
import jax.numpy as jnp
from jax import lax
from jax.experimental import pallas as pl
from jax.experimental.pallas import tpu as pltpu


# ----------------------------------------------------------------------------
# Pallas kernel
# ----------------------------------------------------------------------------

def _pos_embed_kernel(w_ref, sel_ref, o_ref):
    # w:   (F, W+H)   block-diagonal [col_t, 0 ; 0, row_t]   (resident constant)
    # sel: (W+H, HW)  stacked one-hot column/row selectors   (resident constant)
    # o:   (1, F, HW) lane-dense slab for the current batch index
    slab = jnp.dot(
        w_ref[...], sel_ref[...],
        preferred_element_type=jnp.float32,
        precision=lax.Precision.HIGHEST,
    )
    o_ref[0, :, :] = slab.astype(o_ref.dtype)


# ----------------------------------------------------------------------------
# Wrapper
# ----------------------------------------------------------------------------

def position_embedding_learned(x, col_t, row_t):
    """x: (B, C, H, W) NCHW (only the shape is used, as in torch).
    col_t: (F/2, W)  == col_embed.weight.T
    row_t: (F/2, H)  == row_embed.weight.T
    Returns pos of shape (B, F, H, W), matching the torch module."""
    B = x.shape[0]
    H, W = x.shape[-2], x.shape[-1]
    Fh = row_t.shape[0]
    assert col_t.shape == (Fh, W) and row_t.shape == (Fh, H)
    F = 2 * Fh
    HW = H * W

    # ---- hoisted constants (built once; XLA constant-folds under jit) -------
    # Block-diagonal weight: channels [0, Fh) take the column embedding,
    # channels [Fh, F) take the row embedding (matches torch.cat order).
    comb_w = jnp.zeros((F, W + H), jnp.float32)
    comb_w = comb_w.at[:Fh, :W].set(col_t)
    comb_w = comb_w.at[Fh:, W:].set(row_t)

    # One-hot selectors over the flat pixel index k = i*W + j.
    #   sel_col[j, k] = 1 iff j == k %  W  (column of pixel k)
    #   sel_row[i, k] = 1 iff i == k // W  (row    of pixel k)
    k = jnp.arange(HW, dtype=jnp.int32)
    sel_col = (jnp.arange(W, dtype=jnp.int32)[:, None] == (k[None, :] % W))
    sel_row = (jnp.arange(H, dtype=jnp.int32)[:, None] == (k[None, :] // W))
    comb_sel = jnp.concatenate(
        [sel_col.astype(jnp.float32), sel_row.astype(jnp.float32)], axis=0
    )  # (W+H, HW)

    pos_flat = pl.pallas_call(
        _pos_embed_kernel,
        out_shape=jax.ShapeDtypeStruct((B, F, HW), jnp.float32),
        grid=(B,),
        in_specs=[
            # Constant block index -> DMA'd once, resident across the grid.
            pl.BlockSpec((F, W + H), lambda b: (0, 0)),
            pl.BlockSpec((W + H, HW), lambda b: (0, 0)),
        ],
        out_specs=pl.BlockSpec((1, F, HW), lambda b: (b, 0, 0)),
        compiler_params=pltpu.CompilerParams(
            dimension_semantics=("parallel",)),  # one batch per TC on v7x
    )(comb_w, comb_sel)

    # Free, contiguous bitcast back to the torch NCHW layout.
    return pos_flat.reshape(B, F, H, W)


# ----------------------------------------------------------------------------
# Parameter init (mirrors torch reset_parameters: uniform_ -> U[0, 1))
# ----------------------------------------------------------------------------

def init_params(key, res, num_pos_feats=384):
    h, w = res
    fh = num_pos_feats // 2
    kr, kc = jax.random.split(key)
    # nn.Embedding stores weight as (num_embeddings, dim); we keep the transpose
    # so the kernel-side block-diagonal needs no runtime transpose.  When
    # porting real torch weights: col_t = col_embed.weight.T, row_t = row_embed.weight.T.
    row_t = jax.random.uniform(kr, (fh, h), jnp.float32)
    col_t = jax.random.uniform(kc, (fh, w), jnp.float32)
    return {"row_t": row_t, "col_t": col_t}


# ----------------------------------------------------------------------------
# Pure-JAX reference (direct transcription of the torch forward)
# ----------------------------------------------------------------------------

def position_embedding_reference(x, col_t, row_t):
    B = x.shape[0]
    H, W = x.shape[-2], x.shape[-1]
    x_emb = col_t.T                                   # (W, Fh) == col_embed(arange(W))
    y_emb = row_t.T                                   # (H, Fh) == row_embed(arange(H))
    Fh = x_emb.shape[1]
    pos = jnp.concatenate([
        jnp.broadcast_to(x_emb[None, :, :], (H, W, Fh)),
        jnp.broadcast_to(y_emb[:, None, :], (H, W, Fh)),
    ], axis=-1)                                       # (H, W, F)
    pos = jnp.transpose(pos, (2, 0, 1))               # (F, H, W)
    return jnp.broadcast_to(pos[None], (B,) + pos.shape)


# ----------------------------------------------------------------------------
# Main
# ----------------------------------------------------------------------------

if __name__ == "__main__":
    B, C, H, W = 2, 4, 16, 16
    num_pos_feats = 384

    key = jax.random.PRNGKey(0)
    kx, kp = jax.random.split(key)
    # NCHW input, like the torch module (only its shape/device matter).
    x = jax.random.normal(kx, (B, C, H, W), jnp.float32)
    params = init_params(kp, (H, W), num_pos_feats)

    pos = position_embedding_learned(x, params["col_t"], params["row_t"])
    pos = jax.block_until_ready(pos)

    ref = position_embedding_reference(x, params["col_t"], params["row_t"])
    assert pos.shape == (B, num_pos_feats, H, W), pos.shape
    assert bool(jnp.all(jnp.isfinite(pos)))
    assert bool(jnp.allclose(pos, ref, atol=1e-5, rtol=1e-5))
    print("KERNEL_OK")
</pallas_src>

<mosaic_0001>
module attributes {stable_mosaic.version = 11 : i64} {
  func.func @_pos_embed_kernel(%arg0: i32, %arg1: memref<384x32xf32, #tpu.memory_space<vmem>>, %arg2: memref<32x256xf32, #tpu.memory_space<vmem>>, %arg3: memref<1x384x256xf32, #tpu.memory_space<vmem>>) attributes {dimension_semantics = [#tpu.dimension_semantics<parallel>], iteration_bounds = array<i64: 2>, scalar_prefetch = 0 : i64, scratch_operands = 0 : i64, tpu.core_type = #tpu.core_type<tc>, window_params = [{pipeline_mode = #tpu.pipeline_mode<synchronous>, transform_indices = @transform_0, window_bounds = array<i64: 384, 32>}, {pipeline_mode = #tpu.pipeline_mode<synchronous>, transform_indices = @transform_1, window_bounds = array<i64: 32, 256>}, {transform_indices = @transform_2, window_bounds = array<i64: 1, 384, 256>}]} {
    %c0 = arith.constant 0 : index
    %c0_0 = arith.constant 0 : index
    %0 = vector.load %arg1[%c0, %c0_0] : memref<384x32xf32, #tpu.memory_space<vmem>>, vector<384x32xf32>
    %c0_1 = arith.constant 0 : index
    %c0_2 = arith.constant 0 : index
    %1 = vector.load %arg2[%c0_1, %c0_2] : memref<32x256xf32, #tpu.memory_space<vmem>>, vector<32x256xf32>
    %cst = arith.constant dense<0.000000e+00> : vector<384x256xf32>
    %2 = tpu.matmul %0, %1, %cst {dimension_numbers = #tpu.dot_dimension_numbers<[1], [0], [0], [1], [0, 0, 1, 1], [], []>, precision = #tpu.contract_precision<fp32>} : vector<384x32xf32>, vector<32x256xf32>, vector<384x256xf32> -> vector<384x256xf32>
    %c0_3 = arith.constant 0 : index
    %c0_4 = arith.constant 0 : index
    %c0_5 = arith.constant 0 : index
    %3 = vector.load %arg3[%c0_3, %c0_4, %c0_5] : memref<1x384x256xf32, #tpu.memory_space<vmem>>, vector<1x384x256xf32>
    %4 = vector.shape_cast %3 : vector<1x384x256xf32> to vector<384x256xf32>
    %5 = vector.shape_cast %2 : vector<384x256xf32> to vector<1x384x256xf32>
    tpu.vector_store %arg3[%c0_3, %c0_4, %c0_5], %5 {strides = array<i32>} : memref<1x384x256xf32, #tpu.memory_space<vmem>>, vector<1x384x256xf32>,
    return
  }
  func.func @transform_0(%arg0: i32) -> (i32, i32) {
    %c0_i32 = arith.constant 0 : i32
    %c0_i32_0 = arith.constant 0 : i32
    %c0_i32_1 = arith.constant 0 : i32
    return %c0_i32, %c0_i32_0 : i32, i32
  }
  func.func @transform_1(%arg0: i32) -> (i32, i32) {
    %c0_i32 = arith.constant 0 : i32
    %c0_i32_0 = arith.constant 0 : i32
    %c0_i32_1 = arith.constant 0 : i32
    return %c0_i32, %c0_i32_0 : i32, i32
  }
  func.func @transform_2(%arg0: i32) -> (i32, i32, i32) {
    %c0_i32 = arith.constant 0 : i32
    %c0_i32_0 = arith.constant 0 : i32
    %c0_i32_1 = arith.constant 0 : i32
    return %arg0, %c0_i32, %c0_i32_0 : i32, i32, i32
  }
}

</mosaic_0001>

<bundles_post_ra>
// kernel: tpu_custom_call.1
= control target key start
LH: loop header
LB: loop body
LE: loop exit
PB: predicated region body
PF: predicated region fallthrough
CT: control target
= control target key end

     0   :  { %7 = vsyncpa [#allocation3], 0  ;;  %s5807_s0 = inlined_call_operand.vmem [shape: f32[384,32], index: 0, kind: input, shape index: {}]   ;;  %s5808_s1 = inlined_call_operand.vmem [shape: f32[32,256], index: 1, kind: input, shape index: {}]   ;;  %s5809_s2 = inlined_call_operand.hbm [shape: f32[2,384,256], index: 2, kind: output, shape index: {}]  }
   0x1   :  { %9 = vsyncpa [#allocation3 + $0x1], 0  ;;  %s3899_s9 = smov 0   ;;  %s3901_s10 = smov 0  }
   0x2   :  { %s3903_s11 = smov 0   ;;  %s3905_s12 = smov 0  }
   0x3 LB: > { %s3768_s13 = sadd.s32 4294967295, %s3880_s12   ;;  %s3769_s14 = sadd.s32 4294967294, %s3880_s12   ;;  %s3880_s12 = sphi %s3905_s12, %s6429_s12   ;;  %s3876_s11 = sphi %s3903_s11, %s6428_s11   ;;  %s3872_s10 = sphi %s3901_s10, %s6427_s10   ;;  %s3868_s9 = sphi %s3899_s9, %s6426_s9  }
   0x4   : > { %s3922_s15 = sadd.s32 1, %s3880_s12   ;;  %s64_s16 = sadd.s32 1, %s3876_s11 }
   0x5   : > { %s61_s17 = ssub.s32 %s3880_s12, %s3922_s15  ;;  %p74_p0 = scmp.ne.s32.totalorder %s3876_s11, %s3872_s10 }
   0x6   : > { %p62_p1 = scmp.eq.s32.totalorder %s61_s17, 0  ;;  %p75_p2 = scmp.eq.s32.totalorder %s3768_s13, 1 }
   0x7   : > { %p80_p3 = scmp.ne.s32.totalorder %s3872_s10, %s3868_s9  ;;  %p81_p4 = scmp.eq.s32.totalorder %s3769_s14, 1 }
   0x8   : > { %s3934_s18 = scalar_select %p62_p1, %s3876_s11, %s64_s16  }
   0x9   : > { %p3936_p5 = por %p75_p2, %p74_p0  ;;  %p3940_p6 = por %p81_p4, %p80_p3 }
   0xa   : > { %p3771_p7 = scmp.ge.s32.totalorder %s3880_s12, 1  ;;  %p105_p8 = scmp.lt.s32.totalorder %s3880_s12, 3 }
   0xc   : > { %p106_p9 = pnand %p3771_p7, %p105_p8 }
   0xe   : > { %109 = sbr.rel (%p106_p9) target bundleno = 1317 (0x525), region = 28 }
  0x13   : > { %v176_v0 = vld [vmem:[%s5808_s1 + $0x30] sm:$0xff]  ;;  %v174_v1 = vld [vmem:[%s5808_s1 + $0x20] sm:$0xff]  ;;  %vm178_vm0 = vcmask 261120   ;;  %v177_v8 = vld [vmem:[%s5808_s1 + $0x38] sm:$0xff]  ;;  %s119_s16 = sand.u32 1, %s3872_s10   ;;  %s3776_s22 = smul.u32 768, %s3768_s13 }
  0x14   : > { %v172_v2 = vld [vmem:[%s5808_s1 + $0x10] sm:$0xff]  ;;  %v3955_v3 = vand.u32 4294901760, %v176_v0  ;;  %v3957_v4 = vand.u32 4294901760, %v174_v1  ;;  %v170_v6 = vld [vmem:[%s5808_s1] sm:$0xff]  ;;  %v3973_v11 = vand.u32 4294901760, %v177_v8  ;;  %v123_v12 = vld [vmem:[%s5807_s0 + $0x8] sm:$0xff] }
  0x15   : > { %v3959_v5 = vand.u32 4294901760, %v172_v2  ;;  %v122_v7 = vld [vmem:[%s5807_s0] sm:$0xff]  ;;  %v3970_v9 = vand.u32 4294901760, %v170_v6  ;;  %v124_v13 = vld [vmem:[%s5807_s0 + $0x10] sm:$0xff]  ;;  %v183_v20 = vsel %vm178_vm0, %v123_v12, 0  ;;  %v125_v44 = vld [vmem:[%s5807_s0 + $0x18] sm:$0xff]  ;;  %s3715_s25 = scalar_lea.hbm %s5809_s2, %s3776_s22 }
  0x16   : > { %v180_v10 = vsel %vm178_vm0, %v122_v7, 0  ;;  %336 = vmatpush.msra.mxu0 %v3955_v3  ;;  %v741_v14 = vsub.f32 %v176_v0, %v3955_v3  ;;  %1235 = vmatpush.msra.mxu3 %v3955_v3  ;;  %v747_v15 = vsub.f32 %v174_v1, %v3957_v4  ;;  %v3990_v19 = vsub.f32 %v177_v8, %v3973_v11  ;;  %v126_v52 = vld [vmem:[%s5807_s0 + $0x20] sm:$0xff]  ;;  %v127_v59 = vld [vmem:[%s5807_s0 + $0x28] sm:$0xff]  ;;  %s3775_s17 = smul.u32 768, %s119_s16  ;;  %s3718_s27 = sshll.u32 %s3715_s25, 4  ;;  %s3719_s27 = int_to_ptr.hbm [resolvable:$true] %s3718_s27 }
  0x17   : > { %v753_v16 = vsub.f32 %v172_v2, %v3959_v5  ;;  %v3986_v17 = vand.u32 4294901760, %v180_v10  ;;  %v759_v18 = vsub.f32 %v170_v6, %v3970_v9  ;;  %v186_v21 = vsel %vm178_vm0, %v124_v13, 0  ;;  %v128_v2 = vld [vmem:[%s5807_s0 + $0x30] sm:$0xff]  ;;  %s3704_s13 = scalar_lea.sflag [#allocation3], %s119_s16  ;;  %s3832_s28 = sshra.s32 %s3719_s27, 4  ;;  %s3833_s28 = int_to_ptr.hbm [resolvable:$true] %s3832_s28 }
  0x18   : > { %338 = vmatpush.msra.mxu0 %v3957_v4  ;;  %971 = vmatpush.msra.mxu2 %v741_v14  ;;  %v742_v22 = vand.u32 4294901760, %v741_v14  ;;  %v748_v24 = vand.u32 4294901760, %v747_v15  ;;  %v5811_v26 = vand.u32 4294901760, %v3990_v19  ;;  %v4000_v28 = vand.u32 4294901760, %v183_v20  ;;  %s5168_s21 = scalar_lea.vmem [#allocation2], %s3775_s17  ;;  %s3834_s29 = scalar_lea.hbm %s3833_s28, 768 }
  0x19   : > { %v3996_v23 = vsub.f32 %v180_v10, %v3986_v17  ;;  %v754_v25 = vand.u32 4294901760, %v753_v16  ;;  %1237 = vmatpush.msra.mxu3 %v3957_v4  ;;  %v760_v27 = vand.u32 4294901760, %v759_v18  ;;  %v4013_v35 = vand.u32 4294901760, %v186_v21  ;;  %s3716_s26 = sshll.u32 %s5168_s21, 4  ;;  %p3835_p10 = scmp.ne.s32.totalorder %s3833_s28, %s3834_s29  ;;  %s3717_s26 = int_to_ptr.vmem [resolvable:$true] %s3716_s26 }
  0x1a   : > { %340 = vmatpush.msra.mxu0 %v3959_v5  ;;  %974 = vmatpush.msra.mxu2 %v747_v15  ;;  %v743_v29 = vsub.f32 %v741_v14, %v742_v22  ;;  %v749_v31 = vsub.f32 %v747_v15, %v748_v24  ;;  %v2385_v33 = vsub.f32 %v3990_v19, %v5811_v26  ;;  %v189_v48 = vsel %vm178_vm0, %v125_v44, 0  ;;  %s3838_s4 = scalar_lea.hbm %s5809_s2, 1536  ;;  %p3839_p13 = scmp.lt.s32.totalorder %s3833_s28, %s5809_s2 }
  0x1b   : > { %6009 = vst [vmem:[#allocation5_spill] sm:$0xff] %v3996_v23  ;;  %v4004_v30 = vand.u32 4294901760, %v3996_v23  ;;  %v755_v32 = vsub.f32 %v753_v16, %v754_v25  ;;  %1239 = vmatpush.msra.mxu3 %v3959_v5  ;;  %v4011_v34 = vsub.f32 %v183_v20, %v4000_v28  ;;  %v761_v39 = vsub.f32 %v759_v18, %v760_v27  ;;  %p3836_p11 = pnand %p3835_p10, %p3936_p5  ;;  %p3840_p0 = scmp.lt.s32.totalorder %s3838_s4, %s3834_s29 }
  0x1c   : > { %342 = vmatpush.msra.mxu0 %v3970_v9  ;;  %v744_v36 = vand.u32 4294901760, %v743_v29  ;;  %977 = vmatpush.msra.mxu2 %v753_v16  ;;  %v750_v38 = vand.u32 4294901760, %v749_v31  ;;  %v2386_v40 = vand.u32 4294901760, %v2385_v33  ;;  %v4033_v47 = vsub.f32 %v186_v21, %v4013_v35  ;;  %v131_v29 = vld [vmem:[%s5807_s0 + $0x48] sm:$0xff] }
  0x1d   : > { %6010 = vst [vmem:[#allocation6_spill] sm:$0xff] %v4004_v30  ;;  %v346_v37 = vsub.f32 %v3996_v23, %v4004_v30  ;;  %1241 = vmatpush.msra.mxu3 %v3970_v9  ;;  %v4020_v41 = vand.u32 4294901760, %v4011_v34  ;;  %v756_v43 = vand.u32 4294901760, %v755_v32  ;;  %v762_v45 = vand.u32 4294901760, %v761_v39  ;;  %v132_v39 = vld [vmem:[%s5807_s0 + $0x50] sm:$0xff]  ;;  %p3837_p12 = pneg %p3836_p11  ;;  %p3841_p1 = por %p3840_p0, %p3839_p13 }
  0x1e   : > { %6011 = vst [vmem:[#allocation7_spill] sm:$0xff] %v4011_v34  ;;  %1546 = vmatpush.msrb.mxu0 %v742_v22  ;;  %745 = vmatpush.msra.mxu1 %v744_v36  ;;  %v4040_v50 = vand.u32 4294901760, %v4033_v47  ;;  %v4042_v51 = vand.u32 4294901760, %v189_v48  ;;  %v192_v55 = vsel %vm178_vm0, %v126_v52, 0  ;;  %v195_v62 = vsel %vm178_vm0, %v127_v59, 0  ;;  %v133_v52 = vld [vmem:[%s5807_s0 + $0x58] sm:$0xff] }
  0x1f   : > { %6012 = vst [vmem:[#allocation8_spill] sm:$0xff] %v4020_v41  ;;  %v4022_v42 = vand.u32 4294901760, %v346_v37  ;;  %980 = vmatpush.msra.mxu2 %v759_v18  ;;  %1245 = vmatmul.f32.vlgmr.msra.gmra.mxu3 %v4004_v30  ;;  %v354_v46 = vsub.f32 %v4011_v34, %v4020_v41  ;;  %v4066_v58 = vand.u32 4294901760, %v192_v55  ;;  %v4088_v1 = vand.u32 4294901760, %v195_v62  ;;  %v130_v18 = vld [vmem:[%s5807_s0 + $0x40] sm:$0xff]  ;;  %v175_v59 = vld [vmem:[%s5808_s1 + $0x28] sm:$0xff]  ;;  %p3842_p2 = pnand %p3841_p1, %p3837_p12 }
  0x20   : > { %983 = vmatmul.f32.vlgmr.msra.gmra.mxu2 %v3996_v23  ;;  %751 = vmatpush.msra.mxu1 %v750_v38  ;;  %6013 = vst [vmem:[#allocation9_spill] sm:$0xff] %v4033_v47  ;;  %v362_v53 = vsub.f32 %v4033_v47, %v4040_v50  ;;  %v4055_v54 = vsub.f32 %v189_v48, %v4042_v51  ;;  %v204_v22 = vsel %vm178_vm0, %v130_v18, 0  ;;  %v207_v33 = vsel %vm178_vm0, %v131_v29, 0 }
  0x21   : > { %348 = vmatmul.f32.vlgmr.msra.gmra.mxu0 %v4022_v42  ;;  %1978 = vmatpush.msrb.mxu2 %v3973_v11  ;;  %v4037_v49 = vand.u32 4294901760, %v354_v46  ;;  %6014 = vst [vmem:[#allocation10_spill] sm:$0xff] %v4040_v50  ;;  %v4080_v61 = vsub.f32 %v192_v55, %v4066_v58  ;;  %v4168_v38 = vand.u32 4294901760, %v207_v33  ;;  %v210_v44 = vsel %vm178_vm0, %v132_v39, 0 }
  0x22   : > { %2387 = vmatpush.msrb.mxu3 %v2386_v40  ;;  %757 = vmatpush.msra.mxu1 %v756_v43  ;;  %6015 = vst [vmem:[#allocation11_spill] sm:$0xff] %v4055_v54  ;;  %v4061_v56 = vand.u32 4294901760, %v362_v53  ;;  %v4064_v57 = vand.u32 4294901760, %v4055_v54  ;;  %v4188_v48 = vand.u32 4294901760, %v210_v44 }
  0x23   : > { %1550 = vmatpush.msrb.mxu0 %v748_v24  ;;  %6017 = vst [vmem:[#allocation13_spill] sm:$0xff] %v4080_v61  ;;  %v4086_v0 = vand.u32 4294901760, %v4080_v61  ;;  %v4180_v43 = vsub.f32 %v207_v33, %v4168_v38 }
  0x24   : > { %763 = vmatpush.msra.mxu1 %v762_v45  ;;  %6016 = vst [vmem:[#allocation12_spill] sm:$0xff] %v4064_v57  ;;  %v370_v60 = vsub.f32 %v4055_v54, %v4064_v57  ;;  %v4200_v55 = vsub.f32 %v210_v44, %v4188_v48  ;;  %v135_v44 = vld [vmem:[%s5807_s0 + $0x68] sm:$0xff] }
  0x25   : > { %1554 = vmatpush.msrb.mxu0 %v754_v25  ;;  %765 = vmatmul.f32.vlgmr.msra.gmra.mxu1 %v3986_v17  ;;  %6018 = vst [vmem:[#allocation14_spill] sm:$0xff] %v4086_v0  ;;  %v4186_v46 = vand.u32 4294901760, %v4180_v43 }
  0x26   : > { %1765 = vmatpush.msrb.mxu1 %v3955_v3  ;;  %v4083_v63 = vand.u32 4294901760, %v370_v60  ;;  %v378_v3 = vsub.f32 %v4080_v61, %v4086_v0  ;;  %6027 = vst [vmem:[#allocation23_spill] sm:$0xff] %v4180_v43  ;;  %v213_v60 = vsel %vm178_vm0, %v133_v52, 0 }
  0x27   : > { %1558 = vmatpush.msrb.mxu0 %v760_v27  ;;  %1251 = vmatmul.f32.gmra.mxu3 %v4020_v41  ;;  %v4148_v27 = vand.u32 4294901760, %v204_v22  ;;  %6028 = vst [vmem:[#allocation24_spill] sm:$0xff] %v4186_v46  ;;  %v418_v53 = vsub.f32 %v4180_v43, %v4186_v46 }
  0x28   : > { %988 = vmatmul.f32.gmra.mxu2 %v4011_v34  ;;  %1767 = vmatpush.msrb.mxu1 %v3957_v4  ;;  %v4100_v4 = vsub.f32 %v195_v62, %v4088_v1  ;;  %v4103_v6 = vand.u32 4294901760, %v378_v3  ;;  %6029 = vst [vmem:[#allocation25_spill] sm:$0xff] %v4200_v55  ;;  %v4206_v62 = vand.u32 4294901760, %v175_v59 }
  0x29   : > { %356 = vmatmul.f32.gmra.mxu0 %v4037_v49  ;;  %v4160_v32 = vsub.f32 %v204_v22, %v4148_v27  ;;  %v4213_v3 = vand.u32 4294901760, %v418_v53 }
  0x2a   : > { %2613 = vmatpush.msra.mxu0 %v3990_v19  ;;  %1769 = vmatpush.msrb.mxu1 %v3959_v5  ;;  %6019 = vst [vmem:[#allocation15_spill] sm:$0xff] %v4100_v4  ;;  %v198_v5 = vsel %vm178_vm0, %v128_v2, 0  ;;  %v4106_v7 = vand.u32 4294901760, %v4100_v4  ;;  %v4210_v2 = vsub.f32 %v175_v59, %v4206_v62  ;;  %v219_v59 = vsel %vm178_vm0, %v135_v44, 0 }
  0x2b   : > { %v4108_v8 = vand.u32 4294901760, %v198_v5  ;;  %6025 = vst [vmem:[#allocation21_spill] sm:$0xff] %v4160_v32  ;;  %v4166_v37 = vand.u32 4294901760, %v4160_v32  ;;  %1980 = vmatpush.msrb.mxu2 %v4206_v62 }
  0x2c   : > { %1771 = vmatpush.msrb.mxu1 %v3970_v9  ;;  %6020 = vst [vmem:[#allocation16_spill] sm:$0xff] %v4106_v7  ;;  %v129_v9 = vld [vmem:[%s5807_s0 + $0x38] sm:$0xff]  ;;  %v386_v10 = vsub.f32 %v4100_v4, %v4106_v7  ;;  %2616 = vmatpush.msra.mxu0 %v4210_v2 }
  0x2d   : > { %769 = vmatmul.f32.gmra.mxu1 %v4000_v28  ;;  %v4120_v12 = vsub.f32 %v198_v5, %v4108_v8  ;;  %v201_v13 = vsel %vm178_vm0, %v129_v9, 0  ;;  %6026 = vst [vmem:[#allocation22_spill] sm:$0xff] %v4166_v37  ;;  %v410_v40 = vsub.f32 %v4160_v32, %v4166_v37  ;;  %v4216_v5 = vand.u32 4294901760, %v4200_v55 }
  0x2e   : > { %2877 = vmatpush.msra.mxu1 %v3973_v11  ;;  %v4123_v14 = vand.u32 4294901760, %v386_v10  ;;  %v4128_v16 = vand.u32 4294901760, %v201_v13  ;;  %v4218_v9 = vand.u32 4294901760, %v213_v60  ;;  %v5810_v10 = vand.u32 4294901760, %v4210_v2 }
  0x2f   : > { %1257 = vmatmul.f32.gmra.mxu3 %v4040_v50  ;;  %6021 = vst [vmem:[#allocation17_spill] sm:$0xff] %v4120_v12  ;;  %v4126_v15 = vand.u32 4294901760, %v4120_v12  ;;  %v4183_v45 = vand.u32 4294901760, %v410_v40 }
  0x30   : > { %993 = vmatmul.f32.gmra.mxu2 %v4033_v47  ;;  %v4140_v21 = vsub.f32 %v201_v13, %v4128_v16  ;;  %2879 = vmatpush.msra.mxu1 %v4206_v62  ;;  %6030 = vst [vmem:[#allocation26_spill] sm:$0xff] %v4216_v5  ;;  %v134_v13 = vld [vmem:[%s5807_s0 + $0x60] sm:$0xff]  ;;  %v2391_v18 = vsub.f32 %v4210_v2, %v5810_v10 }
  0x31   : > { %364 = vmatmul.f32.gmra.mxu0 %v4061_v56  ;;  %6022 = vst [vmem:[#allocation18_spill] sm:$0xff] %v4126_v15  ;;  %v394_v20 = vsub.f32 %v4120_v12, %v4126_v15  ;;  %v4235_v22 = vsub.f32 %v213_v60, %v4218_v9  ;;  %v216_v29 = vsel %vm178_vm0, %v134_v13, 0 }
  0x32   : > { %6023 = vst [vmem:[#allocation19_spill] sm:$0xff] %v4140_v21  ;;  %v4146_v25 = vand.u32 4294901760, %v4140_v21  ;;  %v4243_v40 = vand.u32 4294901760, %v216_v29 }
  0x33   : > { %v4143_v24 = vand.u32 4294901760, %v394_v20  ;;  %v426_v20 = vsub.f32 %v4200_v55, %v4216_v5  ;;  %6031 = vst [vmem:[#allocation27_spill] sm:$0xff] %v4235_v22  ;;  %v4241_v39 = vand.u32 4294901760, %v4235_v22 }
  0x34   : > { %6024 = vst [vmem:[#allocation20_spill] sm:$0xff] %v4146_v25  ;;  %v402_v31 = vsub.f32 %v4140_v21, %v4146_v25  ;;  %v4255_v53 = vsub.f32 %v216_v29, %v4243_v40 }
  0x35   : > { %773 = vmatmul.f32.gmra.mxu1 %v4013_v35  ;;  %v4238_v33 = vand.u32 4294901760, %v426_v20  ;;  %6032 = vst [vmem:[#allocation28_spill] sm:$0xff] %v4241_v39  ;;  %v434_v52 = vsub.f32 %v4235_v22, %v4241_v39  ;;  %v136_v20 = vld [vmem:[%s5807_s0 + $0x70] sm:$0xff] }
  0x36   : > { %v4163_v36 = vand.u32 4294901760, %v402_v31  ;;  %v2392_v31 = vand.u32 4294901760, %v2391_v18  ;;  %6033 = vst [vmem:[#allocation29_spill] sm:$0xff] %v4255_v53  ;;  %v4261_v13 = vand.u32 4294901760, %v4255_v53  ;;  %v4263_v18 = vand.u32 4294901760, %v219_v59 }
  0x37   : > { %1263 = vmatmul.f32.gmra.mxu3 %v4064_v57  ;;  %v4258_v60 = vand.u32 4294901760, %v434_v52  ;;  %v222_v44 = vsel %vm178_vm0, %v136_v20, 0 }
  0x38   : > { %998 = vmatmul.f32.gmra.mxu2 %v4055_v54  ;;  %2393 = vmatpush.msrb.mxu3 %v2392_v31  ;;  %6034 = vst [vmem:[#allocation30_spill] sm:$0xff] %v4261_v13  ;;  %v442_v29 = vsub.f32 %v4255_v53, %v4261_v13  ;;  %v4275_v31 = vsub.f32 %v219_v59, %v4263_v18  ;;  %v4283_v26 = vand.u32 4294901760, %v222_v44 }
  0x39   : > { %372 = vmatmul.f32.gmra.mxu0 %v4083_v63 }
  0x3a   : > { %6035 = vst [vmem:[#allocation31_spill] sm:$0xff] %v4275_v31  ;;  %v4278_v52 = vand.u32 4294901760, %v442_v29  ;;  %v4281_v10 = vand.u32 4294901760, %v4275_v31  ;;  %v4295_v20 = vsub.f32 %v222_v44, %v4283_v26 }
  0x3c   : > { %6036 = vst [vmem:[#allocation32_spill] sm:$0xff] %v4281_v10  ;;  %v450_v59 = vsub.f32 %v4275_v31, %v4281_v10 }
  0x3d   : > { %777 = vmatmul.f32.gmra.mxu1 %v4042_v51  ;;  %6037 = vst [vmem:[#allocation33_spill] sm:$0xff] %v4295_v20 }
  0x3f   : > { %1269 = vmatmul.f32.gmra.mxu3 %v4086_v0 }
  0x40   : > { %1003 = vmatmul.f32.gmra.mxu2 %v4080_v61 }
  0x41   : > { %380 = vmatmul.f32.gmra.mxu0 %v4103_v6 }
  0x45   : > { %781 = vmatmul.f32.gmra.mxu1 %v4066_v58 }
  0x47   : > { %1275 = vmatmul.f32.gmra.mxu3 %v4106_v7 }
  0x48   : > { %1008 = vmatmul.f32.gmra.mxu2 %v4100_v4 }
  0x49   : > { %388 = vmatmul.f32.gmra.mxu0 %v4123_v14 }
  0x4d   : > { %785 = vmatmul.f32.gmra.mxu1 %v4088_v1 }
  0x4f   : > { %1281 = vmatmul.f32.gmra.mxu3 %v4126_v15 }
  0x50   : > { %1013 = vmatmul.f32.gmra.mxu2 %v4120_v12 }
  0x51   : > { %396 = vmatmul.f32.gmra.mxu0 %v4143_v24 }
  0x55   : > { %789 = vmatmul.f32.gmra.mxu1 %v4108_v8 }
  0x57   : > { %1287 = vmatmul.f32.gmra.mxu3 %v4146_v25 }
  0x58   : > { %1018 = vmatmul.f32.gmra.mxu2 %v4140_v21 }
  0x59   : > { %404 = vmatmul.f32.gmra.mxu0 %v4163_v36 }
  0x5d   : > { %793 = vmatmul.f32.gmra.mxu1 %v4128_v16 }
  0x5f   : > { %1293 = vmatmul.f32.gmra.mxu3 %v4166_v37 }
  0x60   : > { %1023 = vmatmul.f32.gmra.mxu2 %v4160_v32 }
  0x61   : > { %412 = vmatmul.f32.gmra.mxu0 %v4183_v45 }
  0x65   : > { %797 = vmatmul.f32.gmra.mxu1 %v4148_v27 }
  0x67   : > { %1299 = vmatmul.f32.gmra.mxu3 %v4186_v46 }
  0x68   : > { %1028 = vmatmul.f32.gmra.mxu2 %v4180_v43 }
  0x69   : > { %420 = vmatmul.f32.gmra.mxu0 %v4213_v3 }
  0x6d   : > { %801 = vmatmul.f32.gmra.mxu1 %v4168_v38 }
  0x6f   : > { %1305 = vmatmul.f32.gmra.mxu3 %v4216_v5  ;;  %v4301_v5 = vand.u32 4294901760, %v4295_v20 }
  0x70   : > { %1033 = vmatmul.f32.gmra.mxu2 %v4200_v55 }
  0x71   : > { %428 = vmatmul.f32.gmra.mxu0 %v4238_v33  ;;  %6038 = vst [vmem:[#allocation34_spill] sm:$0xff] %v4301_v5 }
  0x75   : > { %805 = vmatmul.f32.gmra.mxu1 %v4188_v48 }
  0x77   : > { %1311 = vmatmul.f32.gmra.mxu3 %v4241_v39  ;;  %v137_v39 = vld [vmem:[%s5807_s0 + $0x78] sm:$0xff] }
  0x78   : > { %1038 = vmatmul.f32.gmra.mxu2 %v4235_v22  ;;  %v225_v29 = vsel %vm178_vm0, %v137_v39, 0  ;;  %v4298_v22 = vand.u32 4294901760, %v450_v59  ;;  %v458_v39 = vsub.f32 %v4295_v20, %v4301_v5 }
  0x79   : > { %436 = vmatmul.f32.gmra.mxu0 %v4258_v60  ;;  %v4303_v55 = vand.u32 4294901760, %v225_v29 }
  0x7b   : > { %v4315_v44 = vsub.f32 %v225_v29, %v4303_v55 }
  0x7d   : > { %809 = vmatmul.f32.gmra.mxu1 %v4218_v9  ;;  %6039 = vst [vmem:[#allocation35_spill] sm:$0xff] %v4315_v44  ;;  %v4321_v46 = vand.u32 4294901760, %v4315_v44 }
  0x7f   : > { %1317 = vmatmul.f32.gmra.mxu3 %v4261_v13  ;;  %v138_v13 = vld [vmem:[%s5807_s0 + $0x80] sm:$0xff]  ;;  %6040 = vst [vmem:[#allocation36_spill] sm:$0xff] %v4321_v46 }
  0x80   : > { %1043 = vmatmul.f32.gmra.mxu2 %v4255_v53  ;;  %v228_v59 = vsel %vm178_vm0, %v138_v13, 0  ;;  %v4318_v53 = vand.u32 4294901760, %v458_v39  ;;  %v466_v13 = vsub.f32 %v4315_v44, %v4321_v46 }
  0x81   : > { %444 = vmatmul.f32.gmra.mxu0 %v4278_v52  ;;  %v4323_v43 = vand.u32 4294901760, %v228_v59 }
  0x83   : > { %v4335_v29 = vsub.f32 %v228_v59, %v4323_v43 }
  0x85   : > { %813 = vmatmul.f32.gmra.mxu1 %v4243_v40  ;;  %6041 = vst [vmem:[#allocation37_spill] sm:$0xff] %v4335_v29  ;;  %v4341_v37 = vand.u32 4294901760, %v4335_v29 }
  0x87   : > { %1323 = vmatmul.f32.gmra.mxu3 %v4281_v10  ;;  %v139_v10 = vld [vmem:[%s5807_s0 + $0x88] sm:$0xff]  ;;  %6042 = vst [vmem:[#allocation38_spill] sm:$0xff] %v4341_v37 }
  0x88   : > { %1048 = vmatmul.f32.gmra.mxu2 %v4275_v31  ;;  %v231_v39 = vsel %vm178_vm0, %v139_v10, 0  ;;  %v4338_v31 = vand.u32 4294901760, %v466_v13  ;;  %v474_v10 = vsub.f32 %v4335_v29, %v4341_v37 }
  0x89   : > { %452 = vmatmul.f32.gmra.mxu0 %v4298_v22  ;;  %v4343_v32 = vand.u32 4294901760, %v231_v39 }
  0x8b   : > { %6043 = vst [vmem:[#allocation39_spill] sm:$0xff] %v4343_v32  ;;  %v4355_v59 = vsub.f32 %v231_v39, %v4343_v32 }
  0x8d   : > { %817 = vmatmul.f32.gmra.mxu1 %v4263_v18  ;;  %6044 = vst [vmem:[#allocation40_spill] sm:$0xff] %v4355_v59  ;;  %v4361_v25 = vand.u32 4294901760, %v4355_v59 }
  0x8f   : > { %1329 = vmatmul.f32.gmra.mxu3 %v4301_v5  ;;  %v140_v5 = vld [vmem:[%s5807_s0 + $0x90] sm:$0xff]  ;;  %6045 = vst [vmem:[#allocation41_spill] sm:$0xff] %v4361_v25 }
  0x90   : > { %1053 = vmatmul.f32.gmra.mxu2 %v4295_v20  ;;  %v234_v13 = vsel %vm178_vm0, %v140_v5, 0  ;;  %v4358_v20 = vand.u32 4294901760, %v474_v10  ;;  %v482_v5 = vsub.f32 %v4355_v59, %v4361_v25 }
  0x91   : > { %460 = vmatmul.f32.gmra.mxu0 %v4318_v53  ;;  %v4363_v21 = vand.u32 4294901760, %v234_v13 }
  0x92   : > { %v4378_v0 = vand.u32 4294901760, %v482_v5 }
  0x93   : > { %6046 = vst [vmem:[#allocation42_spill] sm:$0xff] %v4363_v21  ;;  %v4375_v39 = vsub.f32 %v234_v13, %v4363_v21  ;;  %v142_v13 = vld [vmem:[%s5807_s0 + $0xa0] sm:$0xff] }
  0x94   : > { %6048 = vst [vmem:[#allocation44_spill] sm:$0xff] %v4378_v0 }
  0x95   : > { %821 = vmatmul.f32.gmra.mxu1 %v4283_v26  ;;  %6047 = vst [vmem:[#allocation43_spill] sm:$0xff] %v4375_v39 }
  0x97   : > { %1335 = vmatmul.f32.gmra.mxu3 %v4321_v46  ;;  %v141_v46 = vld [vmem:[%s5807_s0 + $0x98] sm:$0xff] }
  0x98   : > { %1058 = vmatmul.f32.gmra.mxu2 %v4315_v44  ;;  %v237_v10 = vsel %vm178_vm0, %v141_v46, 0 }
  0x99   : > { %468 = vmatmul.f32.gmra.mxu0 %v4338_v31 }
  0x9d   : > { %825 = vmatmul.f32.gmra.mxu1 %v4303_v55 }
  0x9e   : > { %v349_v44 = vpop.f32.mrf.mxu0 }
  0x9f   : > { %1341 = vmatmul.f32.gmra.mxu3 %v4341_v37  ;;  %v4383_v37 = vand.u32 4294901760, %v237_v10 }
  0xa0   : > { %1063 = vmatmul.f32.gmra.mxu2 %v4335_v29  ;;  %v4381_v29 = vand.u32 4294901760, %v4375_v39 }
  0xa1   : > { %476 = vmatmul.f32.gmra.mxu0 %v4358_v20  ;;  %6050 = vst [vmem:[#allocation46_spill] sm:$0xff] %v4383_v37 }
  0xa2   : > { %v766_v15 = vpop.f32.mrf.mxu1  ;;  %v1246_v4 = vpop.f32.mrf.mxu3  ;;  %6049 = vst [vmem:[#allocation45_spill] sm:$0xff] %v4381_v29 }
  0xa3   : > { %v984_v12 = vpop.f32.mrf.mxu2  ;;  %v767_v7 = vadd.f32 %v766_v15, %v349_v44  ;;  %v490_v15 = vsub.f32 %v4375_v39, %v4381_v29  ;;  %v4397_v44 = vsub.f32 %v237_v10, %v4383_v37  ;;  %v143_v10 = vld [vmem:[%s5807_s0 + $0xa8] sm:$0xff] }
  0xa5   : > { %v985_v57 = vadd.f32 %v984_v12, %v767_v7  ;;  %829 = vmatmul.f32.gmra.mxu1 %v4323_v43  ;;  %6051 = vst [vmem:[#allocation47_spill] sm:$0xff] %v4397_v44  ;;  %v240_v7 = vsel %vm178_vm0, %v142_v13, 0 }
  0xa6   : > { %v357_v61 = vpop.f32.mrf.mxu0 }
  0xa7   : > { %v4389_v46 = vadd.f32 %v1246_v4, %v985_v57  ;;  %1347 = vmatmul.f32.gmra.mxu3 %v4361_v25  ;;  %v4400_v57 = vand.u32 4294901760, %v490_v15  ;;  %v4403_v4 = vand.u32 4294901760, %v4397_v44  ;;  %v4405_v25 = vand.u32 4294901760, %v240_v7 }
  0xa8   : > { %1068 = vmatmul.f32.gmra.mxu2 %v4355_v59 }
  0xa9   : > { %484 = vmatmul.f32.gmra.mxu0 %v4378_v0  ;;  %6052 = vst [vmem:[#allocation48_spill] sm:$0xff] %v4400_v57  ;;  %v4419_v15 = vsub.f32 %v240_v7, %v4405_v25  ;;  %v144_v7 = vld [vmem:[%s5807_s0 + $0xb0] sm:$0xff] }
  0xaa   : > { %v770_v12 = vpop.f32.mrf.mxu1  ;;  %v1252_v50 = vpop.f32.mrf.mxu3  ;;  %6053 = vst [vmem:[#allocation49_spill] sm:$0xff] %v4403_v4 }
  0xab   : > { %v989_v5 = vpop.f32.mrf.mxu2  ;;  %v771_v54 = vadd.f32 %v770_v12, %v357_v61  ;;  %6054 = vst [vmem:[#allocation50_spill] sm:$0xff] %v4405_v25  ;;  %v498_v61 = vsub.f32 %v4397_v44, %v4403_v4 }
  0xac   : > { %6056 = vst [vmem:[#allocation52_spill] sm:$0xff] %v4419_v15 }
  0xad   : > { %v990_v47 = vadd.f32 %v989_v5, %v771_v54  ;;  %833 = vmatmul.f32.gmra.mxu1 %v4343_v32  ;;  %v243_v54 = vsel %vm178_vm0, %v143_v10, 0 }
  0xae   : > { %v365_v59 = vpop.f32.mrf.mxu0 }
  0xaf   : > { %v4411_v13 = vadd.f32 %v1252_v50, %v990_v47  ;;  %1353 = vmatmul.f32.gmra.mxu3 %v4381_v29  ;;  %v4422_v47 = vand.u32 4294901760, %v498_v61  ;;  %v4425_v50 = vand.u32 4294901760, %v4419_v15  ;;  %v4427_v29 = vand.u32 4294901760, %v243_v54 }
  0xb0   : > { %1073 = vmatmul.f32.gmra.mxu2 %v4375_v39 }
  0xb1   : > { %6055 = vst [vmem:[#allocation51_spill] sm:$0xff] %v4411_v13  ;;  %492 = vmatmul.f32.gmra.mxu0 %v4400_v57  ;;  %v4441_v61 = vsub.f32 %v243_v54, %v4427_v29  ;;  %v145_v54 = vld [vmem:[%s5807_s0 + $0xb8] sm:$0xff] }
  0xb2   : > { %v774_v12 = vpop.f32.mrf.mxu1  ;;  %v1258_v34 = vpop.f32.mrf.mxu3  ;;  %6057 = vst [vmem:[#allocation53_spill] sm:$0xff] %v4422_v47 }
  0xb3   : > { %v994_v5 = vpop.f32.mrf.mxu2  ;;  %v775_v41 = vadd.f32 %v774_v12, %v365_v59  ;;  %6058 = vst [vmem:[#allocation54_spill] sm:$0xff] %v4425_v50  ;;  %v506_v59 = vsub.f32 %v4419_v15, %v4425_v50 }
  0xb4   : > { %6059 = vst [vmem:[#allocation55_spill] sm:$0xff] %v4427_v29 }
  0xb5   : > { %v995_v30 = vadd.f32 %v994_v5, %v775_v41  ;;  %837 = vmatmul.f32.gmra.mxu1 %v4363_v21  ;;  %6061 = vst [vmem:[#allocation57_spill] sm:$0xff] %v4441_v61  ;;  %v246_v41 = vsel %vm178_vm0, %v144_v7, 0 }
  0xb6   : > { %v373_v39 = vpop.f32.mrf.mxu0 }
  0xb7   : > { %v4433_v10 = vadd.f32 %v1258_v34, %v995_v30  ;;  %1359 = vmatmul.f32.gmra.mxu3 %v4403_v4  ;;  %v4444_v30 = vand.u32 4294901760, %v506_v59  ;;  %v4447_v34 = vand.u32 4294901760, %v4441_v61  ;;  %v4449_v4 = vand.u32 4294901760, %v246_v41 }
  0xb8   : > { %1078 = vmatmul.f32.gmra.mxu2 %v4397_v44 }
  0xb9   : > { %6060 = vst [vmem:[#allocation56_spill] sm:$0xff] %v4433_v10  ;;  %500 = vmatmul.f32.gmra.mxu0 %v4422_v47  ;;  %v4463_v59 = vsub.f32 %v246_v41, %v4449_v4 }
  0xba   : > { %v778_v12 = vpop.f32.mrf.mxu1  ;;  %v1264_v21 = vpop.f32.mrf.mxu3  ;;  %6062 = vst [vmem:[#allocation58_spill] sm:$0xff] %v4444_v30 }
  0xbb   : > { %v999_v5 = vpop.f32.mrf.mxu2  ;;  %v779_v23 = vadd.f32 %v778_v12, %v373_v39  ;;  %6063 = vst [vmem:[#allocation59_spill] sm:$0xff] %v4447_v34  ;;  %v514_v39 = vsub.f32 %v4441_v61, %v4447_v34  ;;  %v249_v12 = vsel %vm178_vm0, %v145_v54, 0 }
  0xbc   : > { %6064 = vst [vmem:[#allocation60_spill] sm:$0xff] %v4449_v4 }
  0xbd   : > { %v1000_v47 = vadd.f32 %v999_v5, %v779_v23  ;;  %841 = vmatmul.f32.gmra.mxu1 %v4383_v37  ;;  %6066 = vst [vmem:[#allocation62_spill] sm:$0xff] %v4463_v59  ;;  %v173_v23 = vld [vmem:[%s5808_s1 + $0x18] sm:$0xff]  ;;  %v4476_v41 = vand.u32 4294901760, %v514_v39  ;;  %v4481_v37 = vand.u32 4294901760, %v249_v12 }
  0xbe   : > { %v381_v44 = vpop.f32.mrf.mxu0 }
  0xbf   : > { %v4455_v7 = vadd.f32 %v1264_v21, %v1000_v47  ;;  %1365 = vmatmul.f32.gmra.mxu3 %v4425_v50  ;;  %v4469_v21 = vand.u32 4294901760, %v173_v23  ;;  %6067 = vst [vmem:[#allocation63_spill] sm:$0xff] %v4476_v41 }
  0xc0   : > { %1083 = vmatmul.f32.gmra.mxu2 %v4419_v15  ;;  %6069 = vst [vmem:[#allocation65_spill] sm:$0xff] %v4481_v37 }
  0xc1   : > { %6065 = vst [vmem:[#allocation61_spill] sm:$0xff] %v4455_v7  ;;  %508 = vmatmul.f32.gmra.mxu0 %v4444_v30  ;;  %1982 = vmatpush.msrb.mxu2 %v4469_v21  ;;  %v4473_v30 = vsub.f32 %v173_v23, %v4469_v21  ;;  %v4479_v7 = vand.u32 4294901760, %v4463_v59  ;;  %v146_v23 = vld [vmem:[%s5807_s0 + $0xc0] sm:$0xff] }
  0xc2   : > { %v782_v47 = vpop.f32.mrf.mxu1  ;;  %v1270_v50 = vpop.f32.mrf.mxu3  ;;  %2881 = vmatpush.msra.mxu1 %v4469_v21 }
  0xc3   : > { %v1004_v5 = vpop.f32.mrf.mxu2  ;;  %v783_v15 = vadd.f32 %v782_v47, %v381_v44  ;;  %6068 = vst [vmem:[#allocation64_spill] sm:$0xff] %v4479_v7  ;;  %v5865_v44 = vand.u32 4294901760, %v4473_v30  ;;  %2619 = vmatpush.msra.mxu0 %v4473_v30  ;;  %v522_v39 = vsub.f32 %v4463_v59, %v4479_v7 }
  0xc5   : > { %v1005_v10 = vadd.f32 %v1004_v5, %v783_v15  ;;  %845 = vmatmul.f32.gmra.mxu1 %v4405_v25  ;;  %v2397_v15 = vsub.f32 %v4473_v30, %v5865_v44  ;;  %v4500_v5 = vsub.f32 %v249_v12, %v4481_v37  ;;  %v252_v25 = vsel %vm178_vm0, %v146_v23, 0  ;;  %v147_v12 = vld [vmem:[%s5807_s0 + $0xc8] sm:$0xff] }
  0xc6   : > { %v389_v54 = vpop.f32.mrf.mxu0 }
  0xc7   : > { %v4489_v47 = vadd.f32 %v1270_v50, %v1005_v10  ;;  %1371 = vmatmul.f32.gmra.mxu3 %v4447_v34  ;;  %6071 = vst [vmem:[#allocation67_spill] sm:$0xff] %v4500_v5  ;;  %v2398_v50 = vand.u32 4294901760, %v2397_v15  ;;  %v4503_v34 = vand.u32 4294901760, %v522_v39  ;;  %v4506_v44 = vand.u32 4294901760, %v4500_v5 }
  0xc8   : > { %1088 = vmatmul.f32.gmra.mxu2 %v4441_v61 }
  0xc9   : > { %6070 = vst [vmem:[#allocation66_spill] sm:$0xff] %v4489_v47  ;;  %516 = vmatmul.f32.gmra.mxu0 %v4476_v41  ;;  %2399 = vmatpush.msrb.mxu3 %v2398_v50  ;;  %v4508_v41 = vand.u32 4294901760, %v252_v25 }
  0xca   : > { %v786_v10 = vpop.f32.mrf.mxu1  ;;  %v1276_v57 = vpop.f32.mrf.mxu3  ;;  %6072 = vst [vmem:[#allocation68_spill] sm:$0xff] %v4503_v34 }
  0xcb   : > { %v1009_v47 = vpop.f32.mrf.mxu2  ;;  %v787_v61 = vadd.f32 %v786_v10, %v389_v54  ;;  %6073 = vst [vmem:[#allocation69_spill] sm:$0xff] %v4506_v44  ;;  %v530_v54 = vsub.f32 %v4500_v5, %v4506_v44  ;;  %v4522_v15 = vsub.f32 %v252_v25, %v4508_v41  ;;  %v148_v25 = vld [vmem:[%s5807_s0 + $0xd0] sm:$0xff] }
  0xcc   : > { %6074 = vst [vmem:[#allocation70_spill] sm:$0xff] %v4508_v41 }
  0xcd   : > { %v1010_v32 = vadd.f32 %v1009_v47, %v787_v61  ;;  %849 = vmatmul.f32.gmra.mxu1 %v4427_v29  ;;  %6076 = vst [vmem:[#allocation72_spill] sm:$0xff] %v4522_v15  ;;  %v255_v61 = vsel %vm178_vm0, %v147_v12, 0 }
  0xce   : > { %v397_v13 = vpop.f32.mrf.mxu0 }
  0xcf   : > { %v4514_v23 = vadd.f32 %v1276_v57, %v1010_v32  ;;  %1377 = vmatmul.f32.gmra.mxu3 %v4479_v7  ;;  %v4525_v32 = vand.u32 4294901760, %v530_v54  ;;  %v4528_v57 = vand.u32 4294901760, %v4522_v15  ;;  %v4530_v7 = vand.u32 4294901760, %v255_v61 }
  0xd0   : > { %1093 = vmatmul.f32.gmra.mxu2 %v4463_v59 }
  0xd1   : > { %6075 = vst [vmem:[#allocation71_spill] sm:$0xff] %v4514_v23  ;;  %524 = vmatmul.f32.gmra.mxu0 %v4503_v34  ;;  %v4544_v54 = vsub.f32 %v255_v61, %v4530_v7  ;;  %v149_v61 = vld [vmem:[%s5807_s0 + $0xd8] sm:$0xff] }
  0xd2   : > { %v790_v47 = vpop.f32.mrf.mxu1  ;;  %v1282_v10 = vpop.f32.mrf.mxu3  ;;  %6077 = vst [vmem:[#allocation73_spill] sm:$0xff] %v4525_v32 }
  0xd3   : > { %v1014_v39 = vpop.f32.mrf.mxu2  ;;  %v791_v50 = vadd.f32 %v790_v47, %v397_v13  ;;  %6078 = vst [vmem:[#allocation74_spill] sm:$0xff] %v4528_v57  ;;  %v538_v13 = vsub.f32 %v4522_v15, %v4528_v57  ;;  %v258_v47 = vsel %vm178_vm0, %v148_v25, 0 }
  0xd4   : > { %6079 = vst [vmem:[#allocation75_spill] sm:$0xff] %v4530_v7 }
  0xd5   : > { %v1015_v34 = vadd.f32 %v1014_v39, %v791_v50  ;;  %853 = vmatmul.f32.gmra.mxu1 %v4449_v4  ;;  %6081 = vst [vmem:[#allocation77_spill] sm:$0xff] %v4544_v54 }
  0xd6   : > { %v405_v59 = vpop.f32.mrf.mxu0 }
  0xd7   : > { %v4536_v12 = vadd.f32 %v1282_v10, %v1015_v34  ;;  %1383 = vmatmul.f32.gmra.mxu3 %v4506_v44  ;;  %v4547_v34 = vand.u32 4294901760, %v538_v13  ;;  %v4550_v10 = vand.u32 4294901760, %v4544_v54  ;;  %v4552_v44 = vand.u32 4294901760, %v258_v47 }
  0xd8   : > { %1098 = vmatmul.f32.gmra.mxu2 %v4500_v5 }
  0xd9   : > { %6080 = vst [vmem:[#allocation76_spill] sm:$0xff] %v4536_v12  ;;  %532 = vmatmul.f32.gmra.mxu0 %v4525_v32  ;;  %v4566_v13 = vsub.f32 %v258_v47, %v4552_v44  ;;  %v150_v47 = vld [vmem:[%s5807_s0 + $0xe0] sm:$0xff] }
  0xda   : > { %v794_v39 = vpop.f32.mrf.mxu1  ;;  %v1288_v23 = vpop.f32.mrf.mxu3  ;;  %6082 = vst [vmem:[#allocation78_spill] sm:$0xff] %v4547_v34 }
  0xdb   : > { %v1019_v50 = vpop.f32.mrf.mxu2  ;;  %v795_v4 = vadd.f32 %v794_v39, %v405_v59  ;;  %6083 = vst [vmem:[#allocation79_spill] sm:$0xff] %v4550_v10  ;;  %v546_v59 = vsub.f32 %v4544_v54, %v4550_v10 }
  0xdc   : > { %6084 = vst [vmem:[#allocation80_spill] sm:$0xff] %v4552_v44 }
  0xdd   : > { %v1020_v32 = vadd.f32 %v1019_v50, %v795_v4  ;;  %857 = vmatmul.f32.gmra.mxu1 %v4481_v37  ;;  %6086 = vst [vmem:[#allocation82_spill] sm:$0xff] %v4566_v13  ;;  %v261_v4 = vsel %vm178_vm0, %v149_v61, 0 }
  0xde   : > { %v413_v5 = vpop.f32.mrf.mxu0 }
  0xdf   : > { %v4558_v25 = vadd.f32 %v1288_v23, %v1020_v32  ;;  %1389 = vmatmul.f32.gmra.mxu3 %v4528_v57  ;;  %v4569_v23 = vand.u32 4294901760, %v546_v59  ;;  %v4572_v32 = vand.u32 4294901760, %v4566_v13  ;;  %v4574_v57 = vand.u32 4294901760, %v261_v4 }
  0xe0   : > { %1103 = vmatmul.f32.gmra.mxu2 %v4522_v15 }
  0xe1   : > { %6085 = vst [vmem:[#allocation81_spill] sm:$0xff] %v4558_v25  ;;  %540 = vmatmul.f32.gmra.mxu0 %v4547_v34  ;;  %v4588_v59 = vsub.f32 %v261_v4, %v4574_v57  ;;  %v151_v4 = vld [vmem:[%s5807_s0 + $0xe8] sm:$0xff] }
  0xe2   : > { %v798_v39 = vpop.f32.mrf.mxu1  ;;  %v1294_v12 = vpop.f32.mrf.mxu3  ;;  %6087 = vst [vmem:[#allocation83_spill] sm:$0xff] %v4569_v23 }
  0xe3   : > { %v1024_v50 = vpop.f32.mrf.mxu2  ;;  %v799_v37 = vadd.f32 %v798_v39, %v413_v5  ;;  %6088 = vst [vmem:[#allocation84_spill] sm:$0xff] %v4572_v32  ;;  %v554_v5 = vsub.f32 %v4566_v13, %v4572_v32 }
  0xe4   : > { %6089 = vst [vmem:[#allocation85_spill] sm:$0xff] %v4574_v57 }
  0xe5   : > { %v1025_v34 = vadd.f32 %v1024_v50, %v799_v37  ;;  %861 = vmatmul.f32.gmra.mxu1 %v4508_v41  ;;  %6091 = vst [vmem:[#allocation87_spill] sm:$0xff] %v4588_v59  ;;  %v264_v37 = vsel %vm178_vm0, %v150_v47, 0 }
  0xe6   : > { %v421_v15 = vpop.f32.mrf.mxu0 }
  0xe7   : > { %v4580_v61 = vadd.f32 %v1294_v12, %v1025_v34  ;;  %1395 = vmatmul.f32.gmra.mxu3 %v4550_v10  ;;  %v4591_v12 = vand.u32 4294901760, %v554_v5  ;;  %v4594_v34 = vand.u32 4294901760, %v4588_v59  ;;  %v4596_v10 = vand.u32 4294901760, %v264_v37 }
  0xe8   : > { %1108 = vmatmul.f32.gmra.mxu2 %v4544_v54 }
  0xe9   : > { %6090 = vst [vmem:[#allocation86_spill] sm:$0xff] %v4580_v61  ;;  %548 = vmatmul.f32.gmra.mxu0 %v4569_v23  ;;  %v4610_v5 = vsub.f32 %v264_v37, %v4596_v10  ;;  %v152_v37 = vld [vmem:[%s5807_s0 + $0xf0] sm:$0xff] }
  0xea   : > { %v802_v39 = vpop.f32.mrf.mxu1  ;;  %v1300_v25 = vpop.f32.mrf.mxu3  ;;  %6092 = vst [vmem:[#allocation88_spill] sm:$0xff] %v4591_v12 }
  0xeb   : > { %v1029_v50 = vpop.f32.mrf.mxu2  ;;  %v803_v41 = vadd.f32 %v802_v39, %v421_v15  ;;  %6093 = vst [vmem:[#allocation89_spill] sm:$0xff] %v4594_v34  ;;  %v562_v15 = vsub.f32 %v4588_v59, %v4594_v34 }
  0xec   : > { %6094 = vst [vmem:[#allocation90_spill] sm:$0xff] %v4596_v10 }
  0xed   : > { %v1030_v23 = vadd.f32 %v1029_v50, %v803_v41  ;;  %865 = vmatmul.f32.gmra.mxu1 %v4530_v7  ;;  %6096 = vst [vmem:[#allocation92_spill] sm:$0xff] %v4610_v5  ;;  %v267_v41 = vsel %vm178_vm0, %v151_v4, 0 }
  0xee   : > { %v429_v54 = vpop.f32.mrf.mxu0 }
  0xef   : > { %v4602_v47 = vadd.f32 %v1300_v25, %v1030_v23  ;;  %1401 = vmatmul.f32.gmra.mxu3 %v4572_v32  ;;  %v4613_v25 = vand.u32 4294901760, %v562_v15  ;;  %v4616_v23 = vand.u32 4294901760, %v4610_v5  ;;  %v4618_v32 = vand.u32 4294901760, %v267_v41 }
  0xf0   : > { %1113 = vmatmul.f32.gmra.mxu2 %v4566_v13 }
  0xf1   : > { %6095 = vst [vmem:[#allocation91_spill] sm:$0xff] %v4602_v47  ;;  %556 = vmatmul.f32.gmra.mxu0 %v4591_v12  ;;  %v4632_v15 = vsub.f32 %v267_v41, %v4618_v32  ;;  %v153_v41 = vld [vmem:[%s5807_s0 + $0xf8] sm:$0xff] }
  0xf2   : > { %v806_v39 = vpop.f32.mrf.mxu1  ;;  %v1306_v61 = vpop.f32.mrf.mxu3  ;;  %6097 = vst [vmem:[#allocation93_spill] sm:$0xff] %v4613_v25 }
  0xf3   : > { %v1034_v50 = vpop.f32.mrf.mxu2  ;;  %v807_v7 = vadd.f32 %v806_v39, %v429_v54  ;;  %6098 = vst [vmem:[#allocation94_spill] sm:$0xff] %v4616_v23  ;;  %v570_v54 = vsub.f32 %v4610_v5, %v4616_v23 }
  0xf4   : > { %6099 = vst [vmem:[#allocation95_spill] sm:$0xff] %v4618_v32 }
  0xf5   : > { %v1035_v12 = vadd.f32 %v1034_v50, %v807_v7  ;;  %869 = vmatmul.f32.gmra.mxu1 %v4552_v44  ;;  %6101 = vst [vmem:[#allocation97_spill] sm:$0xff] %v4632_v15  ;;  %v270_v7 = vsel %vm178_vm0, %v152_v37, 0 }
  0xf6   : > { %v437_v13 = vpop.f32.mrf.mxu0 }
  0xf7   : > { %v4624_v4 = vadd.f32 %v1306_v61, %v1035_v12  ;;  %1407 = vmatmul.f32.gmra.mxu3 %v4594_v34  ;;  %v4635_v61 = vand.u32 4294901760, %v570_v54  ;;  %v4638_v12 = vand.u32 4294901760, %v4632_v15  ;;  %v4640_v34 = vand.u32 4294901760, %v270_v7 }
  0xf8   : > { %1118 = vmatmul.f32.gmra.mxu2 %v4588_v59 }
  0xf9   : > { %6100 = vst [vmem:[#allocation96_spill] sm:$0xff] %v4624_v4  ;;  %564 = vmatmul.f32.gmra.mxu0 %v4613_v25  ;;  %v4654_v54 = vsub.f32 %v270_v7, %v4640_v34  ;;  %v154_v7 = vld [vmem:[%s5807_s0 + $0x100] sm:$0xff] }
  0xfa   : > { %v810_v39 = vpop.f32.mrf.mxu1  ;;  %v1312_v47 = vpop.f32.mrf.mxu3  ;;  %6102 = vst [vmem:[#allocation98_spill] sm:$0xff] %v4635_v61 }
  0xfb   : > { %v1039_v50 = vpop.f32.mrf.mxu2  ;;  %v811_v44 = vadd.f32 %v810_v39, %v437_v13  ;;  %6103 = vst [vmem:[#allocation99_spill] sm:$0xff] %v4638_v12  ;;  %v578_v13 = vsub.f32 %v4632_v15, %v4638_v12 }
  0xfc   : > { %6104 = vst [vmem:[#allocation100_spill] sm:$0xff] %v4640_v34 }
  0xfd   : > { %v1040_v25 = vadd.f32 %v1039_v50, %v811_v44  ;;  %873 = vmatmul.f32.gmra.mxu1 %v4574_v57  ;;  %6106 = vst [vmem:[#allocation102_spill] sm:$0xff] %v4654_v54  ;;  %v273_v44 = vsel %vm178_vm0, %v153_v41, 0 }
  0xfe   : > { %v445_v59 = vpop.f32.mrf.mxu0 }
  0xff   : > { %v4646_v37 = vadd.f32 %v1312_v47, %v1040_v25  ;;  %1413 = vmatmul.f32.gmra.mxu3 %v4616_v23  ;;  %v4657_v47 = vand.u32 4294901760, %v578_v13  ;;  %v4660_v25 = vand.u32 4294901760, %v4654_v54  ;;  %v4662_v23 = vand.u32 4294901760, %v273_v44 }
 0x100   : > { %1123 = vmatmul.f32.gmra.mxu2 %v4610_v5 }
 0x101   : > { %6105 = vst [vmem:[#allocation101_spill] sm:$0xff] %v4646_v37  ;;  %572 = vmatmul.f32.gmra.mxu0 %v4635_v61  ;;  %v4676_v13 = vsub.f32 %v273_v44, %v4662_v23  ;;  %v155_v44 = vld [vmem:[%s5807_s0 + $0x108] sm:$0xff] }
 0x102   : > { %v814_v39 = vpop.f32.mrf.mxu1  ;;  %v1318_v4 = vpop.f32.mrf.mxu3  ;;  %6107 = vst [vmem:[#allocation103_spill] sm:$0xff] %v4657_v47 }
 0x103   : > { %v1044_v50 = vpop.f32.mrf.mxu2  ;;  %v815_v57 = vadd.f32 %v814_v39, %v445_v59  ;;  %6108 = vst [vmem:[#allocation104_spill] sm:$0xff] %v4660_v25  ;;  %v586_v59 = vsub.f32 %v4654_v54, %v4660_v25 }
 0x104   : > { %6109 = vst [vmem:[#allocation105_spill] sm:$0xff] %v4662_v23 }
 0x105   : > { %v1045_v61 = vadd.f32 %v1044_v50, %v815_v57  ;;  %877 = vmatmul.f32.gmra.mxu1 %v4596_v10  ;;  %6111 = vst [vmem:[#allocation107_spill] sm:$0xff] %v4676_v13  ;;  %v276_v57 = vsel %vm178_vm0, %v154_v7, 0 }
 0x106   : > { %v453_v5 = vpop.f32.mrf.mxu0 }
 0x107   : > { %v4668_v41 = vadd.f32 %v1318_v4, %v1045_v61  ;;  %1419 = vmatmul.f32.gmra.mxu3 %v4638_v12  ;;  %v4679_v4 = vand.u32 4294901760, %v586_v59  ;;  %v4682_v61 = vand.u32 4294901760, %v4676_v13  ;;  %v4684_v12 = vand.u32 4294901760, %v276_v57 }
 0x108   : > { %1128 = vmatmul.f32.gmra.mxu2 %v4632_v15 }
 0x109   : > { %6110 = vst [vmem:[#allocation106_spill] sm:$0xff] %v4668_v41  ;;  %580 = vmatmul.f32.gmra.mxu0 %v4657_v47  ;;  %v4698_v59 = vsub.f32 %v276_v57, %v4684_v12  ;;  %v156_v57 = vld [vmem:[%s5807_s0 + $0x110] sm:$0xff] }
 0x10a   : > { %v818_v39 = vpop.f32.mrf.mxu1  ;;  %v1324_v37 = vpop.f32.mrf.mxu3  ;;  %6112 = vst [vmem:[#allocation108_spill] sm:$0xff] %v4679_v4 }
 0x10b   : > { %v1049_v50 = vpop.f32.mrf.mxu2  ;;  %v819_v10 = vadd.f32 %v818_v39, %v453_v5  ;;  %6113 = vst [vmem:[#allocation109_spill] sm:$0xff] %v4682_v61  ;;  %v594_v5 = vsub.f32 %v4676_v13, %v4682_v61 }
 0x10c   : > { %6115 = vst [vmem:[#allocation111_spill] sm:$0xff] %v4698_v59 }
 0x10d   : > { %v1050_v47 = vadd.f32 %v1049_v50, %v819_v10  ;;  %881 = vmatmul.f32.gmra.mxu1 %v4618_v32  ;;  %v279_v10 = vsel %vm178_vm0, %v155_v44, 0 }
 0x10e   : > { %v461_v15 = vpop.f32.mrf.mxu0 }
 0x10f   : > { %v4690_v7 = vadd.f32 %v1324_v37, %v1050_v47  ;;  %1425 = vmatmul.f32.gmra.mxu3 %v4660_v25  ;;  %v4701_v37 = vand.u32 4294901760, %v594_v5  ;;  %v4704_v47 = vand.u32 4294901760, %v4698_v59  ;;  %v4706_v25 = vand.u32 4294901760, %v279_v10 }
 0x110   : > { %1133 = vmatmul.f32.gmra.mxu2 %v4654_v54 }
 0x111   : > { %6114 = vst [vmem:[#allocation110_spill] sm:$0xff] %v4690_v7  ;;  %588 = vmatmul.f32.gmra.mxu0 %v4679_v4  ;;  %v4720_v5 = vsub.f32 %v279_v10, %v4706_v25  ;;  %v157_v10 = vld [vmem:[%s5807_s0 + $0x118] sm:$0xff] }
 0x112   : > { %v822_v39 = vpop.f32.mrf.mxu1  ;;  %v1330_v41 = vpop.f32.mrf.mxu3  ;;  %6116 = vst [vmem:[#allocation112_spill] sm:$0xff] %v4701_v37 }
 0x113   : > { %v1054_v50 = vpop.f32.mrf.mxu2  ;;  %v823_v32 = vadd.f32 %v822_v39, %v461_v15  ;;  %6117 = vst [vmem:[#allocation113_spill] sm:$0xff] %v4704_v47  ;;  %v602_v15 = vsub.f32 %v4698_v59, %v4704_v47 }
 0x114   : > { %6119 = vst [vmem:[#allocation115_spill] sm:$0xff] %v4720_v5 }
 0x115   : > { %v1055_v4 = vadd.f32 %v1054_v50, %v823_v32  ;;  %885 = vmatmul.f32.gmra.mxu1 %v4640_v34  ;;  %v282_v32 = vsel %vm178_vm0, %v156_v57, 0 }
 0x116   : > { %v469_v54 = vpop.f32.mrf.mxu0 }
 0x117   : > { %v4712_v44 = vadd.f32 %v1330_v41, %v1055_v4  ;;  %1431 = vmatmul.f32.gmra.mxu3 %v4682_v61  ;;  %v4723_v41 = vand.u32 4294901760, %v602_v15  ;;  %v4726_v4 = vand.u32 4294901760, %v4720_v5  ;;  %v4728_v61 = vand.u32 4294901760, %v282_v32 }
 0x118   : > { %1138 = vmatmul.f32.gmra.mxu2 %v4676_v13 }
 0x119   : > { %6118 = vst [vmem:[#allocation114_spill] sm:$0xff] %v4712_v44  ;;  %596 = vmatmul.f32.gmra.mxu0 %v4701_v37  ;;  %v4742_v15 = vsub.f32 %v282_v32, %v4728_v61  ;;  %v6128_v44 = vand.u32 4294901760, %v3990_v19 }
 0x11a   : > { %v826_v39 = vpop.f32.mrf.mxu1  ;;  %v1336_v7 = vpop.f32.mrf.mxu3  ;;  %6120 = vst [vmem:[#allocation116_spill] sm:$0xff] %v4723_v41 }
 0x11b   : > { %v1059_v50 = vpop.f32.mrf.mxu2  ;;  %v827_v34 = vadd.f32 %v826_v39, %v469_v54  ;;  %6121 = vst [vmem:[#allocation117_spill] sm:$0xff] %v4726_v4  ;;  %v610_v54 = vsub.f32 %v4720_v5, %v4726_v4  ;;  %v285_v39 = vsel %vm178_vm0, %v157_v10, 0 }
 0x11c   : > { %6122 = vst [vmem:[#allocation118_spill] sm:$0xff] %v4728_v61  ;;  %v4753_v32 = vand.u32 4294901760, %v285_v39 }
 0x11d   : > { %v1060_v37 = vadd.f32 %v1059_v50, %v827_v34  ;;  %889 = vmatmul.f32.gmra.mxu1 %v4662_v23  ;;  %6124 = vst [vmem:[#allocation120_spill] sm:$0xff] %v4742_v15  ;;  %v171_v34 = vld [vmem:[%s5808_s1 + $0x8] sm:$0xff]  ;;  %v4751_v23 = vand.u32 4294901760, %v4742_v15 }
 0x11e   : > { %v477_v13 = vpop.f32.mrf.mxu0  ;;  %6127 = vst [vmem:[#allocation123_spill] sm:$0xff] %v4753_v32 }
 0x11f   : > { %v4734_v57 = vadd.f32 %v1336_v7, %v1060_v37  ;;  %1437 = vmatmul.f32.gmra.mxu3 %v4704_v47  ;;  %v1983_v7 = vand.u32 4294901760, %v171_v34  ;;  %6126 = vst [vmem:[#allocation122_spill] sm:$0xff] %v4751_v23 }
 0x120   : > { %1143 = vmatmul.f32.gmra.mxu2 %v4698_v59 }
 0x121   : > { %6123 = vst [vmem:[#allocation119_spill] sm:$0xff] %v4734_v57  ;;  %604 = vmatmul.f32.gmra.mxu0 %v4723_v41  ;;  %1984 = vmatpush.msrb.mxu2 %v1983_v7  ;;  %v2401_v47 = vsub.f32 %v171_v34, %v1983_v7  ;;  %v4748_v41 = vand.u32 4294901760, %v610_v54  ;;  %v6129_v54 = vand.u32 4294901760, %v4210_v2 }
 0x122   : > { %v830_v37 = vpop.f32.mrf.mxu1  ;;  %v1342_v57 = vpop.f32.mrf.mxu3  ;;  %2883 = vmatpush.msra.mxu1 %v1983_v7 }
 0x123   : > { %v1064_v50 = vpop.f32.mrf.mxu2  ;;  %v831_v59 = vadd.f32 %v830_v37, %v477_v13  ;;  %6125 = vst [vmem:[#allocation121_spill] sm:$0xff] %v4748_v41  ;;  %3188 = vmatpush.msra.mxu2 %v6128_v44  ;;  %v2402_v0 = vand.u32 4294901760, %v2401_v47  ;;  %2622 = vmatpush.msra.mxu0 %v2401_v47  ;;  %v158_v13 = vld [vmem:[%s5807_s0 + $0x120] sm:$0xff]  ;;  %v4771_v44 = vsub.f32 %v285_v39, %v4753_v32  ;;  %v6131_v37 = vand.u32 4294901760, %v4473_v30 }
 0x124   : > { %v288_v2 = vsel %vm178_vm0, %v158_v13, 0 }
 0x125   : > { %v1065_v10 = vadd.f32 %v1064_v50, %v831_v59  ;;  %893 = vmatmul.f32.gmra.mxu1 %v4684_v12  ;;  %3192 = vmatpush.msra.mxu2 %v6129_v54  ;;  %v2403_v19 = vsub.f32 %v2401_v47, %v2402_v0  ;;  %v618_v59 = vsub.f32 %v4742_v15, %v4751_v23 }
 0x126   : > { %v485_v29 = vpop.f32.mrf.mxu0  ;;  %6130 = vst [vmem:[#allocation124_spill] sm:$0xff] %v4771_v44 }
 0x127   : > { %v4763_v34 = vadd.f32 %v1342_v57, %v1065_v10  ;;  %1443 = vmatmul.f32.gmra.mxu3 %v4726_v4  ;;  %3196 = vmatpush.msra.mxu2 %v6131_v37  ;;  %v2404_v57 = vand.u32 4294901760, %v2403_v19  ;;  %v4776_v47 = vand.u32 4294901760, %v618_v59 }
 0x128   : > { %1148 = vmatmul.f32.gmra.mxu2 %v4720_v5  ;;  %v4779_v5 = vand.u32 4294901760, %v4771_v44 }
 0x129   : > { %612 = vmatmul.f32.gmra.mxu0 %v4748_v41  ;;  %3200 = vmatpush.msra.mxu2 %v2402_v0  ;;  %v4781_v41 = vand.u32 4294901760, %v288_v2  ;;  %v159_v0 = vld [vmem:[%s5807_s0 + $0x128] sm:$0xff] }
 0x12a   : > { %v834_v50 = vpop.f32.mrf.mxu1  ;;  %v1348_v4 = vpop.f32.mrf.mxu3  ;;  %2405 = vmatpush.msrb.mxu3 %v2404_v57  ;;  %6132 = vst [vmem:[#allocation125_spill] sm:$0xff] %v4779_v5  ;;  %v291_v19 = vsel %vm178_vm0, %v159_v0, 0 }
 0x12b   : > { %v1069_v10 = vpop.f32.mrf.mxu2  ;;  %v835_v54 = vadd.f32 %v834_v50, %v485_v29  ;;  %6133 = vst [vmem:[#allocation126_spill] sm:$0xff] %v4781_v41  ;;  %v4797_v13 = vsub.f32 %v288_v2, %v4781_v41 }
 0x12c   : > { %3407 = vmatpush.msra.mxu3 %v3973_v11  ;;  %v626_v11 = vsub.f32 %v4771_v44, %v4779_v5 }
 0x12d   : > { %v1070_v39 = vadd.f32 %v1069_v10, %v835_v54  ;;  %897 = vmatmul.f32.gmra.mxu1 %v4706_v25  ;;  %6134 = vst [vmem:[#allocation127_spill] sm:$0xff] %v4797_v13  ;;  %v4804_v50 = vand.u32 4294901760, %v4797_v13  ;;  %v4806_v10 = vand.u32 4294901760, %v291_v19 }
 0x12e   : > { %v493_v30 = vpop.f32.mrf.mxu0  ;;  %3409 = vmatpush.msra.mxu3 %v4206_v62  ;;  %v4801_v57 = vand.u32 4294901760, %v626_v11 }
 0x12f   : > { %v4789_v29 = vadd.f32 %v1348_v4, %v1070_v39  ;;  %1449 = vmatmul.f32.gmra.mxu3 %v4751_v23  ;;  %6135 = vst [vmem:[#allocation128_spill] sm:$0xff] %v4804_v50 }
 0x130   : > { %1153 = vmatmul.f32.gmra.mxu2 %v4742_v15  ;;  %3411 = vmatpush.msra.mxu3 %v4469_v21  ;;  %6136 = vst [vmem:[#allocation129_spill] sm:$0xff] %v4806_v10  ;;  %v160_v21 = vld [vmem:[%s5807_s0 + $0x130] sm:$0xff] }
 0x131   : > { %620 = vmatmul.f32.gmra.mxu0 %v4776_v47  ;;  %v294_v0 = vsel %vm178_vm0, %v160_v21, 0 }
 0x132   : > { %v838_v59 = vpop.f32.mrf.mxu1  ;;  %3413 = vmatpush.msra.mxu3 %v1983_v7  ;;  %v1354_v37 = vpop.f32.mrf.mxu3  ;;  %v634_v7 = vsub.f32 %v4797_v13, %v4804_v50 }
 0x133   : > { %v1074_v62 = vpop.f32.mrf.mxu2  ;;  %v839_v4 = vadd.f32 %v838_v59, %v493_v30  ;;  %v4820_v30 = vsub.f32 %v291_v19, %v4806_v10  ;;  %v161_v19 = vld [vmem:[%s5807_s0 + $0x138] sm:$0xff] }
 0x135   : > { %v1075_v39 = vadd.f32 %v1074_v62, %v839_v4  ;;  %901 = vmatmul.f32.gmra.mxu1 %v4728_v61  ;;  %6137 = vst [vmem:[#allocation130_spill] sm:$0xff] %v4820_v30 }
 0x136   : > { %v501_v54 = vpop.f32.mrf.mxu0 }
 0x137   : > { %v4812_v2 = vadd.f32 %v1354_v37, %v1075_v39  ;;  %1455 = vmatmul.f32.gmra.mxu3 %v4779_v5  ;;  %v4823_v37 = vand.u32 4294901760, %v634_v7  ;;  %v4826_v39 = vand.u32 4294901760, %v4820_v30  ;;  %v4828_v5 = vand.u32 4294901760, %v294_v0 }
 0x138   : > { %1158 = vmatmul.f32.gmra.mxu2 %v4771_v44 }
 0x139   : > { %628 = vmatmul.f32.gmra.mxu0 %v4801_v57  ;;  %6138 = vst [vmem:[#allocation131_spill] sm:$0xff] %v4823_v37  ;;  %v4842_v7 = vsub.f32 %v294_v0, %v4828_v5  ;;  %v162_v0 = vld [vmem:[%s5807_s0 + $0x140] sm:$0xff] }
 0x13a   : > { %v842_v11 = vpop.f32.mrf.mxu1  ;;  %v1360_v4 = vpop.f32.mrf.mxu3  ;;  %6139 = vst [vmem:[#allocation132_spill] sm:$0xff] %v4826_v39 }
 0x13b   : > { %v1079_v59 = vpop.f32.mrf.mxu2  ;;  %v843_v62 = vadd.f32 %v842_v11, %v501_v54  ;;  %6140 = vst [vmem:[#allocation133_spill] sm:$0xff] %v4828_v5  ;;  %v642_v54 = vsub.f32 %v4820_v30, %v4826_v39  ;;  %v297_v11 = vsel %vm178_vm0, %v161_v19, 0 }
 0x13c   : > { %6142 = vst [vmem:[#allocation135_spill] sm:$0xff] %v4842_v7 }
 0x13d   : > { %v1080_v23 = vadd.f32 %v1079_v59, %v843_v62  ;;  %905 = vmatmul.f32.gmra.mxu1 %v4753_v32 }
 0x13e   : > { %v509_v44 = vpop.f32.mrf.mxu0 }
 0x13f   : > { %v4834_v21 = vadd.f32 %v1360_v4, %v1080_v23  ;;  %1461 = vmatmul.f32.gmra.mxu3 %v4804_v50  ;;  %v4845_v23 = vand.u32 4294901760, %v642_v54  ;;  %v4848_v4 = vand.u32 4294901760, %v4842_v7  ;;  %v4850_v50 = vand.u32 4294901760, %v297_v11 }
 0x140   : > { %1163 = vmatmul.f32.gmra.mxu2 %v4797_v13 }
 0x141   : > { %6141 = vst [vmem:[#allocation134_spill] sm:$0xff] %v4834_v21  ;;  %636 = vmatmul.f32.gmra.mxu0 %v4823_v37  ;;  %v4864_v54 = vsub.f32 %v297_v11, %v4850_v50  ;;  %v163_v11 = vld [vmem:[%s5807_s0 + $0x148] sm:$0xff] }
 0x142   : > { %v846_v59 = vpop.f32.mrf.mxu1  ;;  %v1366_v32 = vpop.f32.mrf.mxu3  ;;  %6143 = vst [vmem:[#allocation136_spill] sm:$0xff] %v4845_v23 }
 0x143   : > { %v1084_v62 = vpop.f32.mrf.mxu2  ;;  %v847_v15 = vadd.f32 %v846_v59, %v509_v44  ;;  %6144 = vst [vmem:[#allocation137_spill] sm:$0xff] %v4848_v4  ;;  %v650_v44 = vsub.f32 %v4842_v7, %v4848_v4 }
 0x144   : > { %6145 = vst [vmem:[#allocation138_spill] sm:$0xff] %v4850_v50 }
 0x145   : > { %v1085_v37 = vadd.f32 %v1084_v62, %v847_v15  ;;  %909 = vmatmul.f32.gmra.mxu1 %v4781_v41  ;;  %6147 = vst [vmem:[#allocation140_spill] sm:$0xff] %v4864_v54  ;;  %v300_v15 = vsel %vm178_vm0, %v162_v0, 0 }
 0x146   : > { %v517_v13 = vpop.f32.mrf.mxu0 }
 0x147   : > { %v4856_v19 = vadd.f32 %v1366_v32, %v1085_v37  ;;  %1467 = vmatmul.f32.gmra.mxu3 %v4826_v39  ;;  %v4867_v32 = vand.u32 4294901760, %v650_v44  ;;  %v4870_v37 = vand.u32 4294901760, %v4864_v54  ;;  %v4872_v39 = vand.u32 4294901760, %v300_v15 }
 0x148   : > { %1168 = vmatmul.f32.gmra.mxu2 %v4820_v30 }
 0x149   : > { %6146 = vst [vmem:[#allocation139_spill] sm:$0xff] %v4856_v19  ;;  %644 = vmatmul.f32.gmra.mxu0 %v4845_v23  ;;  %v4886_v44 = vsub.f32 %v300_v15, %v4872_v39  ;;  %v164_v15 = vld [vmem:[%s5807_s0 + $0x150] sm:$0xff] }
 0x14a   : > { %v850_v59 = vpop.f32.mrf.mxu1  ;;  %v1372_v21 = vpop.f32.mrf.mxu3  ;;  %6148 = vst [vmem:[#allocation141_spill] sm:$0xff] %v4867_v32 }
 0x14b   : > { %v1089_v62 = vpop.f32.mrf.mxu2  ;;  %v851_v41 = vadd.f32 %v850_v59, %v517_v13  ;;  %6149 = vst [vmem:[#allocation142_spill] sm:$0xff] %v4870_v37  ;;  %v658_v13 = vsub.f32 %v4864_v54, %v4870_v37 }
 0x14c   : > { %6150 = vst [vmem:[#allocation143_spill] sm:$0xff] %v4872_v39 }
 0x14d   : > { %v1090_v23 = vadd.f32 %v1089_v62, %v851_v41  ;;  %913 = vmatmul.f32.gmra.mxu1 %v4806_v10  ;;  %6152 = vst [vmem:[#allocation145_spill] sm:$0xff] %v4886_v44  ;;  %v303_v41 = vsel %vm178_vm0, %v163_v11, 0 }
 0x14e   : > { %v525_v30 = vpop.f32.mrf.mxu0 }
 0x14f   : > { %v4878_v0 = vadd.f32 %v1372_v21, %v1090_v23  ;;  %1473 = vmatmul.f32.gmra.mxu3 %v4848_v4  ;;  %v4889_v21 = vand.u32 4294901760, %v658_v13  ;;  %v4892_v23 = vand.u32 4294901760, %v4886_v44  ;;  %v4894_v4 = vand.u32 4294901760, %v303_v41 }
 0x150   : > { %1173 = vmatmul.f32.gmra.mxu2 %v4842_v7 }
 0x151   : > { %6151 = vst [vmem:[#allocation144_spill] sm:$0xff] %v4878_v0  ;;  %652 = vmatmul.f32.gmra.mxu0 %v4867_v32  ;;  %v4908_v13 = vsub.f32 %v303_v41, %v4894_v4  ;;  %v165_v41 = vld [vmem:[%s5807_s0 + $0x158] sm:$0xff] }
 0x152   : > { %v854_v59 = vpop.f32.mrf.mxu1  ;;  %v1378_v19 = vpop.f32.mrf.mxu3  ;;  %6153 = vst [vmem:[#allocation146_spill] sm:$0xff] %v4889_v21 }
 0x153   : > { %v1094_v62 = vpop.f32.mrf.mxu2  ;;  %v855_v10 = vadd.f32 %v854_v59, %v525_v30  ;;  %6154 = vst [vmem:[#allocation147_spill] sm:$0xff] %v4892_v23  ;;  %v666_v30 = vsub.f32 %v4886_v44, %v4892_v23 }
 0x154   : > { %6155 = vst [vmem:[#allocation148_spill] sm:$0xff] %v4894_v4 }
 0x155   : > { %v1095_v32 = vadd.f32 %v1094_v62, %v855_v10  ;;  %917 = vmatmul.f32.gmra.mxu1 %v4828_v5  ;;  %6157 = vst [vmem:[#allocation150_spill] sm:$0xff] %v4908_v13  ;;  %v306_v10 = vsel %vm178_vm0, %v164_v15, 0 }
 0x156   : > { %v533_v7 = vpop.f32.mrf.mxu0 }
 0x157   : > { %v4900_v11 = vadd.f32 %v1378_v19, %v1095_v32  ;;  %1479 = vmatmul.f32.gmra.mxu3 %v4870_v37  ;;  %v4911_v19 = vand.u32 4294901760, %v666_v30  ;;  %v4914_v32 = vand.u32 4294901760, %v4908_v13  ;;  %v4916_v37 = vand.u32 4294901760, %v306_v10 }
 0x158   : > { %1178 = vmatmul.f32.gmra.mxu2 %v4864_v54 }
 0x159   : > { %6156 = vst [vmem:[#allocation149_spill] sm:$0xff] %v4900_v11  ;;  %660 = vmatmul.f32.gmra.mxu0 %v4889_v21  ;;  %v4930_v30 = vsub.f32 %v306_v10, %v4916_v37  ;;  %v166_v10 = vld [vmem:[%s5807_s0 + $0x160] sm:$0xff] }
 0x15a   : > { %v858_v59 = vpop.f32.mrf.mxu1  ;;  %v1384_v0 = vpop.f32.mrf.mxu3  ;;  %6158 = vst [vmem:[#allocation151_spill] sm:$0xff] %v4911_v19 }
 0x15b   : > { %v1099_v62 = vpop.f32.mrf.mxu2  ;;  %v859_v5 = vadd.f32 %v858_v59, %v533_v7  ;;  %6159 = vst [vmem:[#allocation152_spill] sm:$0xff] %v4914_v32  ;;  %v674_v7 = vsub.f32 %v4908_v13, %v4914_v32 }
 0x15c   : > { %6160 = vst [vmem:[#allocation153_spill] sm:$0xff] %v4916_v37 }
 0x15d   : > { %v1100_v21 = vadd.f32 %v1099_v62, %v859_v5  ;;  %921 = vmatmul.f32.gmra.mxu1 %v4850_v50  ;;  %6162 = vst [vmem:[#allocation155_spill] sm:$0xff] %v4930_v30  ;;  %v309_v5 = vsel %vm178_vm0, %v165_v41, 0 }
 0x15e   : > { %v541_v54 = vpop.f32.mrf.mxu0 }
 0x15f   : > { %v4922_v15 = vadd.f32 %v1384_v0, %v1100_v21  ;;  %1485 = vmatmul.f32.gmra.mxu3 %v4892_v23  ;;  %v4933_v0 = vand.u32 4294901760, %v674_v7  ;;  %v4936_v21 = vand.u32 4294901760, %v4930_v30  ;;  %v4938_v23 = vand.u32 4294901760, %v309_v5 }
 0x160   : > { %1183 = vmatmul.f32.gmra.mxu2 %v4886_v44 }
 0x161   : > { %6161 = vst [vmem:[#allocation154_spill] sm:$0xff] %v4922_v15  ;;  %668 = vmatmul.f32.gmra.mxu0 %v4911_v19  ;;  %v4952_v7 = vsub.f32 %v309_v5, %v4938_v23  ;;  %v167_v5 = vld [vmem:[%s5807_s0 + $0x168] sm:$0xff] }
 0x162   : > { %v862_v59 = vpop.f32.mrf.mxu1  ;;  %v1390_v11 = vpop.f32.mrf.mxu3  ;;  %6163 = vst [vmem:[#allocation156_spill] sm:$0xff] %v4933_v0 }
 0x163   : > { %v1104_v62 = vpop.f32.mrf.mxu2  ;;  %v863_v50 = vadd.f32 %v862_v59, %v541_v54  ;;  %6164 = vst [vmem:[#allocation157_spill] sm:$0xff] %v4936_v21  ;;  %v682_v54 = vsub.f32 %v4930_v30, %v4936_v21 }
 0x164   : > { %6165 = vst [vmem:[#allocation158_spill] sm:$0xff] %v4938_v23 }
 0x165   : > { %v1105_v19 = vadd.f32 %v1104_v62, %v863_v50  ;;  %925 = vmatmul.f32.gmra.mxu1 %v4872_v39  ;;  %6167 = vst [vmem:[#allocation160_spill] sm:$0xff] %v4952_v7  ;;  %v312_v50 = vsel %vm178_vm0, %v166_v10, 0 }
 0x166   : > { %v549_v44 = vpop.f32.mrf.mxu0 }
 0x167   : > { %v4944_v41 = vadd.f32 %v1390_v11, %v1105_v19  ;;  %1491 = vmatmul.f32.gmra.mxu3 %v4914_v32  ;;  %v4955_v11 = vand.u32 4294901760, %v682_v54  ;;  %v4958_v19 = vand.u32 4294901760, %v4952_v7  ;;  %v4960_v32 = vand.u32 4294901760, %v312_v50 }
 0x168   : > { %1188 = vmatmul.f32.gmra.mxu2 %v4908_v13 }
 0x169   : > { %6166 = vst [vmem:[#allocation159_spill] sm:$0xff] %v4944_v41  ;;  %676 = vmatmul.f32.gmra.mxu0 %v4933_v0  ;;  %v4974_v54 = vsub.f32 %v312_v50, %v4960_v32  ;;  %v168_v50 = vld [vmem:[%s5807_s0 + $0x170] sm:$0xff] }
 0x16a   : > { %v866_v59 = vpop.f32.mrf.mxu1  ;;  %v1396_v15 = vpop.f32.mrf.mxu3  ;;  %6168 = vst [vmem:[#allocation161_spill] sm:$0xff] %v4955_v11 }
 0x16b   : > { %v1109_v62 = vpop.f32.mrf.mxu2  ;;  %v867_v39 = vadd.f32 %v866_v59, %v549_v44  ;;  %6169 = vst [vmem:[#allocation162_spill] sm:$0xff] %v4958_v19  ;;  %v690_v44 = vsub.f32 %v4952_v7, %v4958_v19 }
 0x16c   : > { %6171 = vst [vmem:[#allocation164_spill] sm:$0xff] %v4974_v54 }
 0x16d   : > { %v1110_v0 = vadd.f32 %v1109_v62, %v867_v39  ;;  %929 = vmatmul.f32.gmra.mxu1 %v4894_v4  ;;  %v315_v39 = vsel %vm178_vm0, %v167_v5, 0 }
 0x16e   : > { %v557_v13 = vpop.f32.mrf.mxu0 }
 0x16f   : > { %v4966_v10 = vadd.f32 %v1396_v15, %v1110_v0  ;;  %1497 = vmatmul.f32.gmra.mxu3 %v4936_v21  ;;  %v4977_v15 = vand.u32 4294901760, %v690_v44  ;;  %v4980_v0 = vand.u32 4294901760, %v4974_v54  ;;  %v4982_v21 = vand.u32 4294901760, %v315_v39 }
 0x170   : > { %1193 = vmatmul.f32.gmra.mxu2 %v4930_v30 }
 0x171   : > { %6170 = vst [vmem:[#allocation163_spill] sm:$0xff] %v4966_v10  ;;  %684 = vmatmul.f32.gmra.mxu0 %v4955_v11  ;;  %v4996_v44 = vsub.f32 %v315_v39, %v4982_v21  ;;  %v169_v39 = vld [vmem:[%s5807_s0 + $0x178] sm:$0xff] }
 0x172   : > { %v870_v59 = vpop.f32.mrf.mxu1  ;;  %v1402_v41 = vpop.f32.mrf.mxu3  ;;  %6172 = vst [vmem:[#allocation165_spill] sm:$0xff] %v4977_v15 }
 0x173   : > { %v1114_v62 = vpop.f32.mrf.mxu2  ;;  %v871_v4 = vadd.f32 %v870_v59, %v557_v13  ;;  %6173 = vst [vmem:[#allocation166_spill] sm:$0xff] %v4980_v0  ;;  %v698_v13 = vsub.f32 %v4974_v54, %v4980_v0 }
 0x174   : > { %6175 = vst [vmem:[#allocation168_spill] sm:$0xff] %v4996_v44 }
 0x175   : > { %v1115_v11 = vadd.f32 %v1114_v62, %v871_v4  ;;  %933 = vmatmul.f32.gmra.mxu1 %v4916_v37  ;;  %v318_v4 = vsel %vm178_vm0, %v168_v50, 0 }
 0x176   : > { %v565_v30 = vpop.f32.mrf.mxu0 }
 0x177   : > { %v4988_v5 = vadd.f32 %v1402_v41, %v1115_v11  ;;  %1503 = vmatmul.f32.gmra.mxu3 %v4958_v19  ;;  %v4999_v41 = vand.u32 4294901760, %v698_v13  ;;  %v5002_v11 = vand.u32 4294901760, %v4996_v44  ;;  %v5004_v19 = vand.u32 4294901760, %v318_v4 }
 0x178   : > { %1198 = vmatmul.f32.gmra.mxu2 %v4952_v7 }
 0x179   : > { %6174 = vst [vmem:[#allocation167_spill] sm:$0xff] %v4988_v5  ;;  %692 = vmatmul.f32.gmra.mxu0 %v4977_v15  ;;  %v5018_v13 = vsub.f32 %v318_v4, %v5004_v19 }
 0x17a   : > { %v874_v59 = vpop.f32.mrf.mxu1  ;;  %v1408_v10 = vpop.f32.mrf.mxu3  ;;  %6176 = vst [vmem:[#allocation169_spill] sm:$0xff] %v4999_v41 }
 0x17b   : > { %v1119_v62 = vpop.f32.mrf.mxu2  ;;  %v875_v37 = vadd.f32 %v874_v59, %v565_v30  ;;  %6177 = vst [vmem:[#allocation170_spill] sm:$0xff] %v5002_v11  ;;  %v706_v30 = vsub.f32 %v4996_v44, %v5002_v11 }
 0x17c   : > { %6179 = vst [vmem:[#allocation172_spill] sm:$0xff] %v5018_v13 }
 0x17d   : > { %v1120_v15 = vadd.f32 %v1119_v62, %v875_v37  ;;  %937 = vmatmul.f32.gmra.mxu1 %v4938_v23  ;;  %v321_v37 = vsel %vm178_vm0, %v169_v39, 0 }
 0x17e   : > { %v573_v7 = vpop.f32.mrf.mxu0 }
 0x17f   : > { %v5010_v50 = vadd.f32 %v1408_v10, %v1120_v15  ;;  %1509 = vmatmul.f32.gmra.mxu3 %v4980_v0  ;;  %v5021_v10 = vand.u32 4294901760, %v706_v30  ;;  %v5024_v15 = vand.u32 4294901760, %v5018_v13  ;;  %v5026_v0 = vand.u32 4294901760, %v321_v37 }
 0x180   : > { %1203 = vmatmul.f32.gmra.mxu2 %v4974_v54 }
 0x181   : > { %6178 = vst [vmem:[#allocation171_spill] sm:$0xff] %v5010_v50  ;;  %700 = vmatmul.f32.gmra.mxu0 %v4999_v41  ;;  %v5037_v4 = vsub.f32 %v321_v37, %v5026_v0 }
 0x182   : > { %v878_v59 = vpop.f32.mrf.mxu1  ;;  %v1414_v5 = vpop.f32.mrf.mxu3  ;;  %6180 = vst [vmem:[#allocation173_spill] sm:$0xff] %v5021_v10 }
 0x183   : > { %v1124_v62 = vpop.f32.mrf.mxu2  ;;  %v879_v23 = vadd.f32 %v878_v59, %v573_v7  ;;  %6181 = vst [vmem:[#allocation174_spill] sm:$0xff] %v5024_v15  ;;  %v714_v7 = vsub.f32 %v5018_v13, %v5024_v15 }
 0x184   : > { %6183 = vst [vmem:[#allocation176_spill] sm:$0xff] %v5037_v4 }
 0x185   : > { %v1125_v41 = vadd.f32 %v1124_v62, %v879_v23  ;;  %941 = vmatmul.f32.gmra.mxu1 %v4960_v32  ;;  %v5039_v62 = vand.u32 4294901760, %v714_v7 }
 0x186   : > { %v581_v54 = vpop.f32.mrf.mxu0 }
 0x187   : > { %v5029_v50 = vadd.f32 %v1414_v5, %v1125_v41  ;;  %1515 = vmatmul.f32.gmra.mxu3 %v5002_v11  ;;  %6184 = vst [vmem:[#allocation177_spill] sm:$0xff] %v5039_v62  ;;  %v5042_v5 = vand.u32 4294901760, %v5037_v4 }
 0x188   : > { %1208 = vmatmul.f32.gmra.mxu2 %v4996_v44 }
 0x189   : > { %6182 = vst [vmem:[#allocation175_spill] sm:$0xff] %v5029_v50  ;;  %708 = vmatmul.f32.gmra.mxu0 %v5021_v10 }
 0x18a   : > { %v882_v39 = vpop.f32.mrf.mxu1  ;;  %v1420_v23 = vpop.f32.mrf.mxu3  ;;  %6185 = vst [vmem:[#allocation178_spill] sm:$0xff] %v5042_v5 }
 0x18b   : > { %v1129_v30 = vpop.f32.mrf.mxu2  ;;  %v883_v59 = vadd.f32 %v882_v39, %v581_v54  ;;  %v722_v54 = vsub.f32 %v5037_v4, %v5042_v5 }
 0x18d   : > { %v1130_v44 = vadd.f32 %v1129_v30, %v883_v59  ;;  %945 = vmatmul.f32.gmra.mxu1 %v4982_v21  ;;  %v5052_v50 = vand.u32 4294901760, %v722_v54 }
 0x18e   : > { %v589_v41 = vpop.f32.mrf.mxu0 }
 0x18f   : > { %v5045_v11 = vadd.f32 %v1420_v23, %v1130_v44  ;;  %1521 = vmatmul.f32.gmra.mxu3 %v5024_v15 }
 0x190   : > { %1213 = vmatmul.f32.gmra.mxu2 %v5018_v13 }
 0x191   : > { %716 = vmatmul.f32.gmra.mxu0 %v5039_v62 }
 0x192   : > { %v886_v37 = vpop.f32.mrf.mxu1  ;;  %v1426_v10 = vpop.f32.mrf.mxu3 }
 0x193   : > { %v1134_v7 = vpop.f32.mrf.mxu2  ;;  %v887_v39 = vadd.f32 %v886_v37, %v589_v41 }
 0x195   : > { %v1135_v59 = vadd.f32 %v1134_v7, %v887_v39  ;;  %949 = vmatmul.f32.gmra.mxu1 %v5004_v19 }
 0x196   : > { %v597_v30 = vpop.f32.mrf.mxu0 }
 0x197   : > { %v5055_v44 = vadd.f32 %v1426_v10, %v1135_v59  ;;  %1527 = vmatmul.f32.gmra.mxu3 %v5042_v5 }
 0x198   : > { %1218 = vmatmul.f32.gmra.mxu2 %v5037_v4 }
 0x199   : > { %724 = vmatmul.f32.gmra.mxu0 %v5052_v50 }
 0x19a   : > { %v890_v23 = vpop.f32.mrf.mxu1  ;;  %v1432_v62 = vpop.f32.mrf.mxu3 }
 0x19b   : > { %v1139_v15 = vpop.f32.mrf.mxu2  ;;  %v891_v13 = vadd.f32 %v890_v23, %v597_v30 }
 0x19d   : > { %v1140_v37 = vadd.f32 %v1139_v15, %v891_v13  ;;  %953 = vmatmul.f32.gmra.mxu1 %v5026_v0 }
 0x19e   : > { %v605_v41 = vpop.f32.mrf.mxu0 }
 0x19f   : > { %v5061_v54 = vadd.f32 %v1432_v62, %v1140_v37  ;;  %2407 = vmatmul.f32.vlgmr.msrb.gmra.mxu3 %v3986_v17 }
 0x1a0   : > { %1990 = vmatmul.f32.vlgmr.msrb.gmra.mxu2 %v4022_v42 }
 0x1a1   : > { %1560 = vmatmul.f32.vlgmr.msrb.gmra.mxu0 %v3986_v17 }
 0x1a2   : > { %v894_v10 = vpop.f32.mrf.mxu1  ;;  %v1438_v59 = vpop.f32.mrf.mxu3 }
 0x1a3   : > { %v1144_v7 = vpop.f32.mrf.mxu2  ;;  %v895_v39 = vadd.f32 %v894_v10, %v605_v41 }
 0x1a5   : > { %v1145_v4 = vadd.f32 %v1144_v7, %v895_v39  ;;  %1773 = vmatmul.f32.vlgmr.msrb.gmra.mxu1 %v3986_v17 }
 0x1a6   : > { %v613_v5 = vpop.f32.mrf.mxu0 }
 0x1a7   : > { %v5067_v30 = vadd.f32 %v1438_v59, %v1145_v4  ;;  %2411 = vmatmul.f32.gmra.mxu3 %v4000_v28 }
 0x1a8   : > { %1998 = vmatmul.f32.gmra.mxu2 %v4037_v49 }
 0x1a9   : > { %1564 = vmatmul.f32.gmra.mxu0 %v4000_v28 }
 0x1aa   : > { %v898_v42 = vpop.f32.mrf.mxu1  ;;  %v1444_v62 = vpop.f32.mrf.mxu3 }
 0x1ab   : > { %v1149_v13 = vpop.f32.mrf.mxu2  ;;  %v899_v15 = vadd.f32 %v898_v42, %v613_v5 }
 0x1ad   : > { %v1150_v37 = vadd.f32 %v1149_v13, %v899_v15  ;;  %1777 = vmatmul.f32.gmra.mxu1 %v4000_v28 }
 0x1ae   : > { %v621_v23 = vpop.f32.mrf.mxu0 }
 0x1af   : > { %v5073_v41 = vadd.f32 %v1444_v62, %v1150_v37  ;;  %2415 = vmatmul.f32.gmra.mxu3 %v4013_v35 }
 0x1b0   : > { %2006 = vmatmul.f32.gmra.mxu2 %v4061_v56 }
 0x1b1   : > { %1568 = vmatmul.f32.gmra.mxu0 %v4013_v35 }
 0x1b2   : > { %v902_v49 = vpop.f32.mrf.mxu1  ;;  %v1450_v7 = vpop.f32.mrf.mxu3 }
 0x1b3   : > { %v1154_v4 = vpop.f32.mrf.mxu2  ;;  %v903_v10 = vadd.f32 %v902_v49, %v621_v23 }
 0x1b5   : > { %v1155_v59 = vadd.f32 %v1154_v4, %v903_v10  ;;  %1781 = vmatmul.f32.gmra.mxu1 %v4013_v35 }
 0x1b6   : > { %v629_v39 = vpop.f32.mrf.mxu0 }
 0x1b7   : > { %v5079_v5 = vadd.f32 %v1450_v7, %v1155_v59  ;;  %2419 = vmatmul.f32.gmra.mxu3 %v4042_v51 }
 0x1b8   : > { %2014 = vmatmul.f32.gmra.mxu2 %v4083_v63 }
 0x1b9   : > { %1572 = vmatmul.f32.gmra.mxu0 %v4042_v51 }
 0x1ba   : > { %v906_v56 = vpop.f32.mrf.mxu1  ;;  %v1456_v15 = vpop.f32.mrf.mxu3 }
 0x1bb   : > { %v1159_v42 = vpop.f32.mrf.mxu2  ;;  %v907_v13 = vadd.f32 %v906_v56, %v629_v39 }
 0x1bd   : > { %v1160_v37 = vadd.f32 %v1159_v42, %v907_v13  ;;  %1785 = vmatmul.f32.gmra.mxu1 %v4042_v51 }
 0x1be   : > { %v637_v62 = vpop.f32.mrf.mxu0 }
 0x1bf   : > { %v5085_v23 = vadd.f32 %v1456_v15, %v1160_v37  ;;  %2423 = vmatmul.f32.gmra.mxu3 %v4066_v58 }
 0x1c0   : > { %2022 = vmatmul.f32.gmra.mxu2 %v4103_v6 }
 0x1c1   : > { %1576 = vmatmul.f32.gmra.mxu0 %v4066_v58 }
 0x1c2   : > { %v910_v63 = vpop.f32.mrf.mxu1  ;;  %v1462_v10 = vpop.f32.mrf.mxu3 }
 0x1c3   : > { %v1164_v49 = vpop.f32.mrf.mxu2  ;;  %v911_v4 = vadd.f32 %v910_v63, %v637_v62 }
 0x1c5   : > { %v1165_v59 = vadd.f32 %v1164_v49, %v911_v4  ;;  %1789 = vmatmul.f32.gmra.mxu1 %v4066_v58 }
 0x1c6   : > { %v645_v7 = vpop.f32.mrf.mxu0 }
 0x1c7   : > { %v5091_v39 = vadd.f32 %v1462_v10, %v1165_v59  ;;  %2427 = vmatmul.f32.gmra.mxu3 %v4088_v1 }
 0x1c8   : > { %2030 = vmatmul.f32.gmra.mxu2 %v4123_v14 }
 0x1c9   : > { %1580 = vmatmul.f32.gmra.mxu0 %v4088_v1 }
 0x1ca   : > { %v914_v6 = vpop.f32.mrf.mxu1  ;;  %v1468_v13 = vpop.f32.mrf.mxu3 }
 0x1cb   : > { %v1169_v56 = vpop.f32.mrf.mxu2  ;;  %v915_v42 = vadd.f32 %v914_v6, %v645_v7 }
 0x1cd   : > { %v1170_v37 = vadd.f32 %v1169_v56, %v915_v42  ;;  %1793 = vmatmul.f32.gmra.mxu1 %v4088_v1 }
 0x1ce   : > { %v653_v15 = vpop.f32.mrf.mxu0 }
 0x1cf   : > { %v5097_v62 = vadd.f32 %v1468_v13, %v1170_v37  ;;  %2431 = vmatmul.f32.gmra.mxu3 %v4108_v8 }
 0x1d0   : > { %2038 = vmatmul.f32.gmra.mxu2 %v4143_v24 }
 0x1d1   : > { %1584 = vmatmul.f32.gmra.mxu0 %v4108_v8 }
 0x1d2   : > { %v918_v14 = vpop.f32.mrf.mxu1  ;;  %v1474_v4 = vpop.f32.mrf.mxu3 }
 0x1d3   : > { %v1174_v63 = vpop.f32.mrf.mxu2  ;;  %v919_v49 = vadd.f32 %v918_v14, %v653_v15 }
 0x1d5   : > { %v1175_v59 = vadd.f32 %v1174_v63, %v919_v49  ;;  %1797 = vmatmul.f32.gmra.mxu1 %v4108_v8 }
 0x1d6   : > { %v661_v10 = vpop.f32.mrf.mxu0 }
 0x1d7   : > { %v5103_v7 = vadd.f32 %v1474_v4, %v1175_v59  ;;  %2435 = vmatmul.f32.gmra.mxu3 %v4128_v16 }
 0x1d8   : > { %2046 = vmatmul.f32.gmra.mxu2 %v4163_v36 }
 0x1d9   : > { %1588 = vmatmul.f32.gmra.mxu0 %v4128_v16 }
 0x1da   : > { %v922_v24 = vpop.f32.mrf.mxu1  ;;  %v1480_v42 = vpop.f32.mrf.mxu3 }
 0x1db   : > { %v1179_v6 = vpop.f32.mrf.mxu2  ;;  %v923_v56 = vadd.f32 %v922_v24, %v661_v10 }
 0x1dd   : > { %v1180_v37 = vadd.f32 %v1179_v6, %v923_v56  ;;  %1801 = vmatmul.f32.gmra.mxu1 %v4128_v16 }
 0x1de   : > { %v669_v13 = vpop.f32.mrf.mxu0 }
 0x1df   : > { %v5109_v15 = vadd.f32 %v1480_v42, %v1180_v37  ;;  %2439 = vmatmul.f32.gmra.mxu3 %v4148_v27 }
 0x1e0   : > { %2054 = vmatmul.f32.gmra.mxu2 %v4183_v45 }
 0x1e1   : > { %1592 = vmatmul.f32.gmra.mxu0 %v4148_v27 }
 0x1e2   : > { %v926_v36 = vpop.f32.mrf.mxu1  ;;  %v1486_v49 = vpop.f32.mrf.mxu3 }
 0x1e3   : > { %v1184_v14 = vpop.f32.mrf.mxu2  ;;  %v927_v63 = vadd.f32 %v926_v36, %v669_v13 }
 0x1e5   : > { %v1185_v59 = vadd.f32 %v1184_v14, %v927_v63  ;;  %1805 = vmatmul.f32.gmra.mxu1 %v4148_v27 }
 0x1e6   : > { %v677_v4 = vpop.f32.mrf.mxu0 }
 0x1e7   : > { %v5115_v10 = vadd.f32 %v1486_v49, %v1185_v59  ;;  %2443 = vmatmul.f32.gmra.mxu3 %v4168_v38 }
 0x1e8   : > { %2062 = vmatmul.f32.gmra.mxu2 %v4213_v3 }
 0x1e9   : > { %1596 = vmatmul.f32.gmra.mxu0 %v4168_v38 }
 0x1ea   : > { %v930_v45 = vpop.f32.mrf.mxu1  ;;  %v1492_v56 = vpop.f32.mrf.mxu3 }
 0x1eb   : > { %v1189_v24 = vpop.f32.mrf.mxu2  ;;  %v931_v6 = vadd.f32 %v930_v45, %v677_v4 }
 0x1ed   : > { %v1190_v37 = vadd.f32 %v1189_v24, %v931_v6  ;;  %1809 = vmatmul.f32.gmra.mxu1 %v4168_v38 }
 0x1ee   : > { %v685_v42 = vpop.f32.mrf.mxu0 }
 0x1ef   : > { %v5121_v13 = vadd.f32 %v1492_v56, %v1190_v37  ;;  %2447 = vmatmul.f32.gmra.mxu3 %v4188_v48 }
 0x1f0   : > { %2070 = vmatmul.f32.gmra.mxu2 %v4238_v33 }
 0x1f1   : > { %1600 = vmatmul.f32.gmra.mxu0 %v4188_v48 }
 0x1f2   : > { %v934_v3 = vpop.f32.mrf.mxu1  ;;  %v1498_v63 = vpop.f32.mrf.mxu3 }
 0x1f3   : > { %v1194_v36 = vpop.f32.mrf.mxu2  ;;  %v935_v14 = vadd.f32 %v934_v3, %v685_v42 }
 0x1f5   : > { %v1195_v59 = vadd.f32 %v1194_v36, %v935_v14  ;;  %1813 = vmatmul.f32.gmra.mxu1 %v4188_v48 }
 0x1f6   : > { %v693_v49 = vpop.f32.mrf.mxu0 }
 0x1f7   : > { %v5127_v4 = vadd.f32 %v1498_v63, %v1195_v59  ;;  %2451 = vmatmul.f32.gmra.mxu3 %v4218_v9 }
 0x1f8   : > { %2078 = vmatmul.f32.gmra.mxu2 %v4258_v60 }
 0x1f9   : > { %1604 = vmatmul.f32.gmra.mxu0 %v4218_v9 }
 0x1fa   : > { %v938_v33 = vpop.f32.mrf.mxu1  ;;  %v1504_v6 = vpop.f32.mrf.mxu3 }
 0x1fb   : > { %v1199_v45 = vpop.f32.mrf.mxu2  ;;  %v939_v24 = vadd.f32 %v938_v33, %v693_v49 }
 0x1fd   : > { %v1200_v37 = vadd.f32 %v1199_v45, %v939_v24  ;;  %1817 = vmatmul.f32.gmra.mxu1 %v4218_v9 }
 0x1fe   : > { %v701_v56 = vpop.f32.mrf.mxu0 }
 0x1ff   : > { %v5133_v42 = vadd.f32 %v1504_v6, %v1200_v37  ;;  %2455 = vmatmul.f32.gmra.mxu3 %v4243_v40 }
 0x200   : > { %2086 = vmatmul.f32.gmra.mxu2 %v4278_v52 }
 0x201   : > { %1608 = vmatmul.f32.gmra.mxu0 %v4243_v40 }
 0x202   : > { %v942_v60 = vpop.f32.mrf.mxu1  ;;  %v1510_v14 = vpop.f32.mrf.mxu3 }
 0x203   : > { %v1204_v3 = vpop.f32.mrf.mxu2  ;;  %v943_v36 = vadd.f32 %v942_v60, %v701_v56 }
 0x205   : > { %v1205_v59 = vadd.f32 %v1204_v3, %v943_v36  ;;  %1821 = vmatmul.f32.gmra.mxu1 %v4243_v40 }
 0x206   : > { %v709_v63 = vpop.f32.mrf.mxu0 }
 0x207   : > { %v5139_v49 = vadd.f32 %v1510_v14, %v1205_v59  ;;  %2459 = vmatmul.f32.gmra.mxu3 %v4263_v18 }
 0x208   : > { %2094 = vmatmul.f32.gmra.mxu2 %v4298_v22 }
 0x209   : > { %1612 = vmatmul.f32.gmra.mxu0 %v4263_v18 }
 0x20a   : > { %v946_v52 = vpop.f32.mrf.mxu1  ;;  %v1516_v24 = vpop.f32.mrf.mxu3 }
 0x20b   : > { %v1209_v33 = vpop.f32.mrf.mxu2  ;;  %v947_v45 = vadd.f32 %v946_v52, %v709_v63 }
 0x20d   : > { %v1210_v37 = vadd.f32 %v1209_v33, %v947_v45  ;;  %1825 = vmatmul.f32.gmra.mxu1 %v4263_v18 }
 0x20e   : > { %v717_v6 = vpop.f32.mrf.mxu0 }
 0x20f   : > { %v5145_v56 = vadd.f32 %v1516_v24, %v1210_v37  ;;  %2463 = vmatmul.f32.gmra.mxu3 %v4283_v26 }
 0x210   : > { %2102 = vmatmul.f32.gmra.mxu2 %v4318_v53 }
 0x211   : > { %1616 = vmatmul.f32.gmra.mxu0 %v4283_v26 }
 0x212   : > { %v950_v22 = vpop.f32.mrf.mxu1  ;;  %v1522_v36 = vpop.f32.mrf.mxu3 }
 0x213   : > { %v1214_v60 = vpop.f32.mrf.mxu2  ;;  %v951_v3 = vadd.f32 %v950_v22, %v717_v6 }
 0x215   : > { %v1215_v63 = vadd.f32 %v1214_v60, %v951_v3  ;;  %1829 = vmatmul.f32.gmra.mxu1 %v4283_v26 }
 0x216   : > { %v725_v14 = vpop.f32.mrf.mxu0 }
 0x217   : > { %v5151_v59 = vadd.f32 %v1522_v36, %v1215_v63  ;;  %2467 = vmatmul.f32.gmra.mxu3 %v4303_v55 }
 0x218   : > { %2110 = vmatmul.f32.gmra.mxu2 %v4338_v31 }
 0x219   : > { %1620 = vmatmul.f32.gmra.mxu0 %v4303_v55 }
 0x21a   : > { %v954_v53 = vpop.f32.mrf.mxu1  ;;  %v1528_v45 = vpop.f32.mrf.mxu3 }
 0x21b   : > { %v1219_v52 = vpop.f32.mrf.mxu2  ;;  %v955_v33 = vadd.f32 %v954_v53, %v725_v14  ;;  %v6188_v53 = vld [vmem:[#allocation39_spill] sm:$0xff] }
 0x21d   : > { %v1220_v24 = vadd.f32 %v1219_v52, %v955_v33  ;;  %1833 = vmatmul.f32.gmra.mxu1 %v4303_v55 }
 0x21e   : > { %v1561_v6 = vpop.f32.mrf.mxu0 }
 0x21f   : > { %v5160_v37 = vadd.f32 %v1528_v45, %v1220_v24  ;;  %2471 = vmatmul.f32.gmra.mxu3 %v4323_v43  ;;  %v1562_v31 = vadd.f32 %v1561_v6, %v4389_v46  ;;  %v6189_v46 = vld [vmem:[#allocation51_spill] sm:$0xff] }
 0x220   : > { %2118 = vmatmul.f32.gmra.mxu2 %v4358_v20  ;;  %v6187_v20 = vld [vmem:[#allocation44_spill] sm:$0xff] }
 0x221   : > { %1624 = vmatmul.f32.gmra.mxu0 %v4323_v43 }
 0x222   : > { %v1774_v22 = vpop.f32.mrf.mxu1  ;;  %v2408_v36 = vpop.f32.mrf.mxu3 }
 0x223   : > { %v1991_v60 = vpop.f32.mrf.mxu2  ;;  %v1775_v3 = vadd.f32 %v1774_v22, %v1562_v31 }
 0x224   : > { %v5166_v14 = vadd.f32 %v2408_v36, %v1991_v60  ;;  %v6191_v60 = vld [vmem:[#allocation48_spill] sm:$0xff] }
 0x225   : > { %3607 = vst [vmem:[%s5168_s21] sm:$0xff] %v1775_v3  ;;  %1837 = vmatmul.f32.gmra.mxu1 %v4323_v43  ;;  %v6192_v3 = vld [vmem:[#allocation42_spill] sm:$0xff]  ;;  %v6193_v36 = vld [vmem:[#allocation56_spill] sm:$0xff] }
 0x226   : > { %6186 = vst [vmem:[#allocation179_spill] sm:$0xff] %v5166_v14  ;;  %v1565_v63 = vpop.f32.mrf.mxu0 }
 0x227   : > { %2475 = vmatmul.f32.gmra.mxu3 %v6188_v53  ;;  %v1566_v52 = vadd.f32 %v1565_v63, %v6189_v46 }
 0x228   : > { %2126 = vmatmul.f32.gmra.mxu2 %v6187_v20 }
 0x229   : > { %1628 = vmatmul.f32.gmra.mxu0 %v6188_v53 }
 0x22a   : > { %v1778_v33 = vpop.f32.mrf.mxu1  ;;  %v2412_v6 = vpop.f32.mrf.mxu3 }
 0x22b   : > { %v1999_v45 = vpop.f32.mrf.mxu2  ;;  %v1779_v24 = vadd.f32 %v1778_v33, %v1566_v52 }
 0x22c   : > { %v5176_v31 = vadd.f32 %v2412_v6, %v1999_v45  ;;  %v6196_v6 = vld [vmem:[#allocation46_spill] sm:$0xff] }
 0x22d   : > { %3609 = vst [vmem:[%s5168_s21 + $0x10] sm:$0xff] %v1779_v24  ;;  %1841 = vmatmul.f32.gmra.mxu1 %v6188_v53  ;;  %v6195_v24 = vld [vmem:[#allocation53_spill] sm:$0xff] }
 0x22e   : > { %6190 = vst [vmem:[#allocation44_spill] sm:$0xff] %v5176_v31  ;;  %v1569_v22 = vpop.f32.mrf.mxu0 }
 0x22f   : > { %2479 = vmatmul.f32.gmra.mxu3 %v6192_v3  ;;  %v1570_v20 = vadd.f32 %v1569_v22, %v6193_v36 }
 0x230   : > { %2134 = vmatmul.f32.gmra.mxu2 %v6191_v60  ;;  %v6197_v60 = vld [vmem:[#allocation61_spill] sm:$0xff] }
 0x231   : > { %1632 = vmatmul.f32.gmra.mxu0 %v6192_v3 }
 0x232   : > { %v1782_v63 = vpop.f32.mrf.mxu1  ;;  %v2416_v52 = vpop.f32.mrf.mxu3 }
 0x233   : > { %v2007_v46 = vpop.f32.mrf.mxu2  ;;  %v1783_v14 = vadd.f32 %v1782_v63, %v1570_v20 }
 0x234   : > { %v5184_v33 = vadd.f32 %v2416_v52, %v2007_v46  ;;  %v6199_v46 = vld [vmem:[#allocation58_spill] sm:$0xff] }
 0x235   : > { %3611 = vst [vmem:[%s5168_s21 + $0x20] sm:$0xff] %v1783_v14  ;;  %1845 = vmatmul.f32.gmra.mxu1 %v6192_v3  ;;  %v6200_v52 = vld [vmem:[#allocation50_spill] sm:$0xff] }
 0x236   : > { %6194 = vst [vmem:[#allocation51_spill] sm:$0xff] %v5184_v33  ;;  %v1573_v45 = vpop.f32.mrf.mxu0 }
 0x237   : > { %2483 = vmatmul.f32.gmra.mxu3 %v6196_v6  ;;  %v1574_v31 = vadd.f32 %v1573_v45, %v6197_v60 }
 0x238   : > { %2142 = vmatmul.f32.gmra.mxu2 %v6195_v24  ;;  %v6201_v24 = vld [vmem:[#allocation66_spill] sm:$0xff] }
 0x239   : > { %1636 = vmatmul.f32.gmra.mxu0 %v6196_v6 }
 0x23a   : > { %v1786_v22 = vpop.f32.mrf.mxu1  ;;  %v2420_v20 = vpop.f32.mrf.mxu3 }
 0x23b   : > { %v2015_v36 = vpop.f32.mrf.mxu2  ;;  %v1787_v53 = vadd.f32 %v1786_v22, %v1574_v31 }
 0x23c   : > { %v5192_v63 = vadd.f32 %v2420_v20, %v2015_v36  ;;  %v6203_v36 = vld [vmem:[#allocation63_spill] sm:$0xff] }
 0x23d   : > { %3613 = vst [vmem:[%s5168_s21 + $0x30] sm:$0xff] %v1787_v53  ;;  %1849 = vmatmul.f32.gmra.mxu1 %v6196_v6  ;;  %v6204_v20 = vld [vmem:[#allocation55_spill] sm:$0xff] }
 0x23e   : > { %6198 = vst [vmem:[#allocation48_spill] sm:$0xff] %v5192_v63  ;;  %v1577_v14 = vpop.f32.mrf.mxu0 }
 0x23f   : > { %2487 = vmatmul.f32.gmra.mxu3 %v6200_v52  ;;  %v1578_v33 = vadd.f32 %v1577_v14, %v6201_v24 }
 0x240   : > { %2150 = vmatmul.f32.gmra.mxu2 %v6199_v46  ;;  %v6205_v46 = vld [vmem:[#allocation71_spill] sm:$0xff] }
 0x241   : > { %1640 = vmatmul.f32.gmra.mxu0 %v6200_v52 }
 0x242   : > { %v1790_v45 = vpop.f32.mrf.mxu1  ;;  %v2424_v31 = vpop.f32.mrf.mxu3 }
 0x243   : > { %v2023_v60 = vpop.f32.mrf.mxu2  ;;  %v1791_v3 = vadd.f32 %v1790_v45, %v1578_v33 }
 0x244   : > { %v5200_v22 = vadd.f32 %v2424_v31, %v2023_v60  ;;  %v6207_v60 = vld [vmem:[#allocation68_spill] sm:$0xff] }
 0x245   : > { %3615 = vst [vmem:[%s5168_s21 + $0x40] sm:$0xff] %v1791_v3  ;;  %1853 = vmatmul.f32.gmra.mxu1 %v6200_v52  ;;  %v6208_v31 = vld [vmem:[#allocation60_spill] sm:$0xff] }
 0x246   : > { %6202 = vst [vmem:[#allocation56_spill] sm:$0xff] %v5200_v22  ;;  %v1581_v53 = vpop.f32.mrf.mxu0 }
 0x247   : > { %2491 = vmatmul.f32.gmra.mxu3 %v6204_v20  ;;  %v1582_v63 = vadd.f32 %v1581_v53, %v6205_v46 }
 0x248   : > { %2158 = vmatmul.f32.gmra.mxu2 %v6203_v36  ;;  %v6209_v36 = vld [vmem:[#allocation76_spill] sm:$0xff] }
 0x249   : > { %1644 = vmatmul.f32.gmra.mxu0 %v6204_v20 }
 0x24a   : > { %v1794_v14 = vpop.f32.mrf.mxu1  ;;  %v2428_v33 = vpop.f32.mrf.mxu3 }
 0x24b   : > { %v2031_v24 = vpop.f32.mrf.mxu2  ;;  %v1795_v6 = vadd.f32 %v1794_v14, %v1582_v63 }
 0x24c   : > { %v5208_v45 = vadd.f32 %v2428_v33, %v2031_v24  ;;  %v6211_v24 = vld [vmem:[#allocation73_spill] sm:$0xff] }
 0x24d   : > { %3617 = vst [vmem:[%s5168_s21 + $0x50] sm:$0xff] %v1795_v6  ;;  %1857 = vmatmul.f32.gmra.mxu1 %v6204_v20  ;;  %v6212_v33 = vld [vmem:[#allocation65_spill] sm:$0xff] }
 0x24e   : > { %6206 = vst [vmem:[#allocation53_spill] sm:$0xff] %v5208_v45  ;;  %v1585_v3 = vpop.f32.mrf.mxu0 }
 0x24f   : > { %2495 = vmatmul.f32.gmra.mxu3 %v6208_v31  ;;  %v1586_v22 = vadd.f32 %v1585_v3, %v6209_v36 }
 0x250   : > { %2166 = vmatmul.f32.gmra.mxu2 %v6207_v60  ;;  %v6213_v60 = vld [vmem:[#allocation81_spill] sm:$0xff] }
 0x251   : > { %1648 = vmatmul.f32.gmra.mxu0 %v6208_v31 }
 0x252   : > { %v1798_v53 = vpop.f32.mrf.mxu1  ;;  %v2432_v63 = vpop.f32.mrf.mxu3 }
 0x253   : > { %v2039_v46 = vpop.f32.mrf.mxu2  ;;  %v1799_v52 = vadd.f32 %v1798_v53, %v1586_v22 }
 0x254   : > { %v5216_v14 = vadd.f32 %v2432_v63, %v2039_v46  ;;  %v6215_v46 = vld [vmem:[#allocation78_spill] sm:$0xff] }
 0x255   : > { %3619 = vst [vmem:[%s5168_s21 + $0x60] sm:$0xff] %v1799_v52  ;;  %1861 = vmatmul.f32.gmra.mxu1 %v6208_v31  ;;  %v6216_v63 = vld [vmem:[#allocation70_spill] sm:$0xff] }
 0x256   : > { %6210 = vst [vmem:[#allocation61_spill] sm:$0xff] %v5216_v14  ;;  %v1589_v6 = vpop.f32.mrf.mxu0 }
 0x257   : > { %2499 = vmatmul.f32.gmra.mxu3 %v6212_v33  ;;  %v1590_v45 = vadd.f32 %v1589_v6, %v6213_v60 }
 0x258   : > { %2174 = vmatmul.f32.gmra.mxu2 %v6211_v24  ;;  %v6217_v24 = vld [vmem:[#allocation86_spill] sm:$0xff] }
 0x259   : > { %1652 = vmatmul.f32.gmra.mxu0 %v6212_v33 }
 0x25a   : > { %v1802_v3 = vpop.f32.mrf.mxu1  ;;  %v2436_v22 = vpop.f32.mrf.mxu3 }
 0x25b   : > { %v2047_v36 = vpop.f32.mrf.mxu2  ;;  %v1803_v20 = vadd.f32 %v1802_v3, %v1590_v45 }
 0x25c   : > { %v5224_v53 = vadd.f32 %v2436_v22, %v2047_v36  ;;  %v6219_v36 = vld [vmem:[#allocation83_spill] sm:$0xff] }
 0x25d   : > { %3621 = vst [vmem:[%s5168_s21 + $0x70] sm:$0xff] %v1803_v20  ;;  %1865 = vmatmul.f32.gmra.mxu1 %v6212_v33  ;;  %v6220_v22 = vld [vmem:[#allocation75_spill] sm:$0xff] }
 0x25e   : > { %6214 = vst [vmem:[#allocation58_spill] sm:$0xff] %v5224_v53  ;;  %v1593_v52 = vpop.f32.mrf.mxu0 }
 0x25f   : > { %2503 = vmatmul.f32.gmra.mxu3 %v6216_v63  ;;  %v1594_v14 = vadd.f32 %v1593_v52, %v6217_v24 }
 0x260   : > { %2182 = vmatmul.f32.gmra.mxu2 %v6215_v46  ;;  %v6221_v46 = vld [vmem:[#allocation91_spill] sm:$0xff] }
 0x261   : > { %1656 = vmatmul.f32.gmra.mxu0 %v6216_v63 }
 0x262   : > { %v1806_v6 = vpop.f32.mrf.mxu1  ;;  %v2440_v45 = vpop.f32.mrf.mxu3 }
 0x263   : > { %v2055_v60 = vpop.f32.mrf.mxu2  ;;  %v1807_v31 = vadd.f32 %v1806_v6, %v1594_v14 }
 0x264   : > { %v5232_v3 = vadd.f32 %v2440_v45, %v2055_v60  ;;  %v6223_v60 = vld [vmem:[#allocation88_spill] sm:$0xff] }
 0x265   : > { %3623 = vst [vmem:[%s5168_s21 + $0x80] sm:$0xff] %v1807_v31  ;;  %1869 = vmatmul.f32.gmra.mxu1 %v6216_v63  ;;  %v6224_v45 = vld [vmem:[#allocation80_spill] sm:$0xff] }
 0x266   : > { %6218 = vst [vmem:[#allocation66_spill] sm:$0xff] %v5232_v3  ;;  %v1597_v20 = vpop.f32.mrf.mxu0 }
 0x267   : > { %2507 = vmatmul.f32.gmra.mxu3 %v6220_v22  ;;  %v1598_v53 = vadd.f32 %v1597_v20, %v6221_v46 }
 0x268   : > { %2190 = vmatmul.f32.gmra.mxu2 %v6219_v36  ;;  %v6225_v36 = vld [vmem:[#allocation96_spill] sm:$0xff] }
 0x269   : > { %1660 = vmatmul.f32.gmra.mxu0 %v6220_v22 }
 0x26a   : > { %v1810_v52 = vpop.f32.mrf.mxu1  ;;  %v2444_v14 = vpop.f32.mrf.mxu3 }
 0x26b   : > { %v2063_v24 = vpop.f32.mrf.mxu2  ;;  %v1811_v33 = vadd.f32 %v1810_v52, %v1598_v53 }
 0x26c   : > { %v5240_v6 = vadd.f32 %v2444_v14, %v2063_v24  ;;  %v6227_v24 = vld [vmem:[#allocation93_spill] sm:$0xff] }
 0x26d   : > { %3625 = vst [vmem:[%s5168_s21 + $0x90] sm:$0xff] %v1811_v33  ;;  %1873 = vmatmul.f32.gmra.mxu1 %v6220_v22  ;;  %v6228_v14 = vld [vmem:[#allocation85_spill] sm:$0xff] }
 0x26e   : > { %6222 = vst [vmem:[#allocation63_spill] sm:$0xff] %v5240_v6  ;;  %v1601_v31 = vpop.f32.mrf.mxu0 }
 0x26f   : > { %2511 = vmatmul.f32.gmra.mxu3 %v6224_v45  ;;  %v1602_v3 = vadd.f32 %v1601_v31, %v6225_v36 }
 0x270   : > { %2198 = vmatmul.f32.gmra.mxu2 %v6223_v60  ;;  %v6229_v60 = vld [vmem:[#allocation101_spill] sm:$0xff] }
 0x271   : > { %1664 = vmatmul.f32.gmra.mxu0 %v6224_v45 }
 0x272   : > { %v1814_v20 = vpop.f32.mrf.mxu1  ;;  %v2448_v53 = vpop.f32.mrf.mxu3 }
 0x273   : > { %v2071_v46 = vpop.f32.mrf.mxu2  ;;  %v1815_v63 = vadd.f32 %v1814_v20, %v1602_v3 }
 0x274   : > { %v5248_v52 = vadd.f32 %v2448_v53, %v2071_v46  ;;  %v6231_v46 = vld [vmem:[#allocation98_spill] sm:$0xff] }
 0x275   : > { %3627 = vst [vmem:[%s5168_s21 + $0xa0] sm:$0xff] %v1815_v63  ;;  %1877 = vmatmul.f32.gmra.mxu1 %v6224_v45  ;;  %v6232_v53 = vld [vmem:[#allocation90_spill] sm:$0xff] }
 0x276   : > { %6226 = vst [vmem:[#allocation71_spill] sm:$0xff] %v5248_v52  ;;  %v1605_v33 = vpop.f32.mrf.mxu0 }
 0x277   : > { %2515 = vmatmul.f32.gmra.mxu3 %v6228_v14  ;;  %v1606_v6 = vadd.f32 %v1605_v33, %v6229_v60 }
 0x278   : > { %2206 = vmatmul.f32.gmra.mxu2 %v6227_v24  ;;  %v6233_v24 = vld [vmem:[#allocation106_spill] sm:$0xff] }
 0x279   : > { %1668 = vmatmul.f32.gmra.mxu0 %v6228_v14 }
 0x27a   : > { %v1818_v31 = vpop.f32.mrf.mxu1  ;;  %v2452_v3 = vpop.f32.mrf.mxu3 }
 0x27b   : > { %v2079_v36 = vpop.f32.mrf.mxu2  ;;  %v1819_v22 = vadd.f32 %v1818_v31, %v1606_v6 }
 0x27c   : > { %v5256_v20 = vadd.f32 %v2452_v3, %v2079_v36  ;;  %v6235_v36 = vld [vmem:[#allocation103_spill] sm:$0xff] }
 0x27d   : > { %3629 = vst [vmem:[%s5168_s21 + $0xb0] sm:$0xff] %v1819_v22  ;;  %1881 = vmatmul.f32.gmra.mxu1 %v6228_v14  ;;  %v6236_v3 = vld [vmem:[#allocation95_spill] sm:$0xff] }
 0x27e   : > { %6230 = vst [vmem:[#allocation68_spill] sm:$0xff] %v5256_v20  ;;  %v1609_v63 = vpop.f32.mrf.mxu0 }
 0x27f   : > { %2519 = vmatmul.f32.gmra.mxu3 %v6232_v53  ;;  %v1610_v52 = vadd.f32 %v1609_v63, %v6233_v24 }
 0x280   : > { %2214 = vmatmul.f32.gmra.mxu2 %v6231_v46  ;;  %v6237_v46 = vld [vmem:[#allocation110_spill] sm:$0xff] }
 0x281   : > { %1672 = vmatmul.f32.gmra.mxu0 %v6232_v53 }
 0x282   : > { %v1822_v33 = vpop.f32.mrf.mxu1  ;;  %v2456_v6 = vpop.f32.mrf.mxu3 }
 0x283   : > { %v2087_v60 = vpop.f32.mrf.mxu2  ;;  %v1823_v45 = vadd.f32 %v1822_v33, %v1610_v52 }
 0x284   : > { %v5264_v31 = vadd.f32 %v2456_v6, %v2087_v60  ;;  %v6239_v60 = vld [vmem:[#allocation108_spill] sm:$0xff] }
 0x285   : > { %3631 = vst [vmem:[%s5168_s21 + $0xc0] sm:$0xff] %v1823_v45  ;;  %1885 = vmatmul.f32.gmra.mxu1 %v6232_v53  ;;  %v6240_v6 = vld [vmem:[#allocation100_spill] sm:$0xff] }
 0x286   : > { %6234 = vst [vmem:[#allocation76_spill] sm:$0xff] %v5264_v31  ;;  %v1613_v22 = vpop.f32.mrf.mxu0 }
 0x287   : > { %2523 = vmatmul.f32.gmra.mxu3 %v6236_v3  ;;  %v1614_v20 = vadd.f32 %v1613_v22, %v6237_v46 }
 0x288   : > { %2222 = vmatmul.f32.gmra.mxu2 %v6235_v36  ;;  %v6241_v36 = vld [vmem:[#allocation114_spill] sm:$0xff] }
 0x289   : > { %1676 = vmatmul.f32.gmra.mxu0 %v6236_v3 }
 0x28a   : > { %v1826_v63 = vpop.f32.mrf.mxu1  ;;  %v2460_v52 = vpop.f32.mrf.mxu3 }
 0x28b   : > { %v2095_v24 = vpop.f32.mrf.mxu2  ;;  %v1827_v14 = vadd.f32 %v1826_v63, %v1614_v20 }
 0x28c   : > { %v5272_v33 = vadd.f32 %v2460_v52, %v2095_v24  ;;  %v6242_v24 = vld [vmem:[#allocation112_spill] sm:$0xff]  ;;  %v6243_v52 = vld [vmem:[#allocation105_spill] sm:$0xff] }
 0x28d   : > { %3633 = vst [vmem:[%s5168_s21 + $0xd0] sm:$0xff] %v1827_v14  ;;  %1889 = vmatmul.f32.gmra.mxu1 %v6236_v3 }
 0x28e   : > { %6238 = vst [vmem:[#allocation73_spill] sm:$0xff] %v5272_v33  ;;  %v1617_v45 = vpop.f32.mrf.mxu0 }
 0x28f   : > { %2527 = vmatmul.f32.gmra.mxu3 %v6240_v6  ;;  %v1618_v31 = vadd.f32 %v1617_v45, %v6241_v36 }
 0x290   : > { %2230 = vmatmul.f32.gmra.mxu2 %v6239_v60  ;;  %v6244_v60 = vld [vmem:[#allocation119_spill] sm:$0xff] }
 0x291   : > { %1680 = vmatmul.f32.gmra.mxu0 %v6240_v6 }
 0x292   : > { %v1830_v22 = vpop.f32.mrf.mxu1  ;;  %v2464_v20 = vpop.f32.mrf.mxu3 }
 0x293   : > { %v2103_v46 = vpop.f32.mrf.mxu2  ;;  %v1831_v53 = vadd.f32 %v1830_v22, %v1618_v31 }
 0x294   : > { %v5280_v63 = vadd.f32 %v2464_v20, %v2103_v46  ;;  %v6245_v46 = vld [vmem:[#allocation116_spill] sm:$0xff] }
 0x295   : > { %3635 = vst [vmem:[%s5168_s21 + $0xe0] sm:$0xff] %v1831_v53  ;;  %1893 = vmatmul.f32.gmra.mxu1 %v6240_v6 }
 0x296   : > { %v1621_v14 = vpop.f32.mrf.mxu0 }
 0x297   : > { %2531 = vmatmul.f32.gmra.mxu3 %v6243_v52  ;;  %v1622_v33 = vadd.f32 %v1621_v14, %v6244_v60 }
 0x298   : > { %2238 = vmatmul.f32.gmra.mxu2 %v6242_v24 }
 0x299   : > { %1684 = vmatmul.f32.gmra.mxu0 %v6243_v52 }
 0x29a   : > { %v1834_v45 = vpop.f32.mrf.mxu1  ;;  %v2468_v31 = vpop.f32.mrf.mxu3 }
 0x29b   : > { %v2111_v36 = vpop.f32.mrf.mxu2  ;;  %v1835_v3 = vadd.f32 %v1834_v45, %v1622_v33 }
 0x29c   : > { %v5288_v22 = vadd.f32 %v2468_v31, %v2111_v36  ;;  %v6246_v36 = vld [vmem:[#allocation121_spill] sm:$0xff] }
 0x29d   : > { %3637 = vst [vmem:[%s5168_s21 + $0xf0] sm:$0xff] %v1835_v3  ;;  %1897 = vmatmul.f32.gmra.mxu1 %v6243_v52 }
 0x29e   : > { %v1625_v53 = vpop.f32.mrf.mxu0 }
 0x29f   : > { %2535 = vmatmul.f32.gmra.mxu3 %v4684_v12  ;;  %v1626_v20 = vadd.f32 %v1625_v53, %v4763_v34 }
 0x2a0   : > { %2246 = vmatmul.f32.gmra.mxu2 %v6245_v46 }
 0x2a1   : > { %1688 = vmatmul.f32.gmra.mxu0 %v4684_v12 }
 0x2a2   : > { %v1838_v14 = vpop.f32.mrf.mxu1  ;;  %v2472_v33 = vpop.f32.mrf.mxu3 }
 0x2a3   : > { %v2119_v24 = vpop.f32.mrf.mxu2  ;;  %v1839_v60 = vadd.f32 %v1838_v14, %v1626_v20 }
 0x2a4   : > { %v5296_v45 = vadd.f32 %v2472_v33, %v2119_v24 }
 0x2a5   : > { %3639 = vst [vmem:[%s5168_s21 + $0x100] sm:$0xff] %v1839_v60  ;;  %1901 = vmatmul.f32.gmra.mxu1 %v4684_v12 }
 0x2a6   : > { %v1629_v3 = vpop.f32.mrf.mxu0 }
 0x2a7   : > { %2539 = vmatmul.f32.gmra.mxu3 %v4706_v25  ;;  %v1630_v31 = vadd.f32 %v1629_v3, %v4789_v29 }
 0x2a8   : > { %2254 = vmatmul.f32.gmra.mxu2 %v6246_v36 }
 0x2a9   : > { %1692 = vmatmul.f32.gmra.mxu0 %v4706_v25 }
 0x2aa   : > { %v1842_v34 = vpop.f32.mrf.mxu1  ;;  %v2476_v20 = vpop.f32.mrf.mxu3 }
 0x2ab   : > { %v2127_v53 = vpop.f32.mrf.mxu2  ;;  %v1843_v46 = vadd.f32 %v1842_v34, %v1630_v31 }
 0x2ac   : > { %v5304_v14 = vadd.f32 %v2476_v20, %v2127_v53  ;;  %v6249_v53 = vld [vmem:[#allocation134_spill] sm:$0xff] }
 0x2ad   : > { %3641 = vst [vmem:[%s5168_s21 + $0x110] sm:$0xff] %v1843_v46  ;;  %1905 = vmatmul.f32.gmra.mxu1 %v4706_v25 }
 0x2ae   : > { %v1633_v24 = vpop.f32.mrf.mxu0 }
 0x2af   : > { %2543 = vmatmul.f32.gmra.mxu3 %v4728_v61  ;;  %v1634_v60 = vadd.f32 %v1633_v24, %v4812_v2 }
 0x2b0   : > { %2262 = vmatmul.f32.gmra.mxu2 %v4776_v47  ;;  %v6248_v47 = vld [vmem:[#allocation123_spill] sm:$0xff] }
 0x2b1   : > { %1696 = vmatmul.f32.gmra.mxu0 %v4728_v61 }
 0x2b2   : > { %v1846_v29 = vpop.f32.mrf.mxu1  ;;  %v2480_v36 = vpop.f32.mrf.mxu3 }
 0x2b3   : > { %v2135_v33 = vpop.f32.mrf.mxu2  ;;  %v1847_v3 = vadd.f32 %v1846_v29, %v1634_v60 }
 0x2b4   : > { %v5312_v31 = vadd.f32 %v2480_v36, %v2135_v33  ;;  %v6253_v36 = vld [vmem:[#allocation139_spill] sm:$0xff] }
 0x2b5   : > { %3643 = vst [vmem:[%s5168_s21 + $0x120] sm:$0xff] %v1847_v3  ;;  %1909 = vmatmul.f32.gmra.mxu1 %v4728_v61  ;;  %v6251_v3 = vld [vmem:[#allocation131_spill] sm:$0xff] }
 0x2b6   : > { %6247 = vst [vmem:[#allocation81_spill] sm:$0xff] %v5312_v31  ;;  %v1637_v34 = vpop.f32.mrf.mxu0 }
 0x2b7   : > { %2547 = vmatmul.f32.gmra.mxu3 %v6248_v47  ;;  %v1638_v46 = vadd.f32 %v1637_v34, %v6249_v53 }
 0x2b8   : > { %2270 = vmatmul.f32.gmra.mxu2 %v4801_v57  ;;  %v6252_v57 = vld [vmem:[#allocation126_spill] sm:$0xff] }
 0x2b9   : > { %1700 = vmatmul.f32.gmra.mxu0 %v6248_v47 }
 0x2ba   : > { %v1850_v2 = vpop.f32.mrf.mxu1  ;;  %v2484_v60 = vpop.f32.mrf.mxu3 }
 0x2bb   : > { %v2143_v20 = vpop.f32.mrf.mxu2  ;;  %v1851_v24 = vadd.f32 %v1850_v2, %v1638_v46 }
 0x2bc   : > { %v5320_v29 = vadd.f32 %v2484_v60, %v2143_v20  ;;  %v6256_v60 = vld [vmem:[#allocation129_spill] sm:$0xff] }
 0x2bd   : > { %3645 = vst [vmem:[%s5168_s21 + $0x130] sm:$0xff] %v1851_v24  ;;  %1913 = vmatmul.f32.gmra.mxu1 %v6248_v47  ;;  %v6255_v24 = vld [vmem:[#allocation136_spill] sm:$0xff] }
 0x2be   : > { %6250 = vst [vmem:[#allocation78_spill] sm:$0xff] %v5320_v29  ;;  %v1641_v33 = vpop.f32.mrf.mxu0 }
 0x2bf   : > { %2551 = vmatmul.f32.gmra.mxu3 %v6252_v57  ;;  %v1642_v31 = vadd.f32 %v1641_v33, %v6253_v36 }
 0x2c0   : > { %2278 = vmatmul.f32.gmra.mxu2 %v6251_v3  ;;  %v6257_v3 = vld [vmem:[#allocation144_spill] sm:$0xff] }
 0x2c1   : > { %1704 = vmatmul.f32.gmra.mxu0 %v6252_v57 }
 0x2c2   : > { %v1854_v34 = vpop.f32.mrf.mxu1  ;;  %v2488_v46 = vpop.f32.mrf.mxu3 }
 0x2c3   : > { %v2151_v53 = vpop.f32.mrf.mxu2  ;;  %v1855_v61 = vadd.f32 %v1854_v34, %v1642_v31 }
 0x2c4   : > { %v5328_v2 = vadd.f32 %v2488_v46, %v2151_v53  ;;  %v6259_v53 = vld [vmem:[#allocation141_spill] sm:$0xff] }
 0x2c5   : > { %3647 = vst [vmem:[%s5168_s21 + $0x140] sm:$0xff] %v1855_v61  ;;  %1917 = vmatmul.f32.gmra.mxu1 %v6252_v57  ;;  %v6260_v46 = vld [vmem:[#allocation133_spill] sm:$0xff] }
 0x2c6   : > { %6254 = vst [vmem:[#allocation86_spill] sm:$0xff] %v5328_v2  ;;  %v1645_v20 = vpop.f32.mrf.mxu0 }
 0x2c7   : > { %2555 = vmatmul.f32.gmra.mxu3 %v6256_v60  ;;  %v1646_v29 = vadd.f32 %v1645_v20, %v6257_v3 }
 0x2c8   : > { %2286 = vmatmul.f32.gmra.mxu2 %v6255_v24  ;;  %v6261_v24 = vld [vmem:[#allocation149_spill] sm:$0xff] }
 0x2c9   : > { %1708 = vmatmul.f32.gmra.mxu0 %v6256_v60 }
 0x2ca   : > { %v1858_v33 = vpop.f32.mrf.mxu1  ;;  %v2492_v31 = vpop.f32.mrf.mxu3 }
 0x2cb   : > { %v2159_v36 = vpop.f32.mrf.mxu2  ;;  %v1859_v47 = vadd.f32 %v1858_v33, %v1646_v29 }
 0x2cc   : > { %v5336_v34 = vadd.f32 %v2492_v31, %v2159_v36  ;;  %v6263_v36 = vld [vmem:[#allocation146_spill] sm:$0xff] }
 0x2cd   : > { %3649 = vst [vmem:[%s5168_s21 + $0x150] sm:$0xff] %v1859_v47  ;;  %1921 = vmatmul.f32.gmra.mxu1 %v6256_v60  ;;  %v6264_v31 = vld [vmem:[#allocation138_spill] sm:$0xff] }
 0x2ce   : > { %6258 = vst [vmem:[#allocation83_spill] sm:$0xff] %v5336_v34  ;;  %v1649_v61 = vpop.f32.mrf.mxu0 }
 0x2cf   : > { %2559 = vmatmul.f32.gmra.mxu3 %v6260_v46  ;;  %v1650_v2 = vadd.f32 %v1649_v61, %v6261_v24 }
 0x2d0   : > { %2294 = vmatmul.f32.gmra.mxu2 %v6259_v53  ;;  %v6265_v53 = vld [vmem:[#allocation154_spill] sm:$0xff] }
 0x2d1   : > { %1712 = vmatmul.f32.gmra.mxu0 %v6260_v46 }
 0x2d2   : > { %v1862_v20 = vpop.f32.mrf.mxu1  ;;  %v2496_v29 = vpop.f32.mrf.mxu3 }
 0x2d3   : > { %v2167_v3 = vpop.f32.mrf.mxu2  ;;  %v1863_v57 = vadd.f32 %v1862_v20, %v1650_v2 }
 0x2d4   : > { %v5344_v33 = vadd.f32 %v2496_v29, %v2167_v3  ;;  %v6267_v3 = vld [vmem:[#allocation151_spill] sm:$0xff] }
 0x2d5   : > { %3651 = vst [vmem:[%s5168_s21 + $0x160] sm:$0xff] %v1863_v57  ;;  %1925 = vmatmul.f32.gmra.mxu1 %v6260_v46  ;;  %v6268_v29 = vld [vmem:[#allocation143_spill] sm:$0xff] }
 0x2d6   : > { %6262 = vst [vmem:[#allocation91_spill] sm:$0xff] %v5344_v33  ;;  %v1653_v47 = vpop.f32.mrf.mxu0 }
 0x2d7   : > { %2563 = vmatmul.f32.gmra.mxu3 %v6264_v31  ;;  %v1654_v34 = vadd.f32 %v1653_v47, %v6265_v53 }
 0x2d8   : > { %2302 = vmatmul.f32.gmra.mxu2 %v6263_v36  ;;  %v6269_v36 = vld [vmem:[#allocation159_spill] sm:$0xff] }
 0x2d9   : > { %1716 = vmatmul.f32.gmra.mxu0 %v6264_v31 }
 0x2da   : > { %v1866_v61 = vpop.f32.mrf.mxu1  ;;  %v2500_v2 = vpop.f32.mrf.mxu3 }
 0x2db   : > { %v2175_v24 = vpop.f32.mrf.mxu2  ;;  %v1867_v60 = vadd.f32 %v1866_v61, %v1654_v34 }
 0x2dc   : > { %v5352_v20 = vadd.f32 %v2500_v2, %v2175_v24  ;;  %v6271_v24 = vld [vmem:[#allocation156_spill] sm:$0xff] }
 0x2dd   : > { %3653 = vst [vmem:[%s5168_s21 + $0x170] sm:$0xff] %v1867_v60  ;;  %1929 = vmatmul.f32.gmra.mxu1 %v6264_v31  ;;  %v6272_v2 = vld [vmem:[#allocation148_spill] sm:$0xff] }
 0x2de   : > { %6266 = vst [vmem:[#allocation88_spill] sm:$0xff] %v5352_v20  ;;  %v1657_v57 = vpop.f32.mrf.mxu0 }
 0x2df   : > { %2567 = vmatmul.f32.gmra.mxu3 %v6268_v29  ;;  %v1658_v33 = vadd.f32 %v1657_v57, %v6269_v36 }
 0x2e0   : > { %2310 = vmatmul.f32.gmra.mxu2 %v6267_v3  ;;  %v6273_v3 = vld [vmem:[#allocation163_spill] sm:$0xff] }
 0x2e1   : > { %1720 = vmatmul.f32.gmra.mxu0 %v6268_v29 }
 0x2e2   : > { %v1870_v47 = vpop.f32.mrf.mxu1  ;;  %v2504_v34 = vpop.f32.mrf.mxu3 }
 0x2e3   : > { %v2183_v53 = vpop.f32.mrf.mxu2  ;;  %v1871_v46 = vadd.f32 %v1870_v47, %v1658_v33 }
 0x2e4   : > { %v5360_v61 = vadd.f32 %v2504_v34, %v2183_v53  ;;  %v6275_v53 = vld [vmem:[#allocation161_spill] sm:$0xff] }
 0x2e5   : > { %3655 = vst [vmem:[%s5168_s21 + $0x180] sm:$0xff] %v1871_v46  ;;  %1933 = vmatmul.f32.gmra.mxu1 %v6268_v29  ;;  %v6276_v34 = vld [vmem:[#allocation153_spill] sm:$0xff] }
 0x2e6   : > { %6270 = vst [vmem:[#allocation96_spill] sm:$0xff] %v5360_v61  ;;  %v1661_v60 = vpop.f32.mrf.mxu0 }
 0x2e7   : > { %2571 = vmatmul.f32.gmra.mxu3 %v6272_v2  ;;  %v1662_v20 = vadd.f32 %v1661_v60, %v6273_v3 }
 0x2e8   : > { %2318 = vmatmul.f32.gmra.mxu2 %v6271_v24  ;;  %v6277_v24 = vld [vmem:[#allocation167_spill] sm:$0xff] }
 0x2e9   : > { %1724 = vmatmul.f32.gmra.mxu0 %v6272_v2 }
 0x2ea   : > { %v1874_v57 = vpop.f32.mrf.mxu1  ;;  %v2508_v33 = vpop.f32.mrf.mxu3 }
 0x2eb   : > { %v2191_v36 = vpop.f32.mrf.mxu2  ;;  %v1875_v31 = vadd.f32 %v1874_v57, %v1662_v20 }
 0x2ec   : > { %v5368_v47 = vadd.f32 %v2508_v33, %v2191_v36  ;;  %v6279_v36 = vld [vmem:[#allocation165_spill] sm:$0xff]  ;;  %v6280_v33 = vld [vmem:[#allocation158_spill] sm:$0xff] }
 0x2ed   : > { %3657 = vst [vmem:[%s5168_s21 + $0x190] sm:$0xff] %v1875_v31  ;;  %1937 = vmatmul.f32.gmra.mxu1 %v6272_v2 }
 0x2ee   : > { %6274 = vst [vmem:[#allocation93_spill] sm:$0xff] %v5368_v47  ;;  %v1665_v46 = vpop.f32.mrf.mxu0 }
 0x2ef   : > { %2575 = vmatmul.f32.gmra.mxu3 %v6276_v34  ;;  %v1666_v61 = vadd.f32 %v1665_v46, %v6277_v24 }
 0x2f0   : > { %2326 = vmatmul.f32.gmra.mxu2 %v6275_v53  ;;  %v6281_v53 = vld [vmem:[#allocation171_spill] sm:$0xff] }
 0x2f1   : > { %1728 = vmatmul.f32.gmra.mxu0 %v6276_v34 }
 0x2f2   : > { %v1878_v60 = vpop.f32.mrf.mxu1  ;;  %v2512_v20 = vpop.f32.mrf.mxu3 }
 0x2f3   : > { %v2199_v3 = vpop.f32.mrf.mxu2  ;;  %v1879_v29 = vadd.f32 %v1878_v60, %v1666_v61 }
 0x2f4   : > { %v5376_v57 = vadd.f32 %v2512_v20, %v2199_v3  ;;  %v6282_v3 = vld [vmem:[#allocation169_spill] sm:$0xff]  ;;  %v6283_v20 = vld [vmem:[#allocation175_spill] sm:$0xff] }
 0x2f5   : > { %3659 = vst [vmem:[%s5168_s21 + $0x1a0] sm:$0xff] %v1879_v29  ;;  %1941 = vmatmul.f32.gmra.mxu1 %v6276_v34 }
 0x2f6   : > { %6278 = vst [vmem:[#allocation101_spill] sm:$0xff] %v5376_v57  ;;  %v1669_v31 = vpop.f32.mrf.mxu0 }
 0x2f7   : > { %2579 = vmatmul.f32.gmra.mxu3 %v6280_v33  ;;  %v1670_v47 = vadd.f32 %v1669_v31, %v6281_v53 }
 0x2f8   : > { %2334 = vmatmul.f32.gmra.mxu2 %v6279_v36 }
 0x2f9   : > { %1732 = vmatmul.f32.gmra.mxu0 %v6280_v33 }
 0x2fa   : > { %v1882_v46 = vpop.f32.mrf.mxu1  ;;  %v2516_v61 = vpop.f32.mrf.mxu3 }
 0x2fb   : > { %v2207_v24 = vpop.f32.mrf.mxu2  ;;  %v1883_v2 = vadd.f32 %v1882_v46, %v1670_v47 }
 0x2fc   : > { %v5384_v60 = vadd.f32 %v2516_v61, %v2207_v24  ;;  %v6284_v24 = vld [vmem:[#allocation173_spill] sm:$0xff] }
 0x2fd   : > { %3661 = vst [vmem:[%s5168_s21 + $0x1b0] sm:$0xff] %v1883_v2  ;;  %1945 = vmatmul.f32.gmra.mxu1 %v6280_v33 }
 0x2fe   : > { %v1673_v29 = vpop.f32.mrf.mxu0 }
 0x2ff   : > { %2583 = vmatmul.f32.gmra.mxu3 %v4960_v32  ;;  %v1674_v36 = vadd.f32 %v1673_v29, %v6283_v20 }
 0x300   : > { %2342 = vmatmul.f32.gmra.mxu2 %v6282_v3 }
 0x301   : > { %1736 = vmatmul.f32.gmra.mxu0 %v4960_v32 }
 0x302   : > { %v1886_v31 = vpop.f32.mrf.mxu1  ;;  %v2520_v47 = vpop.f32.mrf.mxu3 }
 0x303   : > { %v2215_v53 = vpop.f32.mrf.mxu2  ;;  %v1887_v57 = vadd.f32 %v1886_v31, %v1674_v36 }
 0x304   : > { %v5392_v46 = vadd.f32 %v2520_v47, %v2215_v53  ;;  %v6285_v53 = vld [vmem:[#allocation177_spill] sm:$0xff] }
 0x305   : > { %3663 = vst [vmem:[%s5168_s21 + $0x1c0] sm:$0xff] %v1887_v57  ;;  %1949 = vmatmul.f32.gmra.mxu1 %v4960_v32 }
 0x306   : > { %v1677_v2 = vpop.f32.mrf.mxu0 }
 0x307   : > { %2587 = vmatmul.f32.gmra.mxu3 %v4982_v21  ;;  %v1678_v61 = vadd.f32 %v1677_v2, %v5045_v11 }
 0x308   : > { %2350 = vmatmul.f32.gmra.mxu2 %v6284_v24 }
 0x309   : > { %1740 = vmatmul.f32.gmra.mxu0 %v4982_v21 }
 0x30a   : > { %v1890_v29 = vpop.f32.mrf.mxu1  ;;  %v2524_v36 = vpop.f32.mrf.mxu3 }
 0x30b   : > { %v2223_v3 = vpop.f32.mrf.mxu2  ;;  %v1891_v20 = vadd.f32 %v1890_v29, %v1678_v61 }
 0x30c   : > { %v5400_v31 = vadd.f32 %v2524_v36, %v2223_v3 }
 0x30d   : > { %3665 = vst [vmem:[%s5168_s21 + $0x1d0] sm:$0xff] %v1891_v20  ;;  %1953 = vmatmul.f32.gmra.mxu1 %v4982_v21 }
 0x30e   : > { %v1681_v57 = vpop.f32.mrf.mxu0 }
 0x30f   : > { %2591 = vmatmul.f32.gmra.mxu3 %v5004_v19  ;;  %v1682_v47 = vadd.f32 %v1681_v57, %v5055_v44 }
 0x310   : > { %2358 = vmatmul.f32.gmra.mxu2 %v6285_v53 }
 0x311   : > { %1744 = vmatmul.f32.gmra.mxu0 %v5004_v19 }
 0x312   : > { %v1894_v11 = vpop.f32.mrf.mxu1  ;;  %v2528_v61 = vpop.f32.mrf.mxu3 }
 0x313   : > { %v2231_v2 = vpop.f32.mrf.mxu2  ;;  %v1895_v24 = vadd.f32 %v1894_v11, %v1682_v47 }
 0x314   : > { %v5408_v29 = vadd.f32 %v2528_v61, %v2231_v2 }
 0x315   : > { %3667 = vst [vmem:[%s5168_s21 + $0x1e0] sm:$0xff] %v1895_v24  ;;  %1957 = vmatmul.f32.gmra.mxu1 %v5004_v19 }
 0x316   : > { %v1685_v3 = vpop.f32.mrf.mxu0 }
 0x317   : > { %2595 = vmatmul.f32.gmra.mxu3 %v5026_v0  ;;  %v1686_v20 = vadd.f32 %v1685_v3, %v5061_v54 }
 0x318   : > { %2366 = vmatmul.f32.gmra.mxu2 %v5052_v50  ;;  %v6286_v50 = vld [vmem:[#allocation5_spill] sm:$0xff] }
 0x319   : > { %1748 = vmatmul.f32.gmra.mxu0 %v5026_v0 }
 0x31a   : > { %v1898_v44 = vpop.f32.mrf.mxu1  ;;  %v2532_v53 = vpop.f32.mrf.mxu3 }
 0x31b   : > { %v2239_v36 = vpop.f32.mrf.mxu2  ;;  %v1899_v57 = vadd.f32 %v1898_v44, %v1686_v20 }
 0x31c   : > { %v5416_v47 = vadd.f32 %v2532_v53, %v2239_v36  ;;  %v6287_v36 = vld [vmem:[#allocation6_spill] sm:$0xff] }
 0x31d   : > { %3669 = vst [vmem:[%s5168_s21 + $0x1f0] sm:$0xff] %v1899_v57  ;;  %1961 = vmatmul.f32.gmra.mxu1 %v5026_v0 }
 0x31e   : > { %v1689_v11 = vpop.f32.mrf.mxu0 }
 0x31f   : > { %3415 = vmatmul.f32.vlgmr.msra.gmra.mxu3 %v3986_v17  ;;  %v1690_v2 = vadd.f32 %v1689_v11, %v5067_v30 }
 0x320   : > { %3202 = vmatmul.f32.vlgmr.msra.gmra.mxu2 %v3986_v17  ;;  %v6288_v17 = vld [vmem:[#allocation7_spill] sm:$0xff] }
 0x321   : > { %2625 = vmatmul.f32.vlgmr.msra.gmra.mxu0 %v6286_v50 }
 0x322   : > { %v1902_v54 = vpop.f32.mrf.mxu1  ;;  %v2536_v3 = vpop.f32.mrf.mxu3 }
 0x323   : > { %v2247_v24 = vpop.f32.mrf.mxu2  ;;  %v1903_v61 = vadd.f32 %v1902_v54, %v1690_v2 }
 0x324   : > { %v5424_v20 = vadd.f32 %v2536_v3, %v2247_v24  ;;  %v6289_v24 = vld [vmem:[#allocation8_spill] sm:$0xff] }
 0x325   : > { %3671 = vst [vmem:[%s5168_s21 + $0x200] sm:$0xff] %v1903_v61  ;;  %2887 = vmatmul.f32.vlgmr.msra.gmra.mxu1 %v6287_v36 }
 0x326   : > { %v1693_v44 = vpop.f32.mrf.mxu0 }
 0x327   : > { %3419 = vmatmul.f32.gmra.mxu3 %v4000_v28  ;;  %v1694_v57 = vadd.f32 %v1693_v44, %v5073_v41 }
 0x328   : > { %3206 = vmatmul.f32.gmra.mxu2 %v4000_v28  ;;  %v6290_v28 = vld [vmem:[#allocation9_spill] sm:$0xff] }
 0x329   : > { %2630 = vmatmul.f32.gmra.mxu0 %v6288_v17 }
 0x32a   : > { %v1906_v30 = vpop.f32.mrf.mxu1  ;;  %v2540_v50 = vpop.f32.mrf.mxu3 }
 0x32b   : > { %v2255_v53 = vpop.f32.mrf.mxu2  ;;  %v1907_v11 = vadd.f32 %v1906_v30, %v1694_v57  ;;  %v6291_v30 = vld [vmem:[#allocation10_spill] sm:$0xff] }
 0x32c   : > { %v5432_v2 = vadd.f32 %v2540_v50, %v2255_v53 }
 0x32d   : > { %3673 = vst [vmem:[%s5168_s21 + $0x210] sm:$0xff] %v1907_v11  ;;  %2893 = vmatmul.f32.gmra.mxu1 %v6289_v24 }
 0x32e   : > { %v1697_v54 = vpop.f32.mrf.mxu0 }
 0x32f   : > { %3423 = vmatmul.f32.gmra.mxu3 %v4013_v35  ;;  %v1698_v61 = vadd.f32 %v1697_v54, %v5079_v5 }
 0x330   : > { %3210 = vmatmul.f32.gmra.mxu2 %v4013_v35  ;;  %v6292_v35 = vld [vmem:[#allocation11_spill] sm:$0xff] }
 0x331   : > { %2635 = vmatmul.f32.gmra.mxu0 %v6290_v28 }
 0x332   : > { %v1910_v41 = vpop.f32.mrf.mxu1  ;;  %v2544_v36 = vpop.f32.mrf.mxu3 }
 0x333   : > { %v2263_v3 = vpop.f32.mrf.mxu2  ;;  %v1911_v44 = vadd.f32 %v1910_v41, %v1698_v61  ;;  %v6293_v61 = vld [vmem:[#allocation12_spill] sm:$0xff] }
 0x334   : > { %v5440_v17 = vadd.f32 %v2544_v36, %v2263_v3 }
 0x335   : > { %3675 = vst [vmem:[%s5168_s21 + $0x220] sm:$0xff] %v1911_v44  ;;  %2899 = vmatmul.f32.gmra.mxu1 %v6291_v30 }
 0x336   : > { %v1701_v57 = vpop.f32.mrf.mxu0 }
 0x337   : > { %3427 = vmatmul.f32.gmra.mxu3 %v4042_v51  ;;  %v1702_v53 = vadd.f32 %v1701_v57, %v5085_v23 }
 0x338   : > { %3214 = vmatmul.f32.gmra.mxu2 %v4042_v51  ;;  %v6294_v51 = vld [vmem:[#allocation13_spill] sm:$0xff] }
 0x339   : > { %2640 = vmatmul.f32.gmra.mxu0 %v6292_v35  ;;  %v6295_v35 = vld [vmem:[#allocation14_spill] sm:$0xff] }
 0x33a   : > { %v1914_v5 = vpop.f32.mrf.mxu1  ;;  %v2548_v54 = vpop.f32.mrf.mxu3 }
 0x33b   : > { %v2271_v11 = vpop.f32.mrf.mxu2  ;;  %v1915_v50 = vadd.f32 %v1914_v5, %v1702_v53 }
 0x33c   : > { %v5448_v24 = vadd.f32 %v2548_v54, %v2271_v11 }
 0x33d   : > { %3677 = vst [vmem:[%s5168_s21 + $0x230] sm:$0xff] %v1915_v50  ;;  %2905 = vmatmul.f32.gmra.mxu1 %v6293_v61  ;;  %v6297_v61 = vld [vmem:[#allocation16_spill] sm:$0xff] }
 0x33e   : > { %v1705_v28 = vpop.f32.mrf.mxu0 }
 0x33f   : > { %3431 = vmatmul.f32.gmra.mxu3 %v4066_v58  ;;  %v1706_v41 = vadd.f32 %v1705_v28, %v5091_v39 }
 0x340   : > { %3218 = vmatmul.f32.gmra.mxu2 %v4066_v58  ;;  %v6296_v58 = vld [vmem:[#allocation15_spill] sm:$0xff] }
 0x341   : > { %2645 = vmatmul.f32.gmra.mxu0 %v6294_v51 }
 0x342   : > { %v1918_v23 = vpop.f32.mrf.mxu1  ;;  %v2552_v36 = vpop.f32.mrf.mxu3 }
 0x343   : > { %v2279_v3 = vpop.f32.mrf.mxu2  ;;  %v1919_v44 = vadd.f32 %v1918_v23, %v1706_v41 }
 0x344   : > { %v5456_v57 = vadd.f32 %v2552_v36, %v2279_v3 }
 0x345   : > { %3679 = vst [vmem:[%s5168_s21 + $0x240] sm:$0xff] %v1919_v44  ;;  %2911 = vmatmul.f32.gmra.mxu1 %v6295_v35 }
 0x346   : > { %v1709_v30 = vpop.f32.mrf.mxu0 }
 0x347   : > { %3435 = vmatmul.f32.gmra.mxu3 %v4088_v1  ;;  %v1710_v53 = vadd.f32 %v1709_v30, %v5097_v62  ;;  %v6299_v30 = vld [vmem:[#allocation18_spill] sm:$0xff] }
 0x348   : > { %3222 = vmatmul.f32.gmra.mxu2 %v4088_v1  ;;  %v6298_v1 = vld [vmem:[#allocation17_spill] sm:$0xff] }
 0x349   : > { %2650 = vmatmul.f32.gmra.mxu0 %v6296_v58 }
 0x34a   : > { %v1922_v39 = vpop.f32.mrf.mxu1  ;;  %v2556_v50 = vpop.f32.mrf.mxu3 }
 0x34b   : > { %v2287_v5 = vpop.f32.mrf.mxu2  ;;  %v1923_v11 = vadd.f32 %v1922_v39, %v1710_v53 }
 0x34c   : > { %v5464_v54 = vadd.f32 %v2556_v50, %v2287_v5  ;;  %v6301_v50 = vld [vmem:[#allocation20_spill] sm:$0xff] }
 0x34d   : > { %3681 = vst [vmem:[%s5168_s21 + $0x250] sm:$0xff] %v1923_v11  ;;  %2917 = vmatmul.f32.gmra.mxu1 %v6297_v61 }
 0x34e   : > { %v1713_v28 = vpop.f32.mrf.mxu0 }
 0x34f   : > { %3439 = vmatmul.f32.gmra.mxu3 %v4108_v8  ;;  %v1714_v51 = vadd.f32 %v1713_v28, %v5103_v7 }
 0x350   : > { %3226 = vmatmul.f32.gmra.mxu2 %v4108_v8  ;;  %v6300_v8 = vld [vmem:[#allocation19_spill] sm:$0xff] }
 0x351   : > { %2655 = vmatmul.f32.gmra.mxu0 %v6298_v1 }
 0x352   : > { %v1926_v62 = vpop.f32.mrf.mxu1  ;;  %v2560_v3 = vpop.f32.mrf.mxu3 }
 0x353   : > { %v2295_v41 = vpop.f32.mrf.mxu2  ;;  %v1927_v23 = vadd.f32 %v1926_v62, %v1714_v51 }
 0x354   : > { %v5472_v44 = vadd.f32 %v2560_v3, %v2295_v41 }
 0x355   : > { %3683 = vst [vmem:[%s5168_s21 + $0x260] sm:$0xff] %v1927_v23  ;;  %2923 = vmatmul.f32.gmra.mxu1 %v6299_v30  ;;  %v6303_v23 = vld [vmem:[#allocation22_spill] sm:$0xff] }
 0x356   : > { %v1717_v36 = vpop.f32.mrf.mxu0 }
 0x357   : > { %3443 = vmatmul.f32.gmra.mxu3 %v4128_v16  ;;  %v1718_v35 = vadd.f32 %v1717_v36, %v5109_v15 }
 0x358   : > { %3230 = vmatmul.f32.gmra.mxu2 %v4128_v16  ;;  %v6302_v16 = vld [vmem:[#allocation21_spill] sm:$0xff] }
 0x359   : > { %2660 = vmatmul.f32.gmra.mxu0 %v6300_v8 }
 0x35a   : > { %v1930_v7 = vpop.f32.mrf.mxu1  ;;  %v2564_v39 = vpop.f32.mrf.mxu3 }
 0x35b   : > { %v2303_v58 = vpop.f32.mrf.mxu2  ;;  %v1931_v53 = vadd.f32 %v1930_v7, %v1718_v35 }
 0x35c   : > { %v5480_v5 = vadd.f32 %v2564_v39, %v2303_v58  ;;  %v6305_v58 = vld [vmem:[#allocation24_spill] sm:$0xff] }
 0x35d   : > { %3685 = vst [vmem:[%s5168_s21 + $0x270] sm:$0xff] %v1931_v53  ;;  %2929 = vmatmul.f32.gmra.mxu1 %v6301_v50 }
 0x35e   : > { %v1721_v11 = vpop.f32.mrf.mxu0 }
 0x35f   : > { %3447 = vmatmul.f32.gmra.mxu3 %v4148_v27  ;;  %v1722_v28 = vadd.f32 %v1721_v11, %v5115_v10 }
 0x360   : > { %3234 = vmatmul.f32.gmra.mxu2 %v4148_v27  ;;  %v6304_v27 = vld [vmem:[#allocation23_spill] sm:$0xff] }
 0x361   : > { %2665 = vmatmul.f32.gmra.mxu0 %v6302_v16 }
 0x362   : > { %v1934_v15 = vpop.f32.mrf.mxu1  ;;  %v2568_v51 = vpop.f32.mrf.mxu3 }
 0x363   : > { %v2311_v61 = vpop.f32.mrf.mxu2  ;;  %v1935_v1 = vadd.f32 %v1934_v15, %v1722_v28  ;;  %v6307_v15 = vld [vmem:[#allocation26_spill] sm:$0xff] }
 0x364   : > { %v5488_v62 = vadd.f32 %v2568_v51, %v2311_v61 }
 0x365   : > { %3687 = vst [vmem:[%s5168_s21 + $0x280] sm:$0xff] %v1935_v1  ;;  %2935 = vmatmul.f32.gmra.mxu1 %v6303_v23 }
 0x366   : > { %v1725_v41 = vpop.f32.mrf.mxu0 }
 0x367   : > { %3451 = vmatmul.f32.gmra.mxu3 %v4168_v38  ;;  %v1726_v3 = vadd.f32 %v1725_v41, %v5121_v13 }
 0x368   : > { %3238 = vmatmul.f32.gmra.mxu2 %v4168_v38  ;;  %v6306_v38 = vld [vmem:[#allocation25_spill] sm:$0xff] }
 0x369   : > { %2670 = vmatmul.f32.gmra.mxu0 %v6304_v27 }
 0x36a   : > { %v1938_v10 = vpop.f32.mrf.mxu1  ;;  %v2572_v8 = vpop.f32.mrf.mxu3 }
 0x36b   : > { %v2319_v36 = vpop.f32.mrf.mxu2  ;;  %v1939_v30 = vadd.f32 %v1938_v10, %v1726_v3  ;;  %v6309_v3 = vld [vmem:[#allocation28_spill] sm:$0xff] }
 0x36c   : > { %v5496_v35 = vadd.f32 %v2572_v8, %v2319_v36 }
 0x36d   : > { %3689 = vst [vmem:[%s5168_s21 + $0x290] sm:$0xff] %v1939_v30  ;;  %2941 = vmatmul.f32.gmra.mxu1 %v6305_v58 }
 0x36e   : > { %v1729_v7 = vpop.f32.mrf.mxu0 }
 0x36f   : > { %3455 = vmatmul.f32.gmra.mxu3 %v4188_v48  ;;  %v1730_v53 = vadd.f32 %v1729_v7, %v5127_v4 }
 0x370   : > { %3242 = vmatmul.f32.gmra.mxu2 %v4188_v48  ;;  %v6308_v48 = vld [vmem:[#allocation27_spill] sm:$0xff] }
 0x371   : > { %2675 = vmatmul.f32.gmra.mxu0 %v6306_v38  ;;  %v6311_v38 = vld [vmem:[#allocation30_spill] sm:$0xff] }
 0x372   : > { %v1942_v13 = vpop.f32.mrf.mxu1  ;;  %v2576_v50 = vpop.f32.mrf.mxu3 }
 0x373   : > { %v2327_v39 = vpop.f32.mrf.mxu2  ;;  %v1943_v11 = vadd.f32 %v1942_v13, %v1730_v53 }
 0x374   : > { %v5504_v16 = vadd.f32 %v2576_v50, %v2327_v39 }
 0x375   : > { %3691 = vst [vmem:[%s5168_s21 + $0x2a0] sm:$0xff] %v1943_v11  ;;  %2947 = vmatmul.f32.gmra.mxu1 %v6307_v15  ;;  %v6313_v15 = vld [vmem:[#allocation32_spill] sm:$0xff] }
 0x376   : > { %v1733_v28 = vpop.f32.mrf.mxu0 }
 0x377   : > { %3459 = vmatmul.f32.gmra.mxu3 %v4218_v9  ;;  %v1734_v61 = vadd.f32 %v1733_v28, %v5133_v42 }
 0x378   : > { %3246 = vmatmul.f32.gmra.mxu2 %v4218_v9  ;;  %v6310_v9 = vld [vmem:[#allocation29_spill] sm:$0xff] }
 0x379   : > { %2680 = vmatmul.f32.gmra.mxu0 %v6308_v48 }
 0x37a   : > { %v1946_v4 = vpop.f32.mrf.mxu1  ;;  %v2580_v41 = vpop.f32.mrf.mxu3 }
 0x37b   : > { %v2335_v1 = vpop.f32.mrf.mxu2  ;;  %v1947_v51 = vadd.f32 %v1946_v4, %v1734_v61 }
 0x37c   : > { %v5512_v23 = vadd.f32 %v2580_v41, %v2335_v1 }
 0x37d   : > { %3693 = vst [vmem:[%s5168_s21 + $0x2b0] sm:$0xff] %v1947_v51  ;;  %2953 = vmatmul.f32.gmra.mxu1 %v6309_v3 }
 0x37e   : > { %v1737_v27 = vpop.f32.mrf.mxu0 }
 0x37f   : > { %3463 = vmatmul.f32.gmra.mxu3 %v4243_v40  ;;  %v1738_v10 = vadd.f32 %v1737_v27, %v5139_v49  ;;  %v6315_v27 = vld [vmem:[#allocation34_spill] sm:$0xff] }
 0x380   : > { %3250 = vmatmul.f32.gmra.mxu2 %v4243_v40  ;;  %v6312_v40 = vld [vmem:[#allocation31_spill] sm:$0xff] }
 0x381   : > { %2685 = vmatmul.f32.gmra.mxu0 %v6310_v9 }
 0x382   : > { %v1950_v42 = vpop.f32.mrf.mxu1  ;;  %v2584_v8 = vpop.f32.mrf.mxu3 }
 0x383   : > { %v2343_v36 = vpop.f32.mrf.mxu2  ;;  %v1951_v30 = vadd.f32 %v1950_v42, %v1738_v10 }
 0x384   : > { %v5520_v7 = vadd.f32 %v2584_v8, %v2343_v36  ;;  %v6317_v8 = vld [vmem:[#allocation36_spill] sm:$0xff] }
 0x385   : > { %3695 = vst [vmem:[%s5168_s21 + $0x2c0] sm:$0xff] %v1951_v30  ;;  %2959 = vmatmul.f32.gmra.mxu1 %v6311_v38 }
 0x386   : > { %v1741_v58 = vpop.f32.mrf.mxu0 }
 0x387   : > { %3467 = vmatmul.f32.gmra.mxu3 %v4263_v18  ;;  %v1742_v53 = vadd.f32 %v1741_v58, %v5145_v56  ;;  %v6319_v58 = vld [vmem:[#allocation179_spill] sm:$0xff] }
 0x388   : > { %3254 = vmatmul.f32.gmra.mxu2 %v4263_v18  ;;  %v6314_v18 = vld [vmem:[#allocation33_spill] sm:$0xff] }
 0x389   : > { %2690 = vmatmul.f32.gmra.mxu0 %v6312_v40 }
 0x38a   : > { %v1954_v49 = vpop.f32.mrf.mxu1  ;;  %v2588_v11 = vpop.f32.mrf.mxu3 }
 0x38b   : > { %v2351_v13 = vpop.f32.mrf.mxu2  ;;  %v1955_v39 = vadd.f32 %v1954_v49, %v1742_v53 }
 0x38c   : > { %v5528_v50 = vadd.f32 %v2588_v11, %v2351_v13  ;;  %v6320_v11 = vld [vmem:[#allocation38_spill] sm:$0xff] }
 0x38d   : > { %3697 = vst [vmem:[%s5168_s21 + $0x2d0] sm:$0xff] %v1955_v39  ;;  %2965 = vmatmul.f32.gmra.mxu1 %v6313_v15  ;;  %v6321_v15 = vld [vmem:[#allocation39_spill] sm:$0xff] }
 0x38e   : > { %v1745_v28 = vpop.f32.mrf.mxu0 }
 0x38f   : > { %3471 = vmatmul.f32.gmra.mxu3 %v4283_v26  ;;  %v1746_v48 = vadd.f32 %v1745_v28, %v5151_v59 }
 0x390   : > { %3258 = vmatmul.f32.gmra.mxu2 %v4283_v26  ;;  %v6316_v26 = vld [vmem:[#allocation35_spill] sm:$0xff] }
 0x391   : > { %2695 = vmatmul.f32.gmra.mxu0 %v6314_v18  ;;  %v6322_v18 = vld [vmem:[#allocation40_spill] sm:$0xff] }
 0x392   : > { %v1958_v56 = vpop.f32.mrf.mxu1  ;;  %v2592_v1 = vpop.f32.mrf.mxu3 }
 0x393   : > { %v2359_v61 = vpop.f32.mrf.mxu2  ;;  %v1959_v4 = vadd.f32 %v1958_v56, %v1746_v48 }
 0x394   : > { %v5536_v51 = vadd.f32 %v2592_v1, %v2359_v61 }
 0x395   : > { %3699 = vst [vmem:[%s5168_s21 + $0x2e0] sm:$0xff] %v1959_v4  ;;  %2971 = vmatmul.f32.gmra.mxu1 %v6315_v27 }
 0x396   : > { %v1749_v41 = vpop.f32.mrf.mxu0 }
 0x397   : > { %3475 = vmatmul.f32.gmra.mxu3 %v4303_v55  ;;  %v1750_v3 = vadd.f32 %v1749_v41, %v5160_v37 }
 0x398   : > { %3262 = vmatmul.f32.gmra.mxu2 %v4303_v55  ;;  %v6318_v55 = vld [vmem:[#allocation37_spill] sm:$0xff] }
 0x399   : > { %2700 = vmatmul.f32.gmra.mxu0 %v6316_v26  ;;  %v6324_v26 = vld [vmem:[#allocation41_spill] sm:$0xff] }
 0x39a   : > { %v1962_v59 = vpop.f32.mrf.mxu1  ;;  %v2596_v42 = vpop.f32.mrf.mxu3 }
 0x39b   : > { %v2367_v9 = vpop.f32.mrf.mxu2  ;;  %v1963_v10 = vadd.f32 %v1962_v59, %v1750_v3  ;;  %v6325_v59 = vld [vmem:[#allocation42_spill] sm:$0xff] }
 0x39c   : > { %v5544_v36 = vadd.f32 %v2596_v42, %v2367_v9  ;;  %v6326_v9 = vld [vmem:[#allocation43_spill] sm:$0xff] }
 0x39d   : > { %3701 = vst [vmem:[%s5168_s21 + $0x2f0] sm:$0xff] %v1963_v10  ;;  %2977 = vmatmul.f32.gmra.mxu1 %v6317_v8  ;;  %v6327_v10 = vld [vmem:[#allocation51_spill] sm:$0xff] }
 0x39e   : > { %v2626_v30 = vpop.f32.mrf.mxu0 }
 0x39f   : > { %3479 = vmatmul.f32.gmra.mxu3 %v4323_v43  ;;  %v2627_v38 = vadd.f32 %v2626_v30, %v6319_v58 }
 0x3a0   : > { %3266 = vmatmul.f32.gmra.mxu2 %v4323_v43  ;;  %v6323_v43 = vld [vmem:[#allocation44_spill] sm:$0xff] }
 0x3a1   : > { %2705 = vmatmul.f32.gmra.mxu0 %v6318_v55 }
 0x3a2   : > { %v2888_v37 = vpop.f32.mrf.mxu1  ;;  %v3416_v49 = vpop.f32.mrf.mxu3 }
 0x3a3   : > { %v3203_v40 = vpop.f32.mrf.mxu2  ;;  %v2889_v53 = vadd.f32 %v2888_v37, %v2627_v38 }
 0x3a5   : > { %v3204_v39 = vadd.f32 %v3203_v40, %v2889_v53  ;;  %2983 = vmatmul.f32.gmra.mxu1 %v6320_v11  ;;  %v6328_v40 = vld [vmem:[#allocation45_spill] sm:$0xff] }
 0x3a6   : > { %v2631_v13 = vpop.f32.mrf.mxu0 }
 0x3a7   : > { %v3417_v28 = vadd.f32 %v3416_v49, %v3204_v39  ;;  %3483 = vmatmul.f32.gmra.mxu3 %v6321_v15  ;;  %v2632_v48 = vadd.f32 %v2631_v13, %v6323_v43  ;;  %v6329_v49 = vld [vmem:[#allocation46_spill] sm:$0xff]  ;;  %v6330_v13 = vld [vmem:[#allocation47_spill] sm:$0xff]  ;;  %v6331_v39 = vld [vmem:[#allocation48_spill] sm:$0xff] }
 0x3a8   : > { %3270 = vmatmul.f32.gmra.mxu2 %v6321_v15 }
 0x3a9   : > { %2710 = vmatmul.f32.gmra.mxu0 %v6322_v18  ;;  %3608 = vst [vmem:[%s5168_s21 + $0x8] sm:$0xff] %v3417_v28 }
 0x3aa   : > { %v2894_v56 = vpop.f32.mrf.mxu1  ;;  %v3420_v1 = vpop.f32.mrf.mxu3 }
 0x3ab   : > { %v3207_v61 = vpop.f32.mrf.mxu2  ;;  %v2895_v4 = vadd.f32 %v2894_v56, %v2632_v48 }
 0x3ad   : > { %v3208_v27 = vadd.f32 %v3207_v61, %v2895_v4  ;;  %2989 = vmatmul.f32.gmra.mxu1 %v6324_v26  ;;  %v6332_v61 = vld [vmem:[#allocation49_spill] sm:$0xff] }
 0x3ae   : > { %v2636_v41 = vpop.f32.mrf.mxu0 }
 0x3af   : > { %v3421_v3 = vadd.f32 %v3420_v1, %v3208_v27  ;;  %3487 = vmatmul.f32.gmra.mxu3 %v6325_v59  ;;  %v2637_v42 = vadd.f32 %v2636_v41, %v6327_v10  ;;  %v6333_v1 = vld [vmem:[#allocation50_spill] sm:$0xff]  ;;  %v6334_v41 = vld [vmem:[#allocation52_spill] sm:$0xff] }
 0x3b0   : > { %3274 = vmatmul.f32.gmra.mxu2 %v6325_v59  ;;  %v6335_v27 = vld [vmem:[#allocation56_spill] sm:$0xff] }
 0x3b1   : > { %2715 = vmatmul.f32.gmra.mxu0 %v6326_v9  ;;  %3610 = vst [vmem:[%s5168_s21 + $0x18] sm:$0xff] %v3421_v3 }
 0x3b2   : > { %v2900_v30 = vpop.f32.mrf.mxu1  ;;  %v3424_v58 = vpop.f32.mrf.mxu3 }
 0x3b3   : > { %v3211_v8 = vpop.f32.mrf.mxu2  ;;  %v2901_v55 = vadd.f32 %v2900_v30, %v2637_v42 }
 0x3b5   : > { %v3212_v37 = vadd.f32 %v3211_v8, %v2901_v55  ;;  %2995 = vmatmul.f32.gmra.mxu1 %v6328_v40  ;;  %v6336_v8 = vld [vmem:[#allocation54_spill] sm:$0xff] }
 0x3b6   : > { %v2641_v38 = vpop.f32.mrf.mxu0 }
 0x3b7   : > { %v3425_v53 = vadd.f32 %v3424_v58, %v3212_v37  ;;  %3491 = vmatmul.f32.gmra.mxu3 %v6329_v49  ;;  %v2642_v11 = vadd.f32 %v2641_v38, %v6331_v39  ;;  %v6337_v58 = vld [vmem:[#allocation55_spill] sm:$0xff]  ;;  %v6338_v38 = vld [vmem:[#allocation57_spill] sm:$0xff] }
 0x3b8   : > { %3278 = vmatmul.f32.gmra.mxu2 %v6329_v49  ;;  %v6339_v37 = vld [vmem:[#allocation53_spill] sm:$0xff] }
 0x3b9   : > { %2720 = vmatmul.f32.gmra.mxu0 %v6330_v13  ;;  %3612 = vst [vmem:[%s5168_s21 + $0x28] sm:$0xff] %v3425_v53 }
 0x3ba   : > { %v2906_v28 = vpop.f32.mrf.mxu1  ;;  %v3428_v43 = vpop.f32.mrf.mxu3 }
 0x3bb   : > { %v3215_v15 = vpop.f32.mrf.mxu2  ;;  %v2907_v18 = vadd.f32 %v2906_v28, %v2642_v11 }
 0x3bd   : > { %v3216_v56 = vadd.f32 %v3215_v15, %v2907_v18  ;;  %3001 = vmatmul.f32.gmra.mxu1 %v6332_v61  ;;  %v6340_v15 = vld [vmem:[#allocation59_spill] sm:$0xff] }
 0x3be   : > { %v2646_v48 = vpop.f32.mrf.mxu0 }
 0x3bf   : > { %v3429_v4 = vadd.f32 %v3428_v43, %v3216_v56  ;;  %3495 = vmatmul.f32.gmra.mxu3 %v6333_v1  ;;  %v2647_v26 = vadd.f32 %v2646_v48, %v6335_v27  ;;  %v6341_v43 = vld [vmem:[#allocation60_spill] sm:$0xff]  ;;  %v6342_v48 = vld [vmem:[#allocation62_spill] sm:$0xff]  ;;  %v6343_v56 = vld [vmem:[#allocation61_spill] sm:$0xff] }
 0x3c0   : > { %3282 = vmatmul.f32.gmra.mxu2 %v6333_v1 }
 0x3c1   : > { %2725 = vmatmul.f32.gmra.mxu0 %v6334_v41  ;;  %3614 = vst [vmem:[%s5168_s21 + $0x38] sm:$0xff] %v3429_v4 }
 0x3c2   : > { %v2912_v3 = vpop.f32.mrf.mxu1  ;;  %v3432_v10 = vpop.f32.mrf.mxu3 }
 0x3c3   : > { %v3219_v59 = vpop.f32.mrf.mxu2  ;;  %v2913_v9 = vadd.f32 %v2912_v3, %v2647_v26 }
 0x3c5   : > { %v3220_v30 = vadd.f32 %v3219_v59, %v2913_v9  ;;  %3007 = vmatmul.f32.gmra.mxu1 %v6336_v8  ;;  %v6344_v59 = vld [vmem:[#allocation64_spill] sm:$0xff] }
 0x3c6   : > { %v2651_v42 = vpop.f32.mrf.mxu0 }
 0x3c7   : > { %v3433_v55 = vadd.f32 %v3432_v10, %v3220_v30  ;;  %3499 = vmatmul.f32.gmra.mxu3 %v6337_v58  ;;  %v2652_v40 = vadd.f32 %v2651_v42, %v6339_v37  ;;  %v6345_v10 = vld [vmem:[#allocation65_spill] sm:$0xff]  ;;  %v6346_v42 = vld [vmem:[#allocation67_spill] sm:$0xff]  ;;  %v6347_v30 = vld [vmem:[#allocation58_spill] sm:$0xff] }
 0x3c8   : > { %3286 = vmatmul.f32.gmra.mxu2 %v6337_v58 }
 0x3c9   : > { %2730 = vmatmul.f32.gmra.mxu0 %v6338_v38  ;;  %3616 = vst [vmem:[%s5168_s21 + $0x48] sm:$0xff] %v3433_v55 }
 0x3ca   : > { %v2918_v53 = vpop.f32.mrf.mxu1  ;;  %v3436_v39 = vpop.f32.mrf.mxu3 }
 0x3cb   : > { %v3223_v49 = vpop.f32.mrf.mxu2  ;;  %v2919_v13 = vadd.f32 %v2918_v53, %v2652_v40 }
 0x3cd   : > { %v3224_v28 = vadd.f32 %v3223_v49, %v2919_v13  ;;  %3013 = vmatmul.f32.gmra.mxu1 %v6340_v15  ;;  %v6348_v49 = vld [vmem:[#allocation69_spill] sm:$0xff] }
 0x3ce   : > { %v2656_v11 = vpop.f32.mrf.mxu0 }
 0x3cf   : > { %v3437_v18 = vadd.f32 %v3436_v39, %v3224_v28  ;;  %3503 = vmatmul.f32.gmra.mxu3 %v6341_v43  ;;  %v2657_v61 = vadd.f32 %v2656_v11, %v6343_v56  ;;  %v6349_v39 = vld [vmem:[#allocation70_spill] sm:$0xff]  ;;  %v6350_v11 = vld [vmem:[#allocation72_spill] sm:$0xff] }
 0x3d0   : > { %3290 = vmatmul.f32.gmra.mxu2 %v6341_v43  ;;  %v6351_v28 = vld [vmem:[#allocation66_spill] sm:$0xff] }
 0x3d1   : > { %2735 = vmatmul.f32.gmra.mxu0 %v6342_v48  ;;  %3618 = vst [vmem:[%s5168_s21 + $0x58] sm:$0xff] %v3437_v18 }
 0x3d2   : > { %v2924_v4 = vpop.f32.mrf.mxu1  ;;  %v3440_v27 = vpop.f32.mrf.mxu3 }
 0x3d3   : > { %v3227_v1 = vpop.f32.mrf.mxu2  ;;  %v2925_v41 = vadd.f32 %v2924_v4, %v2657_v61 }
 0x3d5   : > { %v3228_v3 = vadd.f32 %v3227_v1, %v2925_v41  ;;  %3019 = vmatmul.f32.gmra.mxu1 %v6344_v59  ;;  %v6352_v1 = vld [vmem:[#allocation74_spill] sm:$0xff] }
 0x3d6   : > { %v2661_v26 = vpop.f32.mrf.mxu0 }
 0x3d7   : > { %v3441_v9 = vadd.f32 %v3440_v27, %v3228_v3  ;;  %3507 = vmatmul.f32.gmra.mxu3 %v6345_v10  ;;  %v2662_v8 = vadd.f32 %v2661_v26, %v6347_v30  ;;  %v6353_v27 = vld [vmem:[#allocation75_spill] sm:$0xff]  ;;  %v6354_v26 = vld [vmem:[#allocation77_spill] sm:$0xff] }
 0x3d8   : > { %3294 = vmatmul.f32.gmra.mxu2 %v6345_v10  ;;  %v6355_v3 = vld [vmem:[#allocation63_spill] sm:$0xff] }
 0x3d9   : > { %2740 = vmatmul.f32.gmra.mxu0 %v6346_v42  ;;  %3620 = vst [vmem:[%s5168_s21 + $0x68] sm:$0xff] %v3441_v9 }
 0x3da   : > { %v2930_v55 = vpop.f32.mrf.mxu1  ;;  %v3444_v37 = vpop.f32.mrf.mxu3 }
 0x3db   : > { %v3231_v58 = vpop.f32.mrf.mxu2  ;;  %v2931_v38 = vadd.f32 %v2930_v55, %v2662_v8 }
 0x3dd   : > { %v3232_v53 = vadd.f32 %v3231_v58, %v2931_v38  ;;  %3025 = vmatmul.f32.gmra.mxu1 %v6348_v49  ;;  %v6356_v58 = vld [vmem:[#allocation79_spill] sm:$0xff] }
 0x3de   : > { %v2666_v40 = vpop.f32.mrf.mxu0 }
 0x3df   : > { %v3445_v13 = vadd.f32 %v3444_v37, %v3232_v53  ;;  %3511 = vmatmul.f32.gmra.mxu3 %v6349_v39  ;;  %v2667_v15 = vadd.f32 %v2666_v40, %v6351_v28  ;;  %v6357_v37 = vld [vmem:[#allocation80_spill] sm:$0xff]  ;;  %v6358_v40 = vld [vmem:[#allocation82_spill] sm:$0xff]  ;;  %v6359_v53 = vld [vmem:[#allocation71_spill] sm:$0xff] }
 0x3e0   : > { %3298 = vmatmul.f32.gmra.mxu2 %v6349_v39 }
 0x3e1   : > { %2745 = vmatmul.f32.gmra.mxu0 %v6350_v11  ;;  %3622 = vst [vmem:[%s5168_s21 + $0x78] sm:$0xff] %v3445_v13 }
 0x3e2   : > { %v2936_v18 = vpop.f32.mrf.mxu1  ;;  %v3448_v56 = vpop.f32.mrf.mxu3 }
 0x3e3   : > { %v3235_v43 = vpop.f32.mrf.mxu2  ;;  %v2937_v48 = vadd.f32 %v2936_v18, %v2667_v15 }
 0x3e5   : > { %v3236_v4 = vadd.f32 %v3235_v43, %v2937_v48  ;;  %3031 = vmatmul.f32.gmra.mxu1 %v6352_v1  ;;  %v6360_v43 = vld [vmem:[#allocation84_spill] sm:$0xff] }
 0x3e6   : > { %v2671_v61 = vpop.f32.mrf.mxu0 }
 0x3e7   : > { %v3449_v41 = vadd.f32 %v3448_v56, %v3236_v4  ;;  %3515 = vmatmul.f32.gmra.mxu3 %v6353_v27  ;;  %v2672_v59 = vadd.f32 %v2671_v61, %v6355_v3  ;;  %v6361_v56 = vld [vmem:[#allocation85_spill] sm:$0xff]  ;;  %v6362_v61 = vld [vmem:[#allocation87_spill] sm:$0xff]  ;;  %v6363_v4 = vld [vmem:[#allocation68_spill] sm:$0xff] }
 0x3e8   : > { %3302 = vmatmul.f32.gmra.mxu2 %v6353_v27 }
 0x3e9   : > { %2750 = vmatmul.f32.gmra.mxu0 %v6354_v26  ;;  %3624 = vst [vmem:[%s5168_s21 + $0x88] sm:$0xff] %v3449_v41 }
 0x3ea   : > { %v2942_v9 = vpop.f32.mrf.mxu1  ;;  %v3452_v30 = vpop.f32.mrf.mxu3 }
 0x3eb   : > { %v3239_v10 = vpop.f32.mrf.mxu2  ;;  %v2943_v42 = vadd.f32 %v2942_v9, %v2672_v59 }
 0x3ed   : > { %v3240_v55 = vadd.f32 %v3239_v10, %v2943_v42  ;;  %3037 = vmatmul.f32.gmra.mxu1 %v6356_v58  ;;  %v6364_v10 = vld [vmem:[#allocation89_spill] sm:$0xff] }
 0x3ee   : > { %v2676_v8 = vpop.f32.mrf.mxu0 }
 0x3ef   : > { %v3453_v38 = vadd.f32 %v3452_v30, %v3240_v55  ;;  %3519 = vmatmul.f32.gmra.mxu3 %v6357_v37  ;;  %v2677_v49 = vadd.f32 %v2676_v8, %v6359_v53  ;;  %v6365_v30 = vld [vmem:[#allocation90_spill] sm:$0xff]  ;;  %v6366_v8 = vld [vmem:[#allocation92_spill] sm:$0xff] }
 0x3f0   : > { %3306 = vmatmul.f32.gmra.mxu2 %v6357_v37  ;;  %v6367_v55 = vld [vmem:[#allocation76_spill] sm:$0xff] }
 0x3f1   : > { %2755 = vmatmul.f32.gmra.mxu0 %v6358_v40  ;;  %3626 = vst [vmem:[%s5168_s21 + $0x98] sm:$0xff] %v3453_v38 }
 0x3f2   : > { %v2948_v13 = vpop.f32.mrf.mxu1  ;;  %v3456_v28 = vpop.f32.mrf.mxu3 }
 0x3f3   : > { %v3243_v39 = vpop.f32.mrf.mxu2  ;;  %v2949_v11 = vadd.f32 %v2948_v13, %v2677_v49 }
 0x3f5   : > { %v3244_v18 = vadd.f32 %v3243_v39, %v2949_v11  ;;  %3043 = vmatmul.f32.gmra.mxu1 %v6360_v43  ;;  %v6368_v39 = vld [vmem:[#allocation94_spill] sm:$0xff] }
 0x3f6   : > { %v2681_v15 = vpop.f32.mrf.mxu0 }
 0x3f7   : > { %v3457_v48 = vadd.f32 %v3456_v28, %v3244_v18  ;;  %3523 = vmatmul.f32.gmra.mxu3 %v6361_v56  ;;  %v2682_v1 = vadd.f32 %v2681_v15, %v6363_v4  ;;  %v6369_v28 = vld [vmem:[#allocation95_spill] sm:$0xff]  ;;  %v6370_v15 = vld [vmem:[#allocation97_spill] sm:$0xff] }
 0x3f8   : > { %3310 = vmatmul.f32.gmra.mxu2 %v6361_v56  ;;  %v6371_v18 = vld [vmem:[#allocation73_spill] sm:$0xff] }
 0x3f9   : > { %2760 = vmatmul.f32.gmra.mxu0 %v6362_v61  ;;  %3628 = vst [vmem:[%s5168_s21 + $0xa8] sm:$0xff] %v3457_v48 }
 0x3fa   : > { %v2954_v41 = vpop.f32.mrf.mxu1  ;;  %v3460_v3 = vpop.f32.mrf.mxu3 }
 0x3fb   : > { %v3247_v27 = vpop.f32.mrf.mxu2  ;;  %v2955_v26 = vadd.f32 %v2954_v41, %v2682_v1 }
 0x3fd   : > { %v3248_v9 = vadd.f32 %v3247_v27, %v2955_v26  ;;  %3049 = vmatmul.f32.gmra.mxu1 %v6364_v10  ;;  %v6372_v27 = vld [vmem:[#allocation99_spill] sm:$0xff] }
 0x3fe   : > { %v2686_v59 = vpop.f32.mrf.mxu0 }
 0x3ff   : > { %v3461_v42 = vadd.f32 %v3460_v3, %v3248_v9  ;;  %3527 = vmatmul.f32.gmra.mxu3 %v6365_v30  ;;  %v2687_v58 = vadd.f32 %v2686_v59, %v6367_v55  ;;  %v6373_v3 = vld [vmem:[#allocation102_spill] sm:$0xff] }
 0x400   : > { %3314 = vmatmul.f32.gmra.mxu2 %v6365_v30 }
 0x401   : > { %2765 = vmatmul.f32.gmra.mxu0 %v6366_v8  ;;  %3630 = vst [vmem:[%s5168_s21 + $0xb8] sm:$0xff] %v3461_v42 }
 0x402   : > { %v2960_v38 = vpop.f32.mrf.mxu1  ;;  %v3464_v53 = vpop.f32.mrf.mxu3 }
 0x403   : > { %v3251_v37 = vpop.f32.mrf.mxu2  ;;  %v2961_v40 = vadd.f32 %v2960_v38, %v2687_v58  ;;  %v6374_v58 = vld [vmem:[#allocation104_spill] sm:$0xff] }
 0x405   : > { %v3252_v13 = vadd.f32 %v3251_v37, %v2961_v40  ;;  %3055 = vmatmul.f32.gmra.mxu1 %v6368_v39 }
 0x406   : > { %v2691_v49 = vpop.f32.mrf.mxu0 }
 0x407   : > { %v3465_v11 = vadd.f32 %v3464_v53, %v3252_v13  ;;  %3531 = vmatmul.f32.gmra.mxu3 %v6369_v28  ;;  %v2692_v43 = vadd.f32 %v2691_v49, %v6371_v18 }
 0x408   : > { %3318 = vmatmul.f32.gmra.mxu2 %v6369_v28 }
 0x409   : > { %2770 = vmatmul.f32.gmra.mxu0 %v6370_v15  ;;  %3632 = vst [vmem:[%s5168_s21 + $0xc8] sm:$0xff] %v3465_v11  ;;  %v6376_v11 = vld [vmem:[#allocation109_spill] sm:$0xff] }
 0x40a   : > { %v2966_v48 = vpop.f32.mrf.mxu1  ;;  %v3468_v4 = vpop.f32.mrf.mxu3 }
 0x40b   : > { %v3255_v56 = vpop.f32.mrf.mxu2  ;;  %v2967_v61 = vadd.f32 %v2966_v48, %v2692_v43 }
 0x40d   : > { %v3256_v41 = vadd.f32 %v3255_v56, %v2967_v61  ;;  %3061 = vmatmul.f32.gmra.mxu1 %v6372_v27 }
 0x40e   : > { %v2696_v1 = vpop.f32.mrf.mxu0 }
 0x40f   : > { %v3469_v26 = vadd.f32 %v3468_v4, %v3256_v41  ;;  %3535 = vmatmul.f32.gmra.mxu3 %v6240_v6  ;;  %v2697_v59 = vadd.f32 %v2696_v1, %v5280_v63  ;;  %v6378_v4 = vld [vmem:[#allocation113_spill] sm:$0xff] }
 0x410   : > { %3322 = vmatmul.f32.gmra.mxu2 %v6240_v6  ;;  %v6375_v6 = vld [vmem:[#allocation107_spill] sm:$0xff] }
 0x411   : > { %2775 = vmatmul.f32.gmra.mxu0 %v6373_v3  ;;  %3634 = vst [vmem:[%s5168_s21 + $0xd8] sm:$0xff] %v3469_v26 }
 0x412   : > { %v2972_v9 = vpop.f32.mrf.mxu1  ;;  %v3472_v30 = vpop.f32.mrf.mxu3 }
 0x413   : > { %v3259_v10 = vpop.f32.mrf.mxu2  ;;  %v2973_v42 = vadd.f32 %v2972_v9, %v2697_v59 }
 0x415   : > { %v3260_v55 = vadd.f32 %v3259_v10, %v2973_v42  ;;  %3067 = vmatmul.f32.gmra.mxu1 %v6374_v58  ;;  %v6380_v10 = vld [vmem:[#allocation117_spill] sm:$0xff] }
 0x416   : > { %v2701_v8 = vpop.f32.mrf.mxu0 }
 0x417   : > { %v3473_v38 = vadd.f32 %v3472_v30, %v3260_v55  ;;  %3539 = vmatmul.f32.gmra.mxu3 %v6243_v52  ;;  %v2702_v37 = vadd.f32 %v2701_v8, %v5288_v22  ;;  %v6381_v30 = vld [vmem:[#allocation118_spill] sm:$0xff]  ;;  %v6383_v8 = vld [vmem:[#allocation81_spill] sm:$0xff] }
 0x418   : > { %3326 = vmatmul.f32.gmra.mxu2 %v6243_v52  ;;  %v6377_v52 = vld [vmem:[#allocation111_spill] sm:$0xff] }
 0x419   : > { %2780 = vmatmul.f32.gmra.mxu0 %v6375_v6  ;;  %3636 = vst [vmem:[%s5168_s21 + $0xe8] sm:$0xff] %v3473_v38 }
 0x41a   : > { %v2978_v63 = vpop.f32.mrf.mxu1  ;;  %v3476_v49 = vpop.f32.mrf.mxu3 }
 0x41b   : > { %v3263_v40 = vpop.f32.mrf.mxu2  ;;  %v2979_v53 = vadd.f32 %v2978_v63, %v2702_v37 }
 0x41d   : > { %v3264_v39 = vadd.f32 %v3263_v40, %v2979_v53  ;;  %3073 = vmatmul.f32.gmra.mxu1 %v6376_v11  ;;  %v6384_v40 = vld [vmem:[#allocation122_spill] sm:$0xff] }
 0x41e   : > { %v2706_v13 = vpop.f32.mrf.mxu0 }
 0x41f   : > { %v3477_v28 = vadd.f32 %v3476_v49, %v3264_v39  ;;  %3543 = vmatmul.f32.gmra.mxu3 %v4684_v12  ;;  %v2707_v15 = vadd.f32 %v2706_v13, %v5296_v45  ;;  %v6385_v49 = vld [vmem:[#allocation123_spill] sm:$0xff]  ;;  %v6386_v13 = vld [vmem:[#allocation124_spill] sm:$0xff]  ;;  %v6387_v39 = vld [vmem:[#allocation78_spill] sm:$0xff] }
 0x420   : > { %3330 = vmatmul.f32.gmra.mxu2 %v4684_v12  ;;  %v6379_v12 = vld [vmem:[#allocation115_spill] sm:$0xff] }
 0x421   : > { %2785 = vmatmul.f32.gmra.mxu0 %v6377_v52  ;;  %3638 = vst [vmem:[%s5168_s21 + $0xf8] sm:$0xff] %v3477_v28 }
 0x422   : > { %v2984_v22 = vpop.f32.mrf.mxu1  ;;  %v3480_v48 = vpop.f32.mrf.mxu3 }
 0x423   : > { %v3267_v18 = vpop.f32.mrf.mxu2  ;;  %v2985_v43 = vadd.f32 %v2984_v22, %v2707_v15 }
 0x425   : > { %v3268_v61 = vadd.f32 %v3267_v18, %v2985_v43  ;;  %3079 = vmatmul.f32.gmra.mxu1 %v6378_v4  ;;  %v6390_v4 = vld [vmem:[#allocation127_spill] sm:$0xff] }
 0x426   : > { %v2711_v56 = vpop.f32.mrf.mxu0 }
 0x427   : > { %v3481_v1 = vadd.f32 %v3480_v48, %v3268_v61  ;;  %3547 = vmatmul.f32.gmra.mxu3 %v4706_v25  ;;  %v2712_v41 = vadd.f32 %v2711_v56, %v5304_v14  ;;  %v6388_v48 = vld [vmem:[#allocation125_spill] sm:$0xff]  ;;  %v6389_v61 = vld [vmem:[#allocation126_spill] sm:$0xff] }
 0x428   : > { %3334 = vmatmul.f32.gmra.mxu2 %v4706_v25  ;;  %v6382_v25 = vld [vmem:[#allocation120_spill] sm:$0xff] }
 0x429   : > { %2790 = vmatmul.f32.gmra.mxu0 %v6379_v12  ;;  %3640 = vst [vmem:[%s5168_s21 + $0x108] sm:$0xff] %v3481_v1  ;;  %v6391_v1 = vld [vmem:[#allocation86_spill] sm:$0xff] }
 0x42a   : > { %v2990_v45 = vpop.f32.mrf.mxu1  ;;  %v3484_v3 = vpop.f32.mrf.mxu3 }
 0x42b   : > { %v3271_v27 = vpop.f32.mrf.mxu2  ;;  %v2991_v26 = vadd.f32 %v2990_v45, %v2712_v41 }
 0x42d   : > { %v3272_v9 = vadd.f32 %v3271_v27, %v2991_v26  ;;  %3085 = vmatmul.f32.gmra.mxu1 %v6380_v10 }
 0x42e   : > { %v2716_v59 = vpop.f32.mrf.mxu0 }
 0x42f   : > { %v3485_v42 = vadd.f32 %v3484_v3, %v3272_v9  ;;  %3551 = vmatmul.f32.gmra.mxu3 %v6381_v30  ;;  %v2717_v55 = vadd.f32 %v2716_v59, %v6383_v8  ;;  %v6392_v9 = vld [vmem:[#allocation128_spill] sm:$0xff] }
 0x430   : > { %3338 = vmatmul.f32.gmra.mxu2 %v6381_v30  ;;  %v6394_v30 = vld [vmem:[#allocation130_spill] sm:$0xff] }
 0x431   : > { %2795 = vmatmul.f32.gmra.mxu0 %v6382_v25  ;;  %3642 = vst [vmem:[%s5168_s21 + $0x118] sm:$0xff] %v3485_v42  ;;  %v6393_v42 = vld [vmem:[#allocation129_spill] sm:$0xff]  ;;  %v6395_v25 = vld [vmem:[#allocation83_spill] sm:$0xff] }
 0x432   : > { %v2996_v14 = vpop.f32.mrf.mxu1  ;;  %v3488_v6 = vpop.f32.mrf.mxu3 }
 0x433   : > { %v3275_v58 = vpop.f32.mrf.mxu2  ;;  %v2997_v38 = vadd.f32 %v2996_v14, %v2717_v55 }
 0x435   : > { %v3276_v63 = vadd.f32 %v3275_v58, %v2997_v38  ;;  %3091 = vmatmul.f32.gmra.mxu1 %v6384_v40 }
 0x436   : > { %v2721_v37 = vpop.f32.mrf.mxu0 }
 0x437   : > { %v3489_v53 = vadd.f32 %v3488_v6, %v3276_v63  ;;  %3555 = vmatmul.f32.gmra.mxu3 %v6385_v49  ;;  %v2722_v11 = vadd.f32 %v2721_v37, %v6387_v39  ;;  %v6396_v63 = vld [vmem:[#allocation132_spill] sm:$0xff] }
 0x438   : > { %3342 = vmatmul.f32.gmra.mxu2 %v6385_v49  ;;  %v6398_v49 = vld [vmem:[#allocation135_spill] sm:$0xff] }
 0x439   : > { %2800 = vmatmul.f32.gmra.mxu0 %v6386_v13  ;;  %3644 = vst [vmem:[%s5168_s21 + $0x128] sm:$0xff] %v3489_v53  ;;  %v6397_v53 = vld [vmem:[#allocation133_spill] sm:$0xff]  ;;  %v6399_v13 = vld [vmem:[#allocation91_spill] sm:$0xff] }
 0x43a   : > { %v3002_v28 = vpop.f32.mrf.mxu1  ;;  %v3492_v22 = vpop.f32.mrf.mxu3 }
 0x43b   : > { %v3279_v52 = vpop.f32.mrf.mxu2  ;;  %v3003_v15 = vadd.f32 %v3002_v28, %v2722_v11 }
 0x43d   : > { %v3280_v43 = vadd.f32 %v3279_v52, %v3003_v15  ;;  %3097 = vmatmul.f32.gmra.mxu1 %v6388_v48 }
 0x43e   : > { %v2726_v18 = vpop.f32.mrf.mxu0 }
 0x43f   : > { %v3493_v56 = vadd.f32 %v3492_v22, %v3280_v43  ;;  %3559 = vmatmul.f32.gmra.mxu3 %v6389_v61  ;;  %v2727_v12 = vadd.f32 %v2726_v18, %v6391_v1  ;;  %v6400_v43 = vld [vmem:[#allocation137_spill] sm:$0xff] }
 0x440   : > { %3346 = vmatmul.f32.gmra.mxu2 %v6389_v61  ;;  %v6402_v61 = vld [vmem:[#allocation140_spill] sm:$0xff] }
 0x441   : > { %2805 = vmatmul.f32.gmra.mxu0 %v6390_v4  ;;  %3646 = vst [vmem:[%s5168_s21 + $0x138] sm:$0xff] %v3493_v56  ;;  %v6401_v56 = vld [vmem:[#allocation138_spill] sm:$0xff]  ;;  %v6403_v4 = vld [vmem:[#allocation88_spill] sm:$0xff] }
 0x442   : > { %v3008_v41 = vpop.f32.mrf.mxu1  ;;  %v3496_v26 = vpop.f32.mrf.mxu3 }
 0x443   : > { %v3283_v45 = vpop.f32.mrf.mxu2  ;;  %v3009_v27 = vadd.f32 %v3008_v41, %v2727_v12 }
 0x445   : > { %v3284_v59 = vadd.f32 %v3283_v45, %v3009_v27  ;;  %3103 = vmatmul.f32.gmra.mxu1 %v6392_v9 }
 0x446   : > { %v2731_v3 = vpop.f32.mrf.mxu0 }
 0x447   : > { %v3497_v10 = vadd.f32 %v3496_v26, %v3284_v59  ;;  %3563 = vmatmul.f32.gmra.mxu3 %v6393_v42  ;;  %v2732_v8 = vadd.f32 %v2731_v3, %v6395_v25  ;;  %v6404_v59 = vld [vmem:[#allocation142_spill] sm:$0xff] }
 0x448   : > { %3350 = vmatmul.f32.gmra.mxu2 %v6393_v42  ;;  %v6406_v42 = vld [vmem:[#allocation145_spill] sm:$0xff] }
 0x449   : > { %2810 = vmatmul.f32.gmra.mxu0 %v6394_v30  ;;  %3648 = vst [vmem:[%s5168_s21 + $0x148] sm:$0xff] %v3497_v10  ;;  %v6405_v10 = vld [vmem:[#allocation143_spill] sm:$0xff]  ;;  %v6407_v30 = vld [vmem:[#allocation96_spill] sm:$0xff] }
 0x44a   : > { %v3014_v55 = vpop.f32.mrf.mxu1  ;;  %v3500_v38 = vpop.f32.mrf.mxu3 }
 0x44b   : > { %v3287_v14 = vpop.f32.mrf.mxu2  ;;  %v3015_v58 = vadd.f32 %v3014_v55, %v2732_v8 }
 0x44d   : > { %v3288_v37 = vadd.f32 %v3287_v14, %v3015_v58  ;;  %3109 = vmatmul.f32.gmra.mxu1 %v6396_v63 }
 0x44e   : > { %v2736_v6 = vpop.f32.mrf.mxu0 }
 0x44f   : > { %v3501_v40 = vadd.f32 %v3500_v38, %v3288_v37  ;;  %3567 = vmatmul.f32.gmra.mxu3 %v6397_v53  ;;  %v2737_v39 = vadd.f32 %v2736_v6, %v6399_v13  ;;  %v6408_v37 = vld [vmem:[#allocation147_spill] sm:$0xff] }
 0x450   : > { %3354 = vmatmul.f32.gmra.mxu2 %v6397_v53  ;;  %v6410_v53 = vld [vmem:[#allocation150_spill] sm:$0xff] }
 0x451   : > { %2815 = vmatmul.f32.gmra.mxu0 %v6398_v49  ;;  %3650 = vst [vmem:[%s5168_s21 + $0x158] sm:$0xff] %v3501_v40  ;;  %v6409_v40 = vld [vmem:[#allocation148_spill] sm:$0xff]  ;;  %v6411_v49 = vld [vmem:[#allocation93_spill] sm:$0xff] }
 0x452   : > { %v3020_v11 = vpop.f32.mrf.mxu1  ;;  %v3504_v15 = vpop.f32.mrf.mxu3 }
 0x453   : > { %v3291_v28 = vpop.f32.mrf.mxu2  ;;  %v3021_v52 = vadd.f32 %v3020_v11, %v2737_v39 }
 0x455   : > { %v3292_v18 = vadd.f32 %v3291_v28, %v3021_v52  ;;  %3115 = vmatmul.f32.gmra.mxu1 %v6400_v43 }
 0x456   : > { %v2741_v22 = vpop.f32.mrf.mxu0 }
 0x457   : > { %v3505_v48 = vadd.f32 %v3504_v15, %v3292_v18  ;;  %3571 = vmatmul.f32.gmra.mxu3 %v6401_v56  ;;  %v2742_v1 = vadd.f32 %v2741_v22, %v6403_v4  ;;  %v6412_v18 = vld [vmem:[#allocation152_spill] sm:$0xff] }
 0x458   : > { %3358 = vmatmul.f32.gmra.mxu2 %v6401_v56  ;;  %v6414_v56 = vld [vmem:[#allocation101_spill] sm:$0xff] }
 0x459   : > { %2820 = vmatmul.f32.gmra.mxu0 %v6402_v61  ;;  %3652 = vst [vmem:[%s5168_s21 + $0x168] sm:$0xff] %v3505_v48  ;;  %v6413_v48 = vld [vmem:[#allocation155_spill] sm:$0xff] }
 0x45a   : > { %v3026_v12 = vpop.f32.mrf.mxu1  ;;  %v3508_v27 = vpop.f32.mrf.mxu3 }
 0x45b   : > { %v3295_v41 = vpop.f32.mrf.mxu2  ;;  %v3027_v45 = vadd.f32 %v3026_v12, %v2742_v1 }
 0x45d   : > { %v3296_v3 = vadd.f32 %v3295_v41, %v3027_v45  ;;  %3121 = vmatmul.f32.gmra.mxu1 %v6404_v59 }
 0x45e   : > { %v2746_v26 = vpop.f32.mrf.mxu0 }
 0x45f   : > { %v3509_v9 = vadd.f32 %v3508_v27, %v3296_v3  ;;  %3575 = vmatmul.f32.gmra.mxu3 %v6405_v10  ;;  %v2747_v25 = vadd.f32 %v2746_v26, %v6407_v30  ;;  %v6415_v26 = vld [vmem:[#allocation157_spill] sm:$0xff] }
 0x460   : > { %3362 = vmatmul.f32.gmra.mxu2 %v6405_v10 }
 0x461   : > { %2825 = vmatmul.f32.gmra.mxu0 %v6406_v42  ;;  %3654 = vst [vmem:[%s5168_s21 + $0x178] sm:$0xff] %v3509_v9 }
 0x462   : > { %v3032_v8 = vpop.f32.mrf.mxu1  ;;  %v3512_v58 = vpop.f32.mrf.mxu3 }
 0x463   : > { %v3299_v55 = vpop.f32.mrf.mxu2  ;;  %v3033_v14 = vadd.f32 %v3032_v8, %v2747_v25 }
 0x465   : > { %v3300_v6 = vadd.f32 %v3299_v55, %v3033_v14  ;;  %3127 = vmatmul.f32.gmra.mxu1 %v6408_v37  ;;  %v6417_v55 = vld [vmem:[#allocation162_spill] sm:$0xff] }
 0x466   : > { %v2751_v38 = vpop.f32.mrf.mxu0 }
 0x467   : > { %v3513_v63 = vadd.f32 %v3512_v58, %v3300_v6  ;;  %3579 = vmatmul.f32.gmra.mxu3 %v6409_v40  ;;  %v2752_v13 = vadd.f32 %v2751_v38, %v6411_v49 }
 0x468   : > { %3366 = vmatmul.f32.gmra.mxu2 %v6409_v40 }
 0x469   : > { %2830 = vmatmul.f32.gmra.mxu0 %v6410_v53  ;;  %3656 = vst [vmem:[%s5168_s21 + $0x188] sm:$0xff] %v3513_v63  ;;  %v6419_v53 = vld [vmem:[#allocation166_spill] sm:$0xff] }
 0x46a   : > { %v3038_v39 = vpop.f32.mrf.mxu1  ;;  %v3516_v52 = vpop.f32.mrf.mxu3 }
 0x46b   : > { %v3303_v11 = vpop.f32.mrf.mxu2  ;;  %v3039_v28 = vadd.f32 %v3038_v39, %v2752_v13 }
 0x46d   : > { %v3304_v22 = vadd.f32 %v3303_v11, %v3039_v28  ;;  %3133 = vmatmul.f32.gmra.mxu1 %v6412_v18 }
 0x46e   : > { %v2756_v15 = vpop.f32.mrf.mxu0 }
 0x46f   : > { %v3517_v43 = vadd.f32 %v3516_v52, %v3304_v22  ;;  %3583 = vmatmul.f32.gmra.mxu3 %v6276_v34  ;;  %v2757_v61 = vadd.f32 %v2756_v15, %v6414_v56  ;;  %v6421_v22 = vld [vmem:[#allocation170_spill] sm:$0xff] }
 0x470   : > { %3370 = vmatmul.f32.gmra.mxu2 %v6276_v34  ;;  %v6416_v34 = vld [vmem:[#allocation160_spill] sm:$0xff] }
 0x471   : > { %2835 = vmatmul.f32.gmra.mxu0 %v6413_v48  ;;  %3658 = vst [vmem:[%s5168_s21 + $0x198] sm:$0xff] %v3517_v43 }
 0x472   : > { %v3044_v4 = vpop.f32.mrf.mxu1  ;;  %v3520_v41 = vpop.f32.mrf.mxu3 }
 0x473   : > { %v3307_v1 = vpop.f32.mrf.mxu2  ;;  %v3045_v12 = vadd.f32 %v3044_v4, %v2757_v61 }
 0x475   : > { %v3308_v27 = vadd.f32 %v3307_v1, %v3045_v12  ;;  %3139 = vmatmul.f32.gmra.mxu1 %v6415_v26  ;;  %v6423_v12 = vld [vmem:[#allocation174_spill] sm:$0xff] }
 0x476   : > { %v2761_v45 = vpop.f32.mrf.mxu0 }
 0x477   : > { %v3521_v3 = vadd.f32 %v3520_v41, %v3308_v27  ;;  %3587 = vmatmul.f32.gmra.mxu3 %v6280_v33  ;;  %v2762_v59 = vadd.f32 %v2761_v45, %v5384_v60 }
 0x478   : > { %3374 = vmatmul.f32.gmra.mxu2 %v6280_v33  ;;  %v6418_v33 = vld [vmem:[#allocation164_spill] sm:$0xff] }
 0x479   : > { %2840 = vmatmul.f32.gmra.mxu0 %v6416_v34  ;;  %3660 = vst [vmem:[%s5168_s21 + $0x1a8] sm:$0xff] %v3521_v3 }
 0x47a   : > { %v3050_v9 = vpop.f32.mrf.mxu1  ;;  %v3524_v30 = vpop.f32.mrf.mxu3 }
 0x47b   : > { %v3311_v10 = vpop.f32.mrf.mxu2  ;;  %v3051_v42 = vadd.f32 %v3050_v9, %v2762_v59  ;;  %v6425_v9 = vld [vmem:[#allocation178_spill] sm:$0xff] }
 0x47d   : > { %v3312_v8 = vadd.f32 %v3311_v10, %v3051_v42  ;;  %3145 = vmatmul.f32.gmra.mxu1 %v6417_v55 }
 0x47e   : > { %v2766_v25 = vpop.f32.mrf.mxu0 }
 0x47f   : > { %v3525_v14 = vadd.f32 %v3524_v30, %v3312_v8  ;;  %3591 = vmatmul.f32.gmra.mxu3 %v4960_v32  ;;  %v2767_v58 = vadd.f32 %v2766_v25, %v5392_v46 }
 0x480   : > { %3378 = vmatmul.f32.gmra.mxu2 %v4960_v32  ;;  %v6420_v32 = vld [vmem:[#allocation168_spill] sm:$0xff] }
 0x481   : > { %2845 = vmatmul.f32.gmra.mxu0 %v6418_v33  ;;  %3662 = vst [vmem:[%s5168_s21 + $0x1b8] sm:$0xff] %v3525_v14 }
 0x482   : > { %v3056_v60 = vpop.f32.mrf.mxu1  ;;  %v3528_v37 = vpop.f32.mrf.mxu3 }
 0x483   : > { %v3315_v38 = vpop.f32.mrf.mxu2  ;;  %v3057_v6 = vadd.f32 %v3056_v60, %v2767_v58 }
 0x485   : > { %v3316_v40 = vadd.f32 %v3315_v38, %v3057_v6  ;;  %3151 = vmatmul.f32.gmra.mxu1 %v6419_v53 }
 0x486   : > { %v2771_v63 = vpop.f32.mrf.mxu0 }
 0x487   : > { %v3529_v49 = vadd.f32 %v3528_v37, %v3316_v40  ;;  %3595 = vmatmul.f32.gmra.mxu3 %v4982_v21  ;;  %v2772_v13 = vadd.f32 %v2771_v63, %v5400_v31 }
 0x488   : > { %3382 = vmatmul.f32.gmra.mxu2 %v4982_v21  ;;  %v6422_v21 = vld [vmem:[#allocation172_spill] sm:$0xff] }
 0x489   : > { %2850 = vmatmul.f32.gmra.mxu0 %v6420_v32  ;;  %3664 = vst [vmem:[%s5168_s21 + $0x1c8] sm:$0xff] %v3529_v49 }
 0x48a   : > { %v3062_v46 = vpop.f32.mrf.mxu1  ;;  %v3532_v28 = vpop.f32.mrf.mxu3 }
 0x48b   : > { %v3319_v39 = vpop.f32.mrf.mxu2  ;;  %v3063_v11 = vadd.f32 %v3062_v46, %v2772_v13 }
 0x48d   : > { %v3320_v15 = vadd.f32 %v3319_v39, %v3063_v11  ;;  %3157 = vmatmul.f32.gmra.mxu1 %v6421_v22 }
 0x48e   : > { %v2776_v52 = vpop.f32.mrf.mxu0 }
 0x48f   : > { %v3533_v18 = vadd.f32 %v3532_v28, %v3320_v15  ;;  %3599 = vmatmul.f32.gmra.mxu3 %v5004_v19  ;;  %v2777_v43 = vadd.f32 %v2776_v52, %v5408_v29 }
 0x490   : > { %3386 = vmatmul.f32.gmra.mxu2 %v5004_v19  ;;  %v6424_v19 = vld [vmem:[#allocation176_spill] sm:$0xff] }
 0x491   : > { %2855 = vmatmul.f32.gmra.mxu0 %v6422_v21  ;;  %3666 = vst [vmem:[%s5168_s21 + $0x1d8] sm:$0xff] %v3533_v18 }
 0x492   : > { %v3068_v31 = vpop.f32.mrf.mxu1  ;;  %v3536_v61 = vpop.f32.mrf.mxu3 }
 0x493   : > { %v3323_v48 = vpop.f32.mrf.mxu2  ;;  %v3069_v56 = vadd.f32 %v3068_v31, %v2777_v43 }
 0x495   : > { %v3324_v1 = vadd.f32 %v3323_v48, %v3069_v56  ;;  %3163 = vmatmul.f32.gmra.mxu1 %v6423_v12 }
 0x496   : > { %v2781_v4 = vpop.f32.mrf.mxu0 }
 0x497   : > { %v3537_v41 = vadd.f32 %v3536_v61, %v3324_v1  ;;  %3603 = vmatmul.f32.gmra.mxu3 %v5026_v0  ;;  %v2782_v45 = vadd.f32 %v2781_v4, %v5416_v47 }
 0x498   : > { %3390 = vmatmul.f32.gmra.mxu2 %v5026_v0 }
 0x499   : > { %2860 = vmatmul.f32.gmra.mxu0 %v6424_v19  ;;  %3668 = vst [vmem:[%s5168_s21 + $0x1e8] sm:$0xff] %v3537_v41 }
 0x49a   : > { %v3074_v29 = vpop.f32.mrf.mxu1  ;;  %v3540_v3 = vpop.f32.mrf.mxu3 }
 0x49b   : > { %v3327_v27 = vpop.f32.mrf.mxu2  ;;  %v3075_v26 = vadd.f32 %v3074_v29, %v2782_v45 }
 0x49d   : > { %v3328_v59 = vadd.f32 %v3327_v27, %v3075_v26  ;;  %3169 = vmatmul.f32.gmra.mxu1 %v6425_v9 }
 0x49e   : > { %v2786_v34 = vpop.f32.mrf.mxu0 }
 0x49f   : > { %v3541_v10 = vadd.f32 %v3540_v3, %v3328_v59  ;;  %v2787_v42 = vadd.f32 %v2786_v34, %v5424_v20 }
 0x4a1   : > { %3670 = vst [vmem:[%s5168_s21 + $0x1f8] sm:$0xff] %v3541_v10 }
 0x4a2   : > { %v3080_v30 = vpop.f32.mrf.mxu1  ;;  %v3544_v8 = vpop.f32.mrf.mxu3 }
 0x4a3   : > { %v3331_v0 = vpop.f32.mrf.mxu2  ;;  %v3081_v25 = vadd.f32 %v3080_v30, %v2787_v42 }
 0x4a5   : > { %v3332_v55 = vadd.f32 %v3331_v0, %v3081_v25 }
 0x4a6   : > { %v2791_v47 = vpop.f32.mrf.mxu0 }
 0x4a7   : > { %v3545_v14 = vadd.f32 %v3544_v8, %v3332_v55  ;;  %v2792_v33 = vadd.f32 %v2791_v47, %v5432_v2 }
 0x4a9   : > { %3672 = vst [vmem:[%s5168_s21 + $0x208] sm:$0xff] %v3545_v14 }
 0x4aa   : > { %v3086_v58 = vpop.f32.mrf.mxu1  ;;  %v3548_v6 = vpop.f32.mrf.mxu3 }
 0x4ab   : > { %v3335_v60 = vpop.f32.mrf.mxu2  ;;  %v3087_v38 = vadd.f32 %v3086_v58, %v2792_v33 }
 0x4ad   : > { %v3336_v63 = vadd.f32 %v3335_v60, %v3087_v38 }
 0x4ae   : > { %v2796_v37 = vpop.f32.mrf.mxu0 }
 0x4af   : > { %v3549_v20 = vadd.f32 %v3548_v6, %v3336_v63  ;;  %v2797_v40 = vadd.f32 %v2796_v37, %v5440_v17 }
 0x4b1   : > { %3674 = vst [vmem:[%s5168_s21 + $0x218] sm:$0xff] %v3549_v20 }
 0x4b2   : > { %v3092_v53 = vpop.f32.mrf.mxu1  ;;  %v3552_v13 = vpop.f32.mrf.mxu3 }
 0x4b3   : > { %v3339_v49 = vpop.f32.mrf.mxu2  ;;  %v3093_v32 = vadd.f32 %v3092_v53, %v2797_v40 }
 0x4b5   : > { %v3340_v39 = vadd.f32 %v3339_v49, %v3093_v32 }
 0x4b6   : > { %v2801_v46 = vpop.f32.mrf.mxu0 }
 0x4b7   : > { %v3553_v2 = vadd.f32 %v3552_v13, %v3340_v39  ;;  %v2802_v11 = vadd.f32 %v2801_v46, %v5448_v24 }
 0x4b9   : > { %3676 = vst [vmem:[%s5168_s21 + $0x228] sm:$0xff] %v3553_v2 }
 0x4ba   : > { %v3098_v28 = vpop.f32.mrf.mxu1  ;;  %v3556_v22 = vpop.f32.mrf.mxu3 }
 0x4bb   : > { %v3343_v52 = vpop.f32.mrf.mxu2  ;;  %v3099_v15 = vadd.f32 %v3098_v28, %v2802_v11 }
 0x4bd   : > { %v3344_v21 = vadd.f32 %v3343_v52, %v3099_v15 }
 0x4be   : > { %v2806_v18 = vpop.f32.mrf.mxu0 }
 0x4bf   : > { %v3557_v17 = vadd.f32 %v3556_v22, %v3344_v21  ;;  %v2807_v43 = vadd.f32 %v2806_v18, %v5456_v57 }
 0x4c1   : > { %3678 = vst [vmem:[%s5168_s21 + $0x238] sm:$0xff] %v3557_v17 }
 0x4c2   : > { %v3104_v31 = vpop.f32.mrf.mxu1  ;;  %v3560_v61 = vpop.f32.mrf.mxu3 }
 0x4c3   : > { %v3347_v48 = vpop.f32.mrf.mxu2  ;;  %v3105_v56 = vadd.f32 %v3104_v31, %v2807_v43 }
 0x4c5   : > { %v3348_v1 = vadd.f32 %v3347_v48, %v3105_v56 }
 0x4c6   : > { %v2811_v4 = vpop.f32.mrf.mxu0 }
 0x4c7   : > { %v3561_v24 = vadd.f32 %v3560_v61, %v3348_v1  ;;  %v2812_v12 = vadd.f32 %v2811_v4, %v5464_v54 }
 0x4c9   : > { %3680 = vst [vmem:[%s5168_s21 + $0x248] sm:$0xff] %v3561_v24 }
 0x4ca   : > { %v3110_v41 = vpop.f32.mrf.mxu1  ;;  %v3564_v29 = vpop.f32.mrf.mxu3 }
 0x4cb   : > { %v3351_v19 = vpop.f32.mrf.mxu2  ;;  %v3111_v45 = vadd.f32 %v3110_v41, %v2812_v12 }
 0x4cd   : > { %v3352_v26 = vadd.f32 %v3351_v19, %v3111_v45 }
 0x4ce   : > { %v2816_v27 = vpop.f32.mrf.mxu0 }
 0x4cf   : > { %v3565_v57 = vadd.f32 %v3564_v29, %v3352_v26  ;;  %v2817_v3 = vadd.f32 %v2816_v27, %v5472_v44 }
 0x4d1   : > { %3682 = vst [vmem:[%s5168_s21 + $0x258] sm:$0xff] %v3565_v57 }
 0x4d2   : > { %v3116_v34 = vpop.f32.mrf.mxu1  ;;  %v3568_v10 = vpop.f32.mrf.mxu3 }
 0x4d3   : > { %v3355_v59 = vpop.f32.mrf.mxu2  ;;  %v3117_v9 = vadd.f32 %v3116_v34, %v2817_v3 }
 0x4d5   : > { %v3356_v30 = vadd.f32 %v3355_v59, %v3117_v9 }
 0x4d6   : > { %v2821_v42 = vpop.f32.mrf.mxu0 }
 0x4d7   : > { %v3569_v54 = vadd.f32 %v3568_v10, %v3356_v30  ;;  %v2822_v0 = vadd.f32 %v2821_v42, %v5480_v5 }
 0x4d9   : > { %3684 = vst [vmem:[%s5168_s21 + $0x268] sm:$0xff] %v3569_v54 }
 0x4da   : > { %v3122_v25 = vpop.f32.mrf.mxu1  ;;  %v3572_v55 = vpop.f32.mrf.mxu3 }
 0x4db   : > { %v3359_v8 = vpop.f32.mrf.mxu2  ;;  %v3123_v47 = vadd.f32 %v3122_v25, %v2822_v0 }
 0x4dd   : > { %v3360_v33 = vadd.f32 %v3359_v8, %v3123_v47 }
 0x4de   : > { %v2826_v14 = vpop.f32.mrf.mxu0 }
 0x4df   : > { %v3573_v44 = vadd.f32 %v3572_v55, %v3360_v33  ;;  %v2827_v58 = vadd.f32 %v2826_v14, %v5488_v62 }
 0x4e1   : > { %3686 = vst [vmem:[%s5168_s21 + $0x278] sm:$0xff] %v3573_v44 }
 0x4e2   : > { %v3128_v60 = vpop.f32.mrf.mxu1  ;;  %v3576_v37 = vpop.f32.mrf.mxu3 }
 0x4e3   : > { %v3363_v38 = vpop.f32.mrf.mxu2  ;;  %v3129_v6 = vadd.f32 %v3128_v60, %v2827_v58 }
 0x4e5   : > { %v3364_v20 = vadd.f32 %v3363_v38, %v3129_v6 }
 0x4e6   : > { %v2831_v63 = vpop.f32.mrf.mxu0 }
 0x4e7   : > { %v3577_v5 = vadd.f32 %v3576_v37, %v3364_v20  ;;  %v2832_v40 = vadd.f32 %v2831_v63, %v5496_v35 }
 0x4e9   : > { %3688 = vst [vmem:[%s5168_s21 + $0x288] sm:$0xff] %v3577_v5 }
 0x4ea   : > { %v3134_v53 = vpop.f32.mrf.mxu1  ;;  %v3580_v13 = vpop.f32.mrf.mxu3 }
 0x4eb   : > { %v3367_v49 = vpop.f32.mrf.mxu2  ;;  %v3135_v32 = vadd.f32 %v3134_v53, %v2832_v40 }
 0x4ed   : > { %v3368_v39 = vadd.f32 %v3367_v49, %v3135_v32 }
 0x4ee   : > { %v2836_v46 = vpop.f32.mrf.mxu0 }
 0x4ef   : > { %v3581_v62 = vadd.f32 %v3580_v13, %v3368_v39  ;;  %v2837_v2 = vadd.f32 %v2836_v46, %v5504_v16 }
 0x4f1   : > { %3690 = vst [vmem:[%s5168_s21 + $0x298] sm:$0xff] %v3581_v62 }
 0x4f2   : > { %v3140_v11 = vpop.f32.mrf.mxu1  ;;  %v3584_v15 = vpop.f32.mrf.mxu3 }
 0x4f3   : > { %v3371_v28 = vpop.f32.mrf.mxu2  ;;  %v3141_v52 = vadd.f32 %v3140_v11, %v2837_v2 }
 0x4f5   : > { %v3372_v18 = vadd.f32 %v3371_v28, %v3141_v52 }
 0x4f6   : > { %v2841_v22 = vpop.f32.mrf.mxu0 }
 0x4f7   : > { %v3585_v35 = vadd.f32 %v3584_v15, %v3372_v18  ;;  %v2842_v21 = vadd.f32 %v2841_v22, %v5512_v23 }
 0x4f9   : > { %3692 = vst [vmem:[%s5168_s21 + $0x2a8] sm:$0xff] %v3585_v35 }
 0x4fa   : > { %v3146_v17 = vpop.f32.mrf.mxu1  ;;  %v3588_v48 = vpop.f32.mrf.mxu3 }
 0x4fb   : > { %v3375_v43 = vpop.f32.mrf.mxu2  ;;  %v3147_v31 = vadd.f32 %v3146_v17, %v2842_v21 }
 0x4fd   : > { %v3376_v61 = vadd.f32 %v3375_v43, %v3147_v31 }
 0x4fe   : > { %v2846_v56 = vpop.f32.mrf.mxu0 }
 0x4ff   : > { %v3589_v16 = vadd.f32 %v3588_v48, %v3376_v61  ;;  %v2847_v4 = vadd.f32 %v2846_v56, %v5520_v7 }
 0x501   : > { %3694 = vst [vmem:[%s5168_s21 + $0x2b8] sm:$0xff] %v3589_v16 }
 0x502   : > { %v3152_v1 = vpop.f32.mrf.mxu1  ;;  %v3592_v41 = vpop.f32.mrf.mxu3 }
 0x503   : > { %v3379_v24 = vpop.f32.mrf.mxu2  ;;  %v3153_v12 = vadd.f32 %v3152_v1, %v2847_v4 }
 0x505   : > { %v3380_v45 = vadd.f32 %v3379_v24, %v3153_v12 }
 0x506   : > { %v2851_v19 = vpop.f32.mrf.mxu0 }
 0x507   : > { %v3593_v23 = vadd.f32 %v3592_v41, %v3380_v45  ;;  %v2852_v29 = vadd.f32 %v2851_v19, %v5528_v50 }
 0x509   : > { %3696 = vst [vmem:[%s5168_s21 + $0x2c8] sm:$0xff] %v3593_v23 }
 0x50a   : > { %v3158_v27 = vpop.f32.mrf.mxu1  ;;  %v3596_v3 = vpop.f32.mrf.mxu3 }
 0x50b   : > { %v3383_v26 = vpop.f32.mrf.mxu2  ;;  %v3159_v57 = vadd.f32 %v3158_v27, %v2852_v29 }
 0x50d   : > { %v3384_v7 = vadd.f32 %v3383_v26, %v3159_v57 }
 0x50e   : > { %v2856_v34 = vpop.f32.mrf.mxu0 }
 0x50f   : > { %v3597_v59 = vadd.f32 %v3596_v3, %v3384_v7  ;;  %v2857_v9 = vadd.f32 %v2856_v34, %v5536_v51 }
 0x511   : > { %3698 = vst [vmem:[%s5168_s21 + $0x2d8] sm:$0xff] %v3597_v59 }
 0x512   : > { %v3164_v10 = vpop.f32.mrf.mxu1  ;;  %v3600_v54 = vpop.f32.mrf.mxu3 }
 0x513   : > { %v3387_v42 = vpop.f32.mrf.mxu2  ;;  %v3165_v30 = vadd.f32 %v3164_v10, %v2857_v9 }
 0x515   : > { %v3388_v50 = vadd.f32 %v3387_v42, %v3165_v30 }
 0x516   : > { %v2861_v0 = vpop.f32.mrf.mxu0 }
 0x517   : > { %v3601_v25 = vadd.f32 %v3600_v54, %v3388_v50  ;;  %v2862_v8 = vadd.f32 %v2861_v0, %v5544_v36 }
 0x519   : > { %3700 = vst [vmem:[%s5168_s21 + $0x2e8] sm:$0xff] %v3601_v25 }
 0x51a   : > { %v3170_v51 = vpop.f32.mrf.mxu1  ;;  %v3604_v14 = vpop.f32.mrf.mxu3 }
 0x51b   : > { %v3391_v47 = vpop.f32.mrf.mxu2  ;;  %v3171_v55 = vadd.f32 %v3170_v51, %v2862_v8 }
 0x51d   : > { %v3392_v33 = vadd.f32 %v3391_v47, %v3171_v55 }
 0x51f   : > { %v3605_v44 = vadd.f32 %v3604_v14, %v3392_v33 }
 0x521   : > { %3702 = vst [vmem:[%s5168_s21 + $0x2f8] sm:$0xff] %v3605_v44 }
 0x522   : > { %3845 = shalt.err (!%p3842_p2)
}
 0x523   : > { %s3882_s7 = smov 256   ;;  %s3883_s8 = smov 16  }
 0x524   : > { %3777 = dma.vmem_to_hbm [thread:$0]  (%p3936_p5), %s3717_s26, 12288, %s3719_s27, %s3704_s13, %s3882_s7, %s3882_s7, %s3883_s8  }
 0x525 PF: > { %p3783_p3 = scmp.ge.s32.totalorder %s3880_s12, 2  ;;  %s3733_s14 = sand.u32 1, %s3868_s9  }
 0x526   : > { %s3734_s16 = scalar_lea.sflag [#allocation3], %s3733_s14 }
 0x527   : > { %p3780_p4 = pnand %p3783_p3, %p3940_p6 }
 0x529   : > { %p3781_p7 = pneg %p3780_p4 }
 0x52b   : > { %3863 = dma.done.wait (%p3781_p7), %s3734_s16, 12288  }
 0x52c   : > { %3865 = vsyncadd (%p3781_p7), %s3734_s16, 4294955008  ;;  %p12_p8 = scmp.ge.s32.totalorder %s3922_s15, 4   ;;  %s6426_s9 = smov %s3872_s10 }
 0x52d   : > { %s6427_s10 = smov %s3876_s11  ;;  %s6428_s11 = smov %s3934_s18 }
 0x52e   : > { %s6429_s12 = smov %s3922_s15  ;;  %14 = sbr.rel (!%p12_p8) target bundleno = 3 (0x3), region = 60 }
 0x533   :  { %3740 = vsyncpa [#allocation3], 1 }
 0x534   :  { %3742 = vsyncpa [#allocation3 + $0x1], 1 }

</bundles_post_ra>
